<compile_context>
chip_gen: v5e
topology: v5e:2x2
jax: 0.10.0
libtpu: 0.0.40
codegen_flags: <defaults>
</compile_context>

<pallas_src>
import functools

import jax
import jax.numpy as jnp
from jax.experimental import pallas as pl
from jax.experimental.pallas import tpu as pltpu


# Padded layer widths (lane-aligned).
D_IN = 10            # input features (left unpadded; equals full array dim)
D_H1 = 128           # 84  -> 128
D_H2 = 128           # 120 -> 128
D_H3 = 512           # 400 -> 512
D_OUT = 32 * 32 * 3  # 3072 = 24 * 128, already lane-dense


# ------------------------- Pallas kernel -------------------------

def decoder_kernel(x_ref,
                   w1_ref, b1_ref,
                   w2_ref, b2_ref,
                   w3_ref, b3_ref,
                   w4_ref, b4_ref,
                   o_ref):
    # Activations are cast to bf16 right before each MXU dot; accumulation,
    # bias add and ReLU stay in f32.  (Deliberate numeric divergence vs a pure
    # f32 reference; validated with a loosened tolerance in __main__.)
    x = x_ref[...].astype(jnp.bfloat16)

    # fc1 + ReLU
    h = jnp.dot(x, w1_ref[...], preferred_element_type=jnp.float32) + b1_ref[...]
    h = jnp.maximum(h, 0.0)

    # fc2 + ReLU
    h = jnp.dot(h.astype(jnp.bfloat16), w2_ref[...],
                preferred_element_type=jnp.float32) + b2_ref[...]
    h = jnp.maximum(h, 0.0)

    # fc3 + ReLU
    h = jnp.dot(h.astype(jnp.bfloat16), w3_ref[...],
                preferred_element_type=jnp.float32) + b3_ref[...]
    h = jnp.maximum(h, 0.0)

    # fc4 (no activation)
    o_ref[...] = (jnp.dot(h.astype(jnp.bfloat16), w4_ref[...],
                          preferred_element_type=jnp.float32)
                  + b4_ref[...]).astype(o_ref.dtype)


# ------------------------- parameter prep (pad + bf16 cast) -------------------------

def _pad2d(a, rows, cols):
    return jnp.pad(a, ((0, rows - a.shape[0]), (0, cols - a.shape[1])))


def prepare_params(params):
    """Zero-pad hidden dims to lane-aligned widths and cast weights to bf16.

    Biases stay f32 (added after the f32 accumulation). Padding is exact:
    padded bias entries are zero, ReLU(0)=0, and zero K-rows contribute
    nothing to downstream dots."""
    (w1, b1), (w2, b2), (w3, b3), (w4, b4) = params
    w1p = _pad2d(w1, D_IN, D_H1).astype(jnp.bfloat16)
    b1p = _pad2d(b1, 1, D_H1)
    w2p = _pad2d(w2, D_H1, D_H2).astype(jnp.bfloat16)
    b2p = _pad2d(b2, 1, D_H2)
    w3p = _pad2d(w3, D_H2, D_H3).astype(jnp.bfloat16)
    b3p = _pad2d(b3, 1, D_H3)
    w4p = _pad2d(w4, D_H3, D_OUT).astype(jnp.bfloat16)
    b4p = b4  # already (1, 3072)
    return (w1p, b1p, w2p, b2p, w3p, b3p, w4p, b4p)


# ------------------------- wrapper -------------------------

def _round_up(n, m):
    return ((n + m - 1) // m) * m


def _select_tile(batch, block_m):
    """Pick the batch tile.

    * batch <= 256: one grid step covering the whole batch (block equals the
      full array dim -> no host-side padding and no output slice copy).
    * larger batches: a multiple of 128 capped at block_m, sized so the grid
      has >= 2 steps (lets the "parallel" axis shard across both TensorCores
      on v7x).  A ragged last block is handled by the Pallas pipeline
      (padded reads / masked writes) - rows are independent, so padding rows
      never contaminate valid output rows.
    """
    if batch <= 256:
        return batch
    return min(block_m, _round_up(pl.cdiv(batch, 2), 128))


@functools.partial(jax.jit, static_argnames=("block_m", "out_dtype"))
def image_decoder_forward(x, prepped_params, *, block_m=512,
                          out_dtype=jnp.float32):
    """x: (B, 10) float32 -> (B, 3072) out_dtype (default float32).

    block_m=512 is the generation-safe default; 1024 is reasonable only on
    128-MiB-VMEM parts (v5e/v6e) with very large batches."""
    (w1p, b1p, w2p, b2p, w3p, b3p, w4p, b4p) = prepped_params
    B = x.shape[0]

    tm = _select_tile(B, block_m)
    grid = (pl.cdiv(B, tm),)

    # Weights/biases: constant index_map -> DMA'd once and VMEM-resident;
    # Buffered(1) removes the useless second pipeline buffer.
    def const_spec(shape):
        return pl.BlockSpec(shape, lambda i: (0, 0),
                            pipeline_mode=pl.Buffered(1))

    in_specs = [
        pl.BlockSpec((tm, D_IN), lambda i: (i, 0)),     # x (double-buffered)
        const_spec((D_IN, D_H1)), const_spec((1, D_H1)),
        const_spec((D_H1, D_H2)), const_spec((1, D_H2)),
        const_spec((D_H2, D_H3)), const_spec((1, D_H3)),
        const_spec((D_H3, D_OUT)), const_spec((1, D_OUT)),
    ]
    out_spec = pl.BlockSpec((tm, D_OUT), lambda i: (i, 0))

    flops = 2 * B * (D_IN * D_H1 + D_H1 * D_H2 + D_H2 * D_H3 + D_H3 * D_OUT)
    weight_bytes = sum(int(w.size) * w.dtype.itemsize
                       for w in (w1p, b1p, w2p, b2p, w3p, b3p, w4p, b4p))
    out_itemsize = jnp.dtype(out_dtype).itemsize
    bytes_accessed = (B * D_IN * 4) + weight_bytes + (B * D_OUT * out_itemsize)

    return pl.pallas_call(
        decoder_kernel,
        out_shape=jax.ShapeDtypeStruct((B, D_OUT), out_dtype),
        grid=grid,
        in_specs=in_specs,
        out_specs=out_spec,
        compiler_params=pltpu.CompilerParams(
            dimension_semantics=("parallel",),
            # TM=512 residency is ~18 MiB (12 MiB output double-buffer +
            # 3.3 MiB single-buffered weights + intermediates). Raise the
            # scoped limit above v5e's 16 MiB default; stays well under v7x's
            # 64 MiB physical VMEM.
            vmem_limit_bytes=48 * 1024 * 1024,
        ),
        cost_estimate=pl.CostEstimate(
            flops=flops, transcendentals=0, bytes_accessed=bytes_accessed),
    )(x, w1p, b1p, w2p, b2p, w3p, b3p, w4p, b4p)


# ------------------------- parameter setup (deterministic) -------------------------

def init_linear(key, fan_in, fan_out):
    """Mimic torch.nn.Linear default init: U(-1/sqrt(fan_in), 1/sqrt(fan_in))."""
    kw, kb = jax.random.split(key)
    bound = 1.0 / jnp.sqrt(jnp.float32(fan_in))
    # stored as (in, out) so the kernel does x @ W
    w = jax.random.uniform(kw, (fan_in, fan_out), jnp.float32, -bound, bound)
    b = jax.random.uniform(kb, (1, fan_out), jnp.float32, -bound, bound)
    return w, b


def make_params(key):
    k1, k2, k3, k4 = jax.random.split(key, 4)
    return (
        init_linear(k1, 10, 84),
        init_linear(k2, 84, 120),
        init_linear(k3, 120, 16 * 5 * 5),           # 400
        init_linear(k4, 16 * 5 * 5, 32 * 32 * 3),   # 400 -> 3072
    )


# ------------------------- reference (plain JAX, f32) -------------------------

def reference_forward(x, params):
    (w1, b1), (w2, b2), (w3, b3), (w4, b4) = params
    h = jnp.maximum(x @ w1 + b1, 0.0)
    h = jnp.maximum(h @ w2 + b2, 0.0)
    h = jnp.maximum(h @ w3 + b3, 0.0)
    return h @ w4 + b4


# ------------------------- main -------------------------

if __name__ == "__main__":
    key = jax.random.PRNGKey(0)
    k_params, k_x = jax.random.split(key)

    params = make_params(k_params)
    prepped = prepare_params(params)

    x = jax.random.normal(k_x, (2, 10), jnp.float32)   # batch=2, features=10

    out = image_decoder_forward(x, prepped)
    out = jax.block_until_ready(out)

    ref = reference_forward(x, params)
    assert out.shape == (2, 32 * 32 * 3), out.shape
    # bf16 weights/activations inside the kernel -> loosened tolerance vs the
    # f32 PyTorch-equivalent reference (documented numeric divergence).
    assert jnp.allclose(out, ref, atol=5e-2, rtol=5e-2), "mismatch vs reference"

    print("KERNEL_OK")
</pallas_src>

<mosaic_0001>
module attributes {stable_mosaic.version = 11 : i64} {
  func.func @decoder_kernel(%arg0: i32, %arg1: memref<2x10xf32, #tpu.memory_space<vmem>>, %arg2: memref<10x128xbf16, #tpu.memory_space<vmem>>, %arg3: memref<1x128xf32, #tpu.memory_space<vmem>>, %arg4: memref<128x128xbf16, #tpu.memory_space<vmem>>, %arg5: memref<1x128xf32, #tpu.memory_space<vmem>>, %arg6: memref<128x512xbf16, #tpu.memory_space<vmem>>, %arg7: memref<1x512xf32, #tpu.memory_space<vmem>>, %arg8: memref<512x3072xbf16, #tpu.memory_space<vmem>>, %arg9: memref<1x3072xf32, #tpu.memory_space<vmem>>, %arg10: memref<2x3072xf32, #tpu.memory_space<vmem>>) attributes {dimension_semantics = [#tpu.dimension_semantics<parallel>], iteration_bounds = array<i64: 1>, scalar_prefetch = 0 : i64, scratch_operands = 0 : i64, tpu.core_type = #tpu.core_type<tc>, window_params = [{transform_indices = @transform_0, window_bounds = array<i64: 2, 10>}, {pipeline_mode = #tpu.pipeline_mode<synchronous>, transform_indices = @transform_1, window_bounds = array<i64: 10, 128>}, {pipeline_mode = #tpu.pipeline_mode<synchronous>, transform_indices = @transform_2, window_bounds = array<i64: 1, 128>}, {pipeline_mode = #tpu.pipeline_mode<synchronous>, transform_indices = @transform_3, window_bounds = array<i64: 128, 128>}, {pipeline_mode = #tpu.pipeline_mode<synchronous>, transform_indices = @transform_4, window_bounds = array<i64: 1, 128>}, {pipeline_mode = #tpu.pipeline_mode<synchronous>, transform_indices = @transform_5, window_bounds = array<i64: 128, 512>}, {pipeline_mode = #tpu.pipeline_mode<synchronous>, transform_indices = @transform_6, window_bounds = array<i64: 1, 512>}, {pipeline_mode = #tpu.pipeline_mode<synchronous>, transform_indices = @transform_7, window_bounds = array<i64: 512, 3072>}, {pipeline_mode = #tpu.pipeline_mode<synchronous>, transform_indices = @transform_8, window_bounds = array<i64: 1, 3072>}, {transform_indices = @transform_9, window_bounds = array<i64: 2, 3072>}]} {
    %c0 = arith.constant 0 : index
    %c0_0 = arith.constant 0 : index
    %0 = vector.load %arg1[%c0, %c0_0] : memref<2x10xf32, #tpu.memory_space<vmem>>, vector<2x10xf32>
    %1 = arith.truncf %0 : vector<2x10xf32> to vector<2x10xbf16>
    %c0_1 = arith.constant 0 : index
    %c0_2 = arith.constant 0 : index
    %2 = vector.load %arg2[%c0_1, %c0_2] : memref<10x128xbf16, #tpu.memory_space<vmem>>, vector<10x128xbf16>
    %cst = arith.constant dense<0.000000e+00> : vector<2x128xf32>
    %3 = tpu.matmul %1, %2, %cst {dimension_numbers = #tpu.dot_dimension_numbers<[1], [0], [0], [1], [0, 0, 1, 1], [], []>} : vector<2x10xbf16>, vector<10x128xbf16>, vector<2x128xf32> -> vector<2x128xf32>
    %c0_3 = arith.constant 0 : index
    %c0_4 = arith.constant 0 : index
    %4 = vector.load %arg3[%c0_3, %c0_4] : memref<1x128xf32, #tpu.memory_space<vmem>>, vector<1x128xf32>
    %5 = vector.broadcast %4 : vector<1x128xf32> to vector<2x128xf32>
    %6 = arith.addf %3, %5 : vector<2x128xf32>
    %cst_5 = arith.constant 0.000000e+00 : f32
    %7 = vector.broadcast %cst_5 : f32 to vector<2x128xf32>
    %8 = arith.maximumf %6, %7 : vector<2x128xf32>
    %9 = arith.truncf %8 : vector<2x128xf32> to vector<2x128xbf16>
    %c0_6 = arith.constant 0 : index
    %c0_7 = arith.constant 0 : index
    %10 = vector.load %arg4[%c0_6, %c0_7] : memref<128x128xbf16, #tpu.memory_space<vmem>>, vector<128x128xbf16>
    %cst_8 = arith.constant dense<0.000000e+00> : vector<2x128xf32>
    %11 = tpu.matmul %9, %10, %cst_8 {dimension_numbers = #tpu.dot_dimension_numbers<[1], [0], [0], [1], [0, 0, 1, 1], [], []>} : vector<2x128xbf16>, vector<128x128xbf16>, vector<2x128xf32> -> vector<2x128xf32>
    %c0_9 = arith.constant 0 : index
    %c0_10 = arith.constant 0 : index
    %12 = vector.load %arg5[%c0_9, %c0_10] : memref<1x128xf32, #tpu.memory_space<vmem>>, vector<1x128xf32>
    %13 = vector.broadcast %12 : vector<1x128xf32> to vector<2x128xf32>
    %14 = arith.addf %11, %13 : vector<2x128xf32>
    %cst_11 = arith.constant 0.000000e+00 : f32
    %15 = vector.broadcast %cst_11 : f32 to vector<2x128xf32>
    %16 = arith.maximumf %14, %15 : vector<2x128xf32>
    %17 = arith.truncf %16 : vector<2x128xf32> to vector<2x128xbf16>
    %c0_12 = arith.constant 0 : index
    %c0_13 = arith.constant 0 : index
    %18 = vector.load %arg6[%c0_12, %c0_13] : memref<128x512xbf16, #tpu.memory_space<vmem>>, vector<128x512xbf16>
    %cst_14 = arith.constant dense<0.000000e+00> : vector<2x512xf32>
    %19 = tpu.matmul %17, %18, %cst_14 {dimension_numbers = #tpu.dot_dimension_numbers<[1], [0], [0], [1], [0, 0, 1, 1], [], []>} : vector<2x128xbf16>, vector<128x512xbf16>, vector<2x512xf32> -> vector<2x512xf32>
    %c0_15 = arith.constant 0 : index
    %c0_16 = arith.constant 0 : index
    %20 = vector.load %arg7[%c0_15, %c0_16] : memref<1x512xf32, #tpu.memory_space<vmem>>, vector<1x512xf32>
    %21 = vector.broadcast %20 : vector<1x512xf32> to vector<2x512xf32>
    %22 = arith.addf %19, %21 : vector<2x512xf32>
    %cst_17 = arith.constant 0.000000e+00 : f32
    %23 = vector.broadcast %cst_17 : f32 to vector<2x512xf32>
    %24 = arith.maximumf %22, %23 : vector<2x512xf32>
    %25 = arith.truncf %24 : vector<2x512xf32> to vector<2x512xbf16>
    %c0_18 = arith.constant 0 : index
    %c0_19 = arith.constant 0 : index
    %26 = vector.load %arg8[%c0_18, %c0_19] : memref<512x3072xbf16, #tpu.memory_space<vmem>>, vector<512x3072xbf16>
    %cst_20 = arith.constant dense<0.000000e+00> : vector<2x3072xf32>
    %27 = tpu.matmul %25, %26, %cst_20 {dimension_numbers = #tpu.dot_dimension_numbers<[1], [0], [0], [1], [0, 0, 1, 1], [], []>} : vector<2x512xbf16>, vector<512x3072xbf16>, vector<2x3072xf32> -> vector<2x3072xf32>
    %c0_21 = arith.constant 0 : index
    %c0_22 = arith.constant 0 : index
    %28 = vector.load %arg9[%c0_21, %c0_22] : memref<1x3072xf32, #tpu.memory_space<vmem>>, vector<1x3072xf32>
    %29 = vector.broadcast %28 : vector<1x3072xf32> to vector<2x3072xf32>
    %30 = arith.addf %27, %29 : vector<2x3072xf32>
    %c0_23 = arith.constant 0 : index
    %c0_24 = arith.constant 0 : index
    %31 = vector.load %arg10[%c0_23, %c0_24] : memref<2x3072xf32, #tpu.memory_space<vmem>>, vector<2x3072xf32>
    tpu.vector_store %arg10[%c0_23, %c0_24], %30 {strides = array<i32>} : memref<2x3072xf32, #tpu.memory_space<vmem>>, vector<2x3072xf32>,
    return
  }
  func.func @transform_0(%arg0: i32) -> (i32, i32) {
    %c0_i32 = arith.constant 0 : i32
    %c0_i32_0 = arith.constant 0 : i32
    return %arg0, %c0_i32 : i32, i32
  }
  func.func @transform_1(%arg0: i32) -> (i32, i32) {
    %c0_i32 = arith.constant 0 : i32
    %c0_i32_0 = arith.constant 0 : i32
    %c0_i32_1 = arith.constant 0 : i32
    return %c0_i32, %c0_i32_0 : i32, i32
  }
  func.func @transform_2(%arg0: i32) -> (i32, i32) {
    %c0_i32 = arith.constant 0 : i32
    %c0_i32_0 = arith.constant 0 : i32
    %c0_i32_1 = arith.constant 0 : i32
    return %c0_i32, %c0_i32_0 : i32, i32
  }
  func.func @transform_3(%arg0: i32) -> (i32, i32) {
    %c0_i32 = arith.constant 0 : i32
    %c0_i32_0 = arith.constant 0 : i32
    %c0_i32_1 = arith.constant 0 : i32
    return %c0_i32, %c0_i32_0 : i32, i32
  }
  func.func @transform_4(%arg0: i32) -> (i32, i32) {
    %c0_i32 = arith.constant 0 : i32
    %c0_i32_0 = arith.constant 0 : i32
    %c0_i32_1 = arith.constant 0 : i32
    return %c0_i32, %c0_i32_0 : i32, i32
  }
  func.func @transform_5(%arg0: i32) -> (i32, i32) {
    %c0_i32 = arith.constant 0 : i32
    %c0_i32_0 = arith.constant 0 : i32
    %c0_i32_1 = arith.constant 0 : i32
    return %c0_i32, %c0_i32_0 : i32, i32
  }
  func.func @transform_6(%arg0: i32) -> (i32, i32) {
    %c0_i32 = arith.constant 0 : i32
    %c0_i32_0 = arith.constant 0 : i32
    %c0_i32_1 = arith.constant 0 : i32
    return %c0_i32, %c0_i32_0 : i32, i32
  }
  func.func @transform_7(%arg0: i32) -> (i32, i32) {
    %c0_i32 = arith.constant 0 : i32
    %c0_i32_0 = arith.constant 0 : i32
    %c0_i32_1 = arith.constant 0 : i32
    return %c0_i32, %c0_i32_0 : i32, i32
  }
  func.func @transform_8(%arg0: i32) -> (i32, i32) {
    %c0_i32 = arith.constant 0 : i32
    %c0_i32_0 = arith.constant 0 : i32
    %c0_i32_1 = arith.constant 0 : i32
    return %c0_i32, %c0_i32_0 : i32, i32
  }
  func.func @transform_9(%arg0: i32) -> (i32, i32) {
    %c0_i32 = arith.constant 0 : i32
    %c0_i32_0 = arith.constant 0 : i32
    return %arg0, %c0_i32 : i32, i32
  }
}

</mosaic_0001>

<bundles_post_ra>
// kernel: image_decoder_forward.1
= control target key start
LH: loop header
LB: loop body
LE: loop exit
PB: predicated region body
PF: predicated region fallthrough
CT: control target
= control target key end

     0   :  { %14 = vsyncpa [#allocation3], 0  ;;  %s11295_s0 = inlined_call_operand.hbm [shape: f32[2,10], index: 0, kind: input, shape index: {}]   ;;  %s11296_s1 = inlined_call_operand.hbm [shape: bf16[10,128], index: 1, kind: input, shape index: {}]   ;;  %s11297_s2 = inlined_call_operand.hbm [shape: f32[1,128], index: 2, kind: input, shape index: {}]   ;;  %s11298_s3 = inlined_call_operand.hbm [shape: bf16[128,128], index: 3, kind: input, shape index: {}]   ;;  %s11299_s4 = inlined_call_operand.hbm [shape: f32[1,128], index: 4, kind: input, shape index: {}]   ;;  %s11300_s5 = inlined_call_operand.hbm [shape: bf16[128,512], index: 5, kind: input, shape index: {}]   ;;  %s11301_s6 = inlined_call_operand.hbm [shape: f32[1,512], index: 6, kind: input, shape index: {}]   ;;  %s11302_s7 = inlined_call_operand.hbm [shape: bf16[512,3072], index: 7, kind: input, shape index: {}]   ;;  %s11303_s8 = inlined_call_operand.hbm [shape: f32[1,3072], index: 8, kind: input, shape index: {}]   ;;  %s11304_s9 = inlined_call_operand.hbm [shape: f32[2,3072], index: 9, kind: output, shape index: {}]  }
   0x1   :  { %15 = vsyncpa [#allocation6], 0 }
   0x2   :  { %16 = vsyncpa [#allocation9], 0 }
   0x3   :  { %17 = vsyncpa [#allocation12], 0 }
   0x4   :  { %18 = vsyncpa [#allocation15], 0  ;;  %s35_s11 = sshll.u32 %s11296_s1, 4  ;;  %s36_s11 = int_to_ptr.hbm [resolvable:$true] %s35_s11 }
   0x5   :  { %19 = vsyncpa [#allocation4], 0  ;;  %s10869_s12 = smov [#allocation5]   ;;  %s59_s16 = sshll.u32 %s11298_s3, 4  ;;  %s60_s16 = int_to_ptr.hbm [resolvable:$true] %s59_s16 }
   0x6   :  { %s37_s13 = sshll.u32 %s10869_s12, 4  ;;  %s10870_s17 = smov 64   ;;  %s38_s13 = int_to_ptr.vmem [resolvable:$true] %s37_s13 }
   0x7   :  { %s10871_s18 = smov 4   ;;  %s10872_s19 = smov [#allocation8]  }
   0x8   :  { %43 = dma.hbm_to_vmem [thread:$0]  %s36_s11, 128, %s38_s13, [#allocation6], %s10870_s17, %s10870_s17, %s10871_s18  }
   0x9   :  { %s61_s20 = sshll.u32 %s10872_s19, 4  ;;  %s83_s23 = sshll.u32 %s11300_s5, 4  ;;  %s62_s20 = int_to_ptr.vmem [resolvable:$true] %s61_s20  ;;  %s84_s23 = int_to_ptr.hbm [resolvable:$true] %s83_s23 }
   0xa   :  { %67 = dma.hbm_to_vmem [thread:$0]  %s60_s16, 1024, %s62_s20, [#allocation9], %s10870_s17, %s10870_s17, %s10871_s18  }
   0xb   :  { %s10873_s1 = smov [#allocation11]   ;;  %s107_s3 = sshll.u32 %s11302_s7, 4  ;;  %s108_s3 = int_to_ptr.hbm [resolvable:$true] %s107_s3 }
   0xc   :  { %s85_s24 = sshll.u32 %s10873_s1, 4  ;;  %s10874_s27 = smov 256   ;;  %s86_s24 = int_to_ptr.vmem [resolvable:$true] %s85_s24 }
   0xd   :  { %s10875_s28 = smov 16   ;;  %s10876_s29 = smov [#allocation14]  }
   0xe   :  { %91 = dma.hbm_to_vmem [thread:$0]  %s84_s23, 4096, %s86_s24, [#allocation12], %s10874_s27, %s10874_s27, %s10875_s28  }
   0xf   :  { %s109_s30 = sshll.u32 %s10876_s29, 4  ;;  %s10877_s10 = smov 1536   ;;  %s110_s30 = int_to_ptr.vmem [resolvable:$true] %s109_s30 }
  0x10   :  { %s10878_s11 = smov 96   ;;  %s25_s13 = sshll.u32 %s11295_s0, 4  ;;  %s26_s13 = int_to_ptr.hbm [resolvable:$true] %s25_s13 }
  0x11   :  { %115 = dma.hbm_to_vmem [thread:$0]  %s108_s3, 98304, %s110_s30, [#allocation15], %s10877_s10, %s10877_s10, %s10878_s11  }
  0x12   :  { %s10879_s14 = smov [#allocation2]   ;;  %s49_s17 = sshll.u32 %s11297_s2, 4  ;;  %s50_s17 = int_to_ptr.hbm [resolvable:$true] %s49_s17 }
  0x13   :  { %s27_s15 = sshll.u32 %s10879_s14, 4  ;;  %s10880_s18 = smov [#allocation7]   ;;  %s28_s15 = int_to_ptr.vmem [resolvable:$true] %s27_s15 }
  0x14   :  { %30 = dma.hbm_to_vmem [thread:$0]  %s26_s13, 32, %s28_s15, [#allocation3]  }
  0x15   :  { %s51_s19 = sshll.u32 %s10880_s18, 4  ;;  %s73_s22 = sshll.u32 %s11299_s4, 4  ;;  %s52_s19 = int_to_ptr.vmem [resolvable:$true] %s51_s19  ;;  %s74_s22 = int_to_ptr.hbm [resolvable:$true] %s73_s22 }
  0x16   :  { %54 = dma.hbm_to_vmem [thread:$0]  %s50_s17, 16, %s52_s19, [#allocation6]  }
  0x17   :  { %s97_s1 = sshll.u32 %s11301_s6, 4  ;;  %s10881_s24 = smov [#allocation10]   ;;  %s98_s1 = int_to_ptr.hbm [resolvable:$true] %s97_s1 }
  0x18   :  { %s75_s25 = sshll.u32 %s10881_s24, 4  ;;  %s10882_s2 = smov [#allocation13]   ;;  %s76_s25 = int_to_ptr.vmem [resolvable:$true] %s75_s25 }
  0x19   :  { %78 = dma.hbm_to_vmem [thread:$0]  %s74_s22, 16, %s76_s25, [#allocation9]  }
  0x1a   :  { %s99_s26 = sshll.u32 %s10882_s2, 4  ;;  %s121_s28 = sshll.u32 %s11303_s8, 4  ;;  %s100_s26 = int_to_ptr.vmem [resolvable:$true] %s99_s26  ;;  %s122_s28 = int_to_ptr.hbm [resolvable:$true] %s121_s28 }
  0x1b   :  { %102 = dma.hbm_to_vmem [thread:$0]  %s98_s1, 64, %s100_s26, [#allocation12]  }
  0x1c   :  { %s10883_s4 = smov [#allocation16]  }
  0x1d   :  { %s123_s29 = sshll.u32 %s10883_s4, 4  ;;  %s124_s29 = int_to_ptr.vmem [resolvable:$true] %s123_s29 }
  0x1e   :  { %126 = dma.hbm_to_vmem [thread:$0]  %s122_s28, 384, %s124_s29, [#allocation15]  }
  0x1f   :  { %10857 = dma.done.wait [#allocation3], 32  }
  0x20   :  { %10858 = vsyncadd [#allocation3], 4294967264 }
  0x21   :  { %10859 = dma.done.wait [#allocation6], 144  }
  0x22   :  { %10860 = vsyncadd [#allocation6], 4294967152 }
  0x23   :  { %10861 = dma.done.wait [#allocation9], 1040  }
  0x24   :  { %10862 = vsyncadd [#allocation9], 4294966256 }
  0x25   :  { %10863 = dma.done.wait [#allocation12], 4160  }
  0x26   :  { %10864 = vsyncadd [#allocation12], 4294963136 }
  0x27   :  { %10865 = dma.done.wait [#allocation15], 98688  }
  0x28   :  { %10866 = vsyncadd [#allocation15], 4294868608  ;;  %vm181_vm0 = vcmask 1044480   ;;  %v6553_v0 = vld [vmem:[#allocation5] sm:$0xf]  ;;  %vm177_vm1 = vcmask 80896  }
  0x29   :  { %v9788_v1 = vld [vmem:[#allocation5] sm:$0x10]  ;;  %v164_v2 = vld [vmem:[#allocation2] sm:$0x3]  ;;  %v9794_v8 = vld [vmem:[#allocation8 + $0x28] sm:$0xff]  ;;  %vm6497_vm2 = vcmask 1041408  }
  0x2a   :  { %v6554_v3 = vor.u32 %v9788_v1, %v6553_v0  ;;  %v9796_v4 = vld [vmem:[#allocation8 + $0x38] sm:$0xff]  ;;  %v165_v6 = vpack.c.bf16 %v164_v2, %v164_v2  ;;  %v9795_v7 = vld [vmem:[#allocation8 + $0x30] sm:$0xff]  ;;  %v9793_v9 = vld [vmem:[#allocation8 + $0x20] sm:$0xff]  ;;  %vm6499_vm3 = vcmask 1045508   ;;  %vm6501_vm4 = vcmask 1043456   ;;  %s10884_s6 = smov [#allocation17]  }
  0x2b   :  { %268 = vmatpush.bf16.msra.mxu1 %v9796_v4  ;;  %v9792_v10 = vld [vmem:[#allocation8 + $0x18] sm:$0xff]  ;;  %v9791_v11 = vld [vmem:[#allocation8 + $0x10] sm:$0xff]  ;;  %v9790_v12 = vld [vmem:[#allocation8 + $0x8] sm:$0xff]  ;;  %s6535_s8 = sshll.u32 %s10884_s6, 4  ;;  %s6537_s11 = sshll.u32 %s11304_s9, 4  ;;  %s6536_s8 = int_to_ptr.vmem [resolvable:$true] %s6535_s8  ;;  %s6538_s11 = int_to_ptr.hbm [resolvable:$true] %s6537_s11 }
  0x2c   :  { %v183_v5 = vsel %vm181_vm0, %v6554_v3, 0  ;;  %v9789_v13 = vld [vmem:[#allocation8] sm:$0xff]  ;;  %v9827_v15 = vld [vmem:[#allocation11 + $0xec] sm:$0xf0]  ;;  %v6704_v18 = vld [vmem:[#allocation11 + $0xf0] sm:$0xf0] }
  0x2d   :  { %192 = vmatpush.bf16.msra.mxu0 %v183_v5  ;;  %v6702_v14 = vld [vmem:[#allocation11 + $0xe0] sm:$0xf]  ;;  %v9825_v16 = vld [vmem:[#allocation11 + $0xe4] sm:$0xf]  ;;  %v6710_v19 = vld [vmem:[#allocation11 + $0xe8] sm:$0xf] }
  0x2e   :  { %v6703_v17 = vor.u32 %v9827_v15, %v6702_v14  ;;  %v9828_v20 = vld [vmem:[#allocation11 + $0xf4] sm:$0xf0]  ;;  %v6707_v21 = vor.u32 %v9825_v16, %v6704_v18  ;;  %v9826_v23 = vld [vmem:[#allocation11 + $0xec] sm:$0xf]  ;;  %v6712_v24 = vld [vmem:[#allocation11 + $0xf8] sm:$0xf0] }
  0x2f   :  { %269 = vmatpush.bf16.msra.mxu1 %v9795_v7  ;;  %v6711_v22 = vor.u32 %v9828_v20, %v6710_v19  ;;  %v6686_v25 = vld [vmem:[#allocation11 + $0xc0] sm:$0xf]  ;;  %v6715_v26 = vor.u32 %v9826_v23, %v6712_v24  ;;  %v9823_v27 = vld [vmem:[#allocation11 + $0xcc] sm:$0xf0]  ;;  %v9821_v28 = vld [vmem:[#allocation11 + $0xc4] sm:$0xf] }
  0x30   :  { %6555 = vmatmul.msk.bf16.vlgmr.msra.gmra.mxu0 %vm177_vm1, %v165_v6  ;;  %485 = vmatpush.bf16.msra.mxu2 %v6703_v17  ;;  %v6688_v29 = vld [vmem:[#allocation11 + $0xd0] sm:$0xf0]  ;;  %v6687_v30 = vor.u32 %v9823_v27, %v6686_v25  ;;  %v6694_v32 = vld [vmem:[#allocation11 + $0xc8] sm:$0xf]  ;;  %v9824_v33 = vld [vmem:[#allocation11 + $0xd4] sm:$0xf0] }
  0x31   :  { %498 = vmatpush.bf16.msra.mxu3 %v6707_v21  ;;  %511 = vmatpush.bf16.msrb.mxu0 %v6711_v22  ;;  %v6691_v31 = vor.u32 %v9821_v28, %v6688_v29  ;;  %v9822_v34 = vld [vmem:[#allocation11 + $0xcc] sm:$0xf]  ;;  %v6695_v35 = vor.u32 %v9824_v33, %v6694_v32  ;;  %v6696_v36 = vld [vmem:[#allocation11 + $0xd8] sm:$0xf0]  ;;  %v6670_v37 = vld [vmem:[#allocation11 + $0xa0] sm:$0xf] }
  0x32   :  { %v9819_v38 = vld [vmem:[#allocation11 + $0xac] sm:$0xf0]  ;;  %v6699_v39 = vor.u32 %v9822_v34, %v6696_v36  ;;  %v9817_v40 = vld [vmem:[#allocation11 + $0xa4] sm:$0xf]  ;;  %v6672_v41 = vld [vmem:[#allocation11 + $0xb0] sm:$0xf0] }
  0x33   :  { %270 = vmatpush.bf16.msra.mxu1 %v9794_v8  ;;  %v6678_v42 = vld [vmem:[#allocation11 + $0xa8] sm:$0xf]  ;;  %v6671_v43 = vor.u32 %v9819_v38, %v6670_v37  ;;  %v9820_v44 = vld [vmem:[#allocation11 + $0xb4] sm:$0xf0]  ;;  %v9818_v45 = vld [vmem:[#allocation11 + $0xac] sm:$0xf]  ;;  %v6675_v47 = vor.u32 %v9817_v40, %v6672_v41 }
  0x34   :  { %486 = vmatpush.bf16.msra.mxu2 %v6687_v30  ;;  %v6680_v46 = vld [vmem:[#allocation11 + $0xb8] sm:$0xf0]  ;;  %v6679_v48 = vor.u32 %v9820_v44, %v6678_v42  ;;  %v6654_v49 = vld [vmem:[#allocation11 + $0x80] sm:$0xf]  ;;  %v9815_v50 = vld [vmem:[#allocation11 + $0x8c] sm:$0xf0] }
  0x35   :  { %499 = vmatpush.bf16.msra.mxu3 %v6691_v31  ;;  %512 = vmatpush.bf16.msrb.mxu0 %v6695_v35  ;;  %v9813_v51 = vld [vmem:[#allocation11 + $0x84] sm:$0xf]  ;;  %v6683_v52 = vor.u32 %v9818_v45, %v6680_v46  ;;  %v6656_v53 = vld [vmem:[#allocation11 + $0x90] sm:$0xf0]  ;;  %v6662_v54 = vld [vmem:[#allocation11 + $0x88] sm:$0xf]  ;;  %v6655_v58 = vor.u32 %v9815_v50, %v6654_v49 }
  0x36   :  { %v9816_v55 = vld [vmem:[#allocation11 + $0x94] sm:$0xf0]  ;;  %v9814_v56 = vld [vmem:[#allocation11 + $0x8c] sm:$0xf]  ;;  %v6664_v57 = vld [vmem:[#allocation11 + $0x98] sm:$0xf0]  ;;  %v6659_v59 = vor.u32 %v9813_v51, %v6656_v53 }
  0x37   :  { %271 = vmatpush.bf16.msra.mxu1 %v9793_v9  ;;  %v6663_v60 = vor.u32 %v9816_v55, %v6662_v54  ;;  %v6638_v61 = vld [vmem:[#allocation11 + $0x60] sm:$0xf]  ;;  %v9811_v62 = vld [vmem:[#allocation11 + $0x6c] sm:$0xf0]  ;;  %v9809_v63 = vld [vmem:[#allocation11 + $0x64] sm:$0xf]  ;;  %v6667_v0 = vor.u32 %v9814_v56, %v6664_v57 }
  0x38   :  { %487 = vmatpush.bf16.msra.mxu2 %v6671_v43  ;;  %v6640_v1 = vld [vmem:[#allocation11 + $0x70] sm:$0xf0]  ;;  %v6646_v2 = vld [vmem:[#allocation11 + $0x68] sm:$0xf]  ;;  %v9812_v3 = vld [vmem:[#allocation11 + $0x74] sm:$0xf0]  ;;  %v6639_v6 = vor.u32 %v9811_v62, %v6638_v61 }
  0x39   :  { %500 = vmatpush.bf16.msra.mxu3 %v6675_v47  ;;  %513 = vmatpush.bf16.msrb.mxu0 %v6679_v48  ;;  %v9810_v4 = vld [vmem:[#allocation11 + $0x6c] sm:$0xf]  ;;  %v6648_v5 = vld [vmem:[#allocation11 + $0x78] sm:$0xf0]  ;;  %v6643_v7 = vor.u32 %v9809_v63, %v6640_v1  ;;  %v6647_v8 = vor.u32 %v9812_v3, %v6646_v2  ;;  %v6622_v9 = vld [vmem:[#allocation11 + $0x40] sm:$0xf] }
  0x3a   :  { %v6630_v14 = vld [vmem:[#allocation11 + $0x48] sm:$0xf]  ;;  %v9808_v15 = vld [vmem:[#allocation11 + $0x54] sm:$0xf0]  ;;  %v9806_v16 = vld [vmem:[#allocation11 + $0x4c] sm:$0xf] }
  0x3b   :  { %272 = vmatpush.bf16.msra.mxu1 %v9792_v10  ;;  %v9807_v10 = vld [vmem:[#allocation11 + $0x4c] sm:$0xf0]  ;;  %v6632_v17 = vld [vmem:[#allocation11 + $0x58] sm:$0xf0]  ;;  %v6631_v20 = vor.u32 %v9808_v15, %v6630_v14  ;;  %v6606_v28 = vld [vmem:[#allocation11 + $0x20] sm:$0xf] }
  0x3c   :  { %488 = vmatpush.bf16.msra.mxu2 %v6655_v58  ;;  %v6623_v18 = vor.u32 %v9807_v10, %v6622_v9  ;;  %v10613_v21 = vld [vmem:[#allocation7] ss:$0 sm:$0xff]  ;;  %v6635_v22 = vor.u32 %v9806_v16, %v6632_v17  ;;  %v9803_v29 = vld [vmem:[#allocation11 + $0x2c] sm:$0xf0]  ;;  %v9801_v30 = vld [vmem:[#allocation11 + $0x24] sm:$0xf] }
  0x3d   :  { %501 = vmatpush.bf16.msra.mxu3 %v6659_v59  ;;  %514 = vmatpush.bf16.msrb.mxu0 %v6663_v60  ;;  %v6607_v31 = vor.u32 %v9803_v29, %v6606_v28  ;;  %v6608_v32 = vld [vmem:[#allocation11 + $0x30] sm:$0xf0]  ;;  %v6614_v33 = vld [vmem:[#allocation11 + $0x28] sm:$0xf]  ;;  %v9804_v34 = vld [vmem:[#allocation11 + $0x34] sm:$0xf0] }
  0x3e   :  { %v6611_v35 = vor.u32 %v9801_v30, %v6608_v32  ;;  %v6615_v36 = vor.u32 %v9804_v34, %v6614_v33  ;;  %v9802_v37 = vld [vmem:[#allocation11 + $0x2c] sm:$0xf]  ;;  %v6616_v38 = vld [vmem:[#allocation11 + $0x38] sm:$0xf0]  ;;  %v6590_v40 = vld [vmem:[#allocation11] sm:$0xf] }
  0x3f   :  { %273 = vmatpush.bf16.msra.mxu1 %v9791_v11  ;;  %v9805_v11 = vld [vmem:[#allocation11 + $0x44] sm:$0xf]  ;;  %v9799_v41 = vld [vmem:[#allocation11 + $0xc] sm:$0xf0]  ;;  %v6592_v44 = vld [vmem:[#allocation11 + $0x10] sm:$0xf0] }
  0x40   :  { %489 = vmatpush.bf16.msra.mxu2 %v6639_v6  ;;  %v9797_v42 = vld [vmem:[#allocation11 + $0x4] sm:$0xf]  ;;  %v6591_v43 = vor.u32 %v9799_v41, %v6590_v40  ;;  %v6598_v45 = vld [vmem:[#allocation11 + $0x8] sm:$0xf]  ;;  %v9800_v46 = vld [vmem:[#allocation11 + $0x14] sm:$0xf0] }
  0x41   :  { %502 = vmatpush.bf16.msra.mxu3 %v6643_v7  ;;  %515 = vmatpush.bf16.msrb.mxu0 %v6647_v8  ;;  %v6595_v47 = vor.u32 %v9797_v42, %v6592_v44  ;;  %v6599_v48 = vor.u32 %v9800_v46, %v6598_v45  ;;  %v9798_v49 = vld [vmem:[#allocation11 + $0xc] sm:$0xf]  ;;  %v6600_v50 = vld [vmem:[#allocation11 + $0x18] sm:$0xf0]  ;;  %v10393_v53 = vld [vmem:[#allocation14 + $0x119c] sm:$0xf0] }
  0x42   :  { %v6603_v51 = vor.u32 %v9798_v49, %v6600_v50  ;;  %v9694_v54 = vld [vmem:[#allocation14 + $0x1740] sm:$0xf] }
  0x43   :  { %274 = vmatpush.bf16.msra.mxu1 %v9790_v12  ;;  %v6651_v12 = vor.u32 %v9810_v4, %v6648_v5  ;;  %v10585_v56 = vld [vmem:[#allocation14 + $0x179c] sm:$0xf0] }
  0x44   :  { %490 = vmatpush.bf16.msra.mxu2 %v6623_v18  ;;  %v8830_v57 = vld [vmem:[#allocation14 + $0x1080] sm:$0xf]  ;;  %v9695_v59 = vor.u32 %v10585_v56, %v9694_v54 }
  0x45   :  { %516 = vmatpush.bf16.msrb.mxu0 %v6631_v20  ;;  %v10369_v58 = vld [vmem:[#allocation14 + $0x10dc] sm:$0xf0] }
  0x46   :  { %v9598_v60 = vld [vmem:[#allocation14 + $0x1680] sm:$0xf]  ;;  %v8831_v63 = vor.u32 %v10369_v58, %v8830_v57 }
  0x47   :  { %275 = vmatpush.bf16.msra.mxu1 %v9789_v13  ;;  %v6624_v13 = vld [vmem:[#allocation11 + $0x50] sm:$0xf0]  ;;  %v10561_v61 = vld [vmem:[#allocation14 + $0x16dc] sm:$0xf0] }
  0x48   :  { %v6627_v19 = vor.u32 %v9805_v11, %v6624_v13  ;;  %491 = vmatpush.bf16.msra.mxu2 %v6607_v31  ;;  %v7390_v62 = vld [vmem:[#allocation14 + $0x540] sm:$0xf]  ;;  %v9599_v3 = vor.u32 %v10561_v61, %v9598_v60  ;;  %v10614_v60 = vld [vmem:[#allocation10] ss:$0 sm:$0xff] }
  0x49   :  { %517 = vmatpush.bf16.msrb.mxu0 %v6615_v36  ;;  %v8158_v1 = vld [vmem:[#allocation14 + $0xb40] sm:$0xf] }
  0x4a   :  { %503 = vmatpush.bf16.msra.mxu3 %v6627_v19  ;;  %v10201_v2 = vld [vmem:[#allocation14 + $0xb9c] sm:$0xf0] }
  0x4b   :  { %524 = vmatpush.bf16.msrb.mxu1 %v6715_v26  ;;  %v8159_v5 = vor.u32 %v10201_v2, %v8158_v1  ;;  %v8734_v6 = vld [vmem:[#allocation14 + $0xfc0] sm:$0xf] }
  0x4c   :  { %492 = vmatpush.bf16.msra.mxu2 %v6591_v43  ;;  %v10345_v7 = vld [vmem:[#allocation14 + $0x101c] sm:$0xf0] }
  0x4d   :  { %518 = vmatpush.bf16.msrb.mxu0 %v6599_v48  ;;  %v9502_v8 = vld [vmem:[#allocation14 + $0x15c0] sm:$0xf]  ;;  %v8735_v15 = vor.u32 %v10345_v7, %v8734_v6 }
  0x4e   :  { %504 = vmatpush.bf16.msra.mxu3 %v6611_v35  ;;  %v10537_v9 = vld [vmem:[#allocation14 + $0x161c] sm:$0xf0] }
  0x4f   :  { %525 = vmatpush.bf16.msrb.mxu1 %v6699_v39  ;;  %v6619_v39 = vor.u32 %v9802_v37, %v6616_v38  ;;  %v7294_v10 = vld [vmem:[#allocation14 + $0x480] sm:$0xf]  ;;  %v9503_v19 = vor.u32 %v10537_v9, %v9502_v8 }
  0x50   :  { %v9985_v11 = vld [vmem:[#allocation14 + $0x4dc] sm:$0xf0] }
  0x51   :  { %v8062_v13 = vld [vmem:[#allocation14 + $0xa80] sm:$0xf] }
  0x52   :  { %505 = vmatpush.bf16.msra.mxu3 %v6595_v47  ;;  %v10177_v14 = vld [vmem:[#allocation14 + $0xadc] sm:$0xf0] }
  0x53   :  { %526 = vmatpush.bf16.msrb.mxu1 %v6683_v52  ;;  %v8926_v52 = vld [vmem:[#allocation14 + $0x1140] sm:$0xf]  ;;  %v8063_v16 = vor.u32 %v10177_v14, %v8062_v13  ;;  %v10381_v13 = vld [vmem:[#allocation14 + $0x1144] sm:$0xf] }
  0x54   :  { %v8927_v55 = vor.u32 %v10393_v53, %v8926_v52  ;;  %v8638_v17 = vld [vmem:[#allocation14 + $0xf00] sm:$0xf]  ;;  %v8928_v14 = vld [vmem:[#allocation14 + $0x11a0] sm:$0xf0] }
  0x55   :  { %v10321_v18 = vld [vmem:[#allocation14 + $0xf5c] sm:$0xf0] }
  0x56   :  { %5233 = vmatpush.bf16.msra.mxu0 %v8927_v55  ;;  %5220 = vmatpush.bf16.msrb.mxu3 %v8159_v5  ;;  %v7198_v20 = vld [vmem:[#allocation14 + $0x3c0] sm:$0xf]  ;;  %v8639_v29 = vor.u32 %v10321_v18, %v8638_v17 }
  0x57   :  { %527 = vmatpush.bf16.msrb.mxu1 %v6667_v0  ;;  %v10009_v0 = vld [vmem:[#allocation14 + $0x59c] sm:$0xf0] }
  0x58   :  { %v7391_v4 = vor.u32 %v10009_v0, %v7390_v62  ;;  %v7102_v28 = vld [vmem:[#allocation14 + $0x300] sm:$0xf] }
  0x59   :  { %v9937_v30 = vld [vmem:[#allocation14 + $0x35c] sm:$0xf0] }
  0x5a   :  { %5207 = vmatpush.bf16.msrb.mxu2 %v7391_v4  ;;  %5234 = vmatpush.bf16.msra.mxu0 %v8831_v63  ;;  %v7870_v31 = vld [vmem:[#allocation14 + $0x900] sm:$0xf]  ;;  %v7103_v38 = vor.u32 %v9937_v30, %v7102_v28  ;;  %v7392_v28 = vld [vmem:[#allocation14 + $0x5a0] sm:$0xf0] }
  0x5b   :  { %528 = vmatpush.bf16.msrb.mxu1 %v6651_v12  ;;  %v7295_v12 = vor.u32 %v9985_v11, %v7294_v10  ;;  %5221 = vmatpush.bf16.msrb.mxu3 %v8063_v16  ;;  %v10129_v32 = vld [vmem:[#allocation14 + $0x95c] sm:$0xf0]  ;;  %v9696_v16 = vld [vmem:[#allocation14 + $0x17a0] sm:$0xf0] }
  0x5c   :  { %v8542_v34 = vld [vmem:[#allocation14 + $0xe40] sm:$0xf]  ;;  %v8160_v30 = vld [vmem:[#allocation14 + $0xba0] sm:$0xf0] }
  0x5d   :  { %v10297_v35 = vld [vmem:[#allocation14 + $0xe9c] sm:$0xf0] }
  0x5e   :  { %5208 = vmatpush.bf16.msrb.mxu2 %v7295_v12  ;;  %5235 = vmatpush.bf16.msra.mxu0 %v8735_v15  ;;  %v9310_v36 = vld [vmem:[#allocation14 + $0x1440] sm:$0xf]  ;;  %v8543_v41 = vor.u32 %v10297_v35, %v8542_v34  ;;  %v10573_v15 = vld [vmem:[#allocation14 + $0x1744] sm:$0xf] }
  0x5f   :  { %529 = vmatpush.bf16.msrb.mxu1 %v6635_v22  ;;  %v7966_v22 = vld [vmem:[#allocation14 + $0x9c0] sm:$0xf]  ;;  %v8832_v34 = vld [vmem:[#allocation14 + $0x10e0] sm:$0xf0] }
  0x60   :  { %v10489_v37 = vld [vmem:[#allocation14 + $0x149c] sm:$0xf0]  ;;  %v10549_v35 = vld [vmem:[#allocation14 + $0x1684] sm:$0xf] }
  0x61   :  { %v7006_v40 = vld [vmem:[#allocation14 + $0x240] sm:$0xf]  ;;  %v9311_v45 = vor.u32 %v10489_v37, %v9310_v36  ;;  %v9600_v36 = vld [vmem:[#allocation14 + $0x16e0] sm:$0xf0] }
  0x62   :  { %5236 = vmatpush.bf16.msra.mxu0 %v8639_v29  ;;  %v9913_v42 = vld [vmem:[#allocation14 + $0x29c] sm:$0xf0]  ;;  %v10189_v29 = vld [vmem:[#allocation14 + $0xb44] sm:$0xf] }
  0x63   :  { %530 = vmatpush.bf16.msrb.mxu1 %v6619_v39  ;;  %v7871_v39 = vor.u32 %v10129_v32, %v7870_v31  ;;  %v7774_v43 = vld [vmem:[#allocation14 + $0x840] sm:$0xf]  ;;  %v7007_v50 = vor.u32 %v9913_v42, %v7006_v40  ;;  %v8931_v31 = vor.u32 %v10381_v13, %v8928_v14  ;;  %v9699_v32 = vor.u32 %v10573_v15, %v9696_v16  ;;  %v9973_v42 = vld [vmem:[#allocation14 + $0x484] sm:$0xf] }
  0x64   :  { %v10105_v44 = vld [vmem:[#allocation14 + $0x89c] sm:$0xf0]  ;;  %v10261_v16 = vld [vmem:[#allocation14 + $0xd84] sm:$0xf] }
  0x65   :  { %v8446_v46 = vld [vmem:[#allocation14 + $0xd80] sm:$0xf] }
  0x66   :  { %v10273_v47 = vld [vmem:[#allocation14 + $0xddc] sm:$0xf0]  ;;  %5237 = vmatpush.bf16.msra.mxu0 %v8543_v41  ;;  %v8163_v41 = vor.u32 %v10189_v29, %v8160_v30  ;;  %v8352_v29 = vld [vmem:[#allocation14 + $0xd20] sm:$0xf0] }
  0x67   :  { %531 = vmatpush.bf16.msrb.mxu1 %v6603_v51  ;;  %v9214_v48 = vld [vmem:[#allocation14 + $0x1380] sm:$0xf]  ;;  %v7775_v51 = vor.u32 %v10105_v44, %v7774_v43  ;;  %v8447_v53 = vor.u32 %v10273_v47, %v8446_v46  ;;  %v7296_v43 = vld [vmem:[#allocation14 + $0x4e0] sm:$0xf0]  ;;  %v9603_v47 = vor.u32 %v10549_v35, %v9600_v36 }
  0x68   :  { %v10465_v49 = vld [vmem:[#allocation14 + $0x13dc] sm:$0xf0]  ;;  %v10165_v44 = vld [vmem:[#allocation14 + $0xa84] sm:$0xf] }
  0x69   :  { %v6910_v52 = vld [vmem:[#allocation14 + $0x180] sm:$0xf]  ;;  %v9215_v57 = vor.u32 %v10465_v49, %v9214_v48  ;;  %v10333_v48 = vld [vmem:[#allocation14 + $0xfc4] sm:$0xf] }
  0x6a   :  { %v9889_v54 = vld [vmem:[#allocation14 + $0x1dc] sm:$0xf0]  ;;  %5238 = vmatpush.bf16.msra.mxu0 %v8447_v53  ;;  %v8736_v49 = vld [vmem:[#allocation14 + $0x1020] sm:$0xf0] }
  0x6b   :  { %v7678_v55 = vld [vmem:[#allocation14 + $0x780] sm:$0xf]  ;;  %v6911_v63 = vor.u32 %v9889_v54, %v6910_v52  ;;  %v7299_v52 = vor.u32 %v9973_v42, %v7296_v43  ;;  %v9949_v54 = vld [vmem:[#allocation14 + $0x3c4] sm:$0xf] }
  0x6c   :  { %v10081_v56 = vld [vmem:[#allocation14 + $0x7dc] sm:$0xf0]  ;;  %v6912_v35 = vld [vmem:[#allocation14 + $0x1e0] sm:$0xf0] }
  0x6d   :  { %v8350_v58 = vld [vmem:[#allocation14 + $0xcc0] sm:$0xf]  ;;  %v7679_v0 = vor.u32 %v10081_v56, %v7678_v55  ;;  %v7200_v55 = vld [vmem:[#allocation14 + $0x420] sm:$0xf0] }
  0x6e   :  { %v9118_v61 = vld [vmem:[#allocation14 + $0x12c0] sm:$0xf]  ;;  %v10141_v56 = vld [vmem:[#allocation14 + $0x9c4] sm:$0xf] }
  0x6f   :  { %v10441_v62 = vld [vmem:[#allocation14 + $0x131c] sm:$0xf0]  ;;  %v10069_v36 = vld [vmem:[#allocation14 + $0x784] sm:$0xf] }
  0x70   :  { %v6814_v1 = vld [vmem:[#allocation14 + $0xc0] sm:$0xf]  ;;  %v9119_v7 = vor.u32 %v10441_v62, %v9118_v61  ;;  %v8640_v61 = vld [vmem:[#allocation14 + $0xf60] sm:$0xf0] }
  0x71   :  { %v7582_v4 = vld [vmem:[#allocation14 + $0x6c0] sm:$0xf]  ;;  %v10501_v62 = vld [vmem:[#allocation14 + $0x1504] sm:$0xf] }
  0x72   :  { %v10057_v5 = vld [vmem:[#allocation14 + $0x71c] sm:$0xf0]  ;;  %v10405_v42 = vld [vmem:[#allocation14 + $0x1204] sm:$0xf] }
  0x73   :  { %v8254_v8 = vld [vmem:[#allocation14 + $0xc00] sm:$0xf]  ;;  %v7583_v18 = vor.u32 %v10057_v5, %v7582_v4  ;;  %v10117_v4 = vld [vmem:[#allocation14 + $0x904] sm:$0xf] }
  0x74   :  { %v10225_v9 = vld [vmem:[#allocation14 + $0xc5c] sm:$0xf0]  ;;  %v7872_v5 = vld [vmem:[#allocation14 + $0x960] sm:$0xf0] }
  0x75   :  { %v9022_v11 = vld [vmem:[#allocation14 + $0x1200] sm:$0xf]  ;;  %v7875_v13 = vor.u32 %v10117_v4, %v7872_v5  ;;  %v10586_v4 = vld [vmem:[#allocation14 + $0x17a4] sm:$0xf0] }
  0x76   :  { %v10417_v12 = vld [vmem:[#allocation14 + $0x125c] sm:$0xf0] }
  0xad   :  { %v194_v23 = vpop.f32.mrf.mxu0 }
  0xae   :  { %v195_v24 = vadd.f32 %v10613_v21, %v194_v23  ;;  %v9961_v21 = vld [vmem:[#allocation14 + $0x41c] sm:$0xf0] }
  0xaf   :  { %v9406_v23 = vld [vmem:[#allocation14 + $0x1500] sm:$0xf] }
  0xb0   :  { %v198_v25 = vmax.f32 %v195_v24, 0.0  ;;  %v10513_v24 = vld [vmem:[#allocation14 + $0x155c] sm:$0xf0] }
  0xb1   :  { %v9407_v33 = vor.u32 %v10513_v24, %v9406_v23  ;;  %v10033_v23 = vld [vmem:[#allocation14 + $0x65c] sm:$0xf0]  ;;  %v9997_v24 = vld [vmem:[#allocation14 + $0x544] sm:$0xf] }
  0xb2   :  { %v199_v26 = vpack.c.bf16 %v198_v25, %v198_v25  ;;  %v10153_v25 = vld [vmem:[#allocation14 + $0xa1c] sm:$0xf0]  ;;  %v7395_v40 = vor.u32 %v9997_v24, %v7392_v28  ;;  %v10093_v24 = vld [vmem:[#allocation14 + $0x844] sm:$0xf] }
  0xb3   :  { %v10237_v28 = vld [vmem:[#allocation14 + $0xcc4] sm:$0xf] }
  0xb4   :  { %276 = vmatmul.bf16.vlgmr.msra.gmra.mxu1 %v199_v26  ;;  %v7199_v26 = vor.u32 %v9961_v21, %v7198_v20  ;;  %v6718_v20 = vld [vmem:[#allocation14] sm:$0xf]  ;;  %v8355_v30 = vor.u32 %v10237_v28, %v8352_v29 }
  0xb5   :  { %v196_v27 = vpop.f32.mrf.mxu0  ;;  %5246 = vmatpush.bf16.msra.mxu1 %v9695_v59  ;;  %v10249_v59 = vld [vmem:[#allocation14 + $0xd1c] sm:$0xf0] }
  0xb6   :  { %v7967_v27 = vor.u32 %v10153_v25, %v7966_v22  ;;  %5209 = vmatpush.bf16.msrb.mxu2 %v7199_v26  ;;  %v8351_v2 = vor.u32 %v10249_v59, %v8350_v58  ;;  %v9841_v21 = vld [vmem:[#allocation14 + $0x5c] sm:$0xf0]  ;;  %v8255_v26 = vor.u32 %v10225_v9, %v8254_v8  ;;  %v8739_v58 = vor.u32 %v10333_v48, %v8736_v49  ;;  %v10285_v8 = vld [vmem:[#allocation14 + $0xe44] sm:$0xf] }
  0xb7   :  { %v7486_v22 = vld [vmem:[#allocation14 + $0x600] sm:$0xf]  ;;  %v6719_v37 = vor.u32 %v9841_v21, %v6718_v20  ;;  %v8544_v9 = vld [vmem:[#allocation14 + $0xea0] sm:$0xf0] }
  0xb8   :  { %5222 = vmatpush.bf16.msrb.mxu3 %v7967_v27  ;;  %5239 = vmatpush.bf16.msra.mxu0 %v8351_v2  ;;  %v9023_v27 = vor.u32 %v10417_v12, %v9022_v11  ;;  %v9925_v2 = vld [vmem:[#allocation14 + $0x304] sm:$0xf]  ;;  %v8547_v14 = vor.u32 %v10285_v8, %v8544_v9 }
  0xb9   :  { %5247 = vmatpush.bf16.msra.mxu1 %v9599_v3  ;;  %v9865_v3 = vld [vmem:[#allocation14 + $0x11c] sm:$0xf0]  ;;  %v9312_v11 = vld [vmem:[#allocation14 + $0x14a0] sm:$0xf0] }
  0xba   :  { %5210 = vmatpush.bf16.msrb.mxu2 %v7103_v38  ;;  %v6815_v17 = vor.u32 %v9865_v3, %v6814_v1  ;;  %v7487_v38 = vor.u32 %v10033_v23, %v7486_v22  ;;  %v7104_v3 = vld [vmem:[#allocation14 + $0x360] sm:$0xf0] }
  0xbb   :  { %v7107_v12 = vor.u32 %v9925_v2, %v7104_v3  ;;  %v9901_v22 = vld [vmem:[#allocation14 + $0x244] sm:$0xf]  ;;  %v10394_v2 = vld [vmem:[#allocation14 + $0x11a4] sm:$0xf0] }
  0xbc   :  { %5223 = vmatpush.bf16.msrb.mxu3 %v7871_v39  ;;  %5240 = vmatpush.bf16.msra.mxu0 %v8255_v26  ;;  %v7008_v23 = vld [vmem:[#allocation14 + $0x2a0] sm:$0xf0]  ;;  %v9702_v3 = vld [vmem:[#allocation14 + $0x1748] sm:$0xf] }
  0xbd   :  { %5248 = vmatpush.bf16.msra.mxu1 %v9503_v19  ;;  %v7776_v26 = vld [vmem:[#allocation14 + $0x8a0] sm:$0xf0] }
  0xbe   :  { %5211 = vmatpush.bf16.msrb.mxu2 %v7007_v50  ;;  %v10525_v50 = vld [vmem:[#allocation14 + $0x15c4] sm:$0xf] }
  0xbf   :  { %v10045_v48 = vld [vmem:[#allocation14 + $0x6c4] sm:$0xf] }
  0xc0   :  { %5224 = vmatpush.bf16.msrb.mxu3 %v7775_v51  ;;  %v9504_v51 = vld [vmem:[#allocation14 + $0x1620] sm:$0xf0] }
  0xc1   :  { %5249 = vmatpush.bf16.msra.mxu1 %v9407_v33  ;;  %v10357_v33 = vld [vmem:[#allocation14 + $0x1084] sm:$0xf]  ;;  %v9507_v59 = vor.u32 %v10525_v50, %v9504_v51 }
  0xc2   :  { %5212 = vmatpush.bf16.msrb.mxu2 %v6911_v63  ;;  %v8835_v46 = vor.u32 %v10357_v33, %v8832_v34  ;;  %v9408_v63 = vld [vmem:[#allocation14 + $0x1560] sm:$0xf0] }
  0xc3   :  { %v9877_v34 = vld [vmem:[#allocation14 + $0x184] sm:$0xf] }
  0xc4   :  { %5225 = vmatpush.bf16.msrb.mxu3 %v7679_v0  ;;  %v7203_v0 = vor.u32 %v9949_v54, %v7200_v55  ;;  %v7584_v50 = vld [vmem:[#allocation14 + $0x720] sm:$0xf0] }
  0xc5   :  { %5250 = vmatpush.bf16.msra.mxu1 %v9311_v45  ;;  %v8064_v45 = vld [vmem:[#allocation14 + $0xae0] sm:$0xf0]  ;;  %v7587_v51 = vor.u32 %v10045_v48, %v7584_v50  ;;  %v10322_v48 = vld [vmem:[#allocation14 + $0xf64] sm:$0xf0] }
  0xc6   :  { %5213 = vmatpush.bf16.msrb.mxu2 %v6815_v17  ;;  %v8067_v53 = vor.u32 %v10165_v44, %v8064_v45  ;;  %v8448_v17 = vld [vmem:[#allocation14 + $0xde0] sm:$0xf0]  ;;  %v10514_v50 = vld [vmem:[#allocation14 + $0x1564] sm:$0xf0] }
  0xc7   :  { %v8451_v20 = vor.u32 %v10261_v16, %v8448_v17  ;;  %v9024_v44 = vld [vmem:[#allocation14 + $0x1260] sm:$0xf0]  ;;  %v10370_v16 = vld [vmem:[#allocation14 + $0x10e4] sm:$0xf0] }
  0xc8   :  { %5226 = vmatpush.bf16.msrb.mxu3 %v7583_v18  ;;  %v10453_v18 = vld [vmem:[#allocation14 + $0x1384] sm:$0xf]  ;;  %v9027_v45 = vor.u32 %v10405_v42, %v9024_v44  ;;  %v9606_v17 = vld [vmem:[#allocation14 + $0x1688] sm:$0xf] }
  0xc9   :  { %5251 = vmatpush.bf16.msra.mxu1 %v9215_v57  ;;  %v7968_v57 = vld [vmem:[#allocation14 + $0xa20] sm:$0xf0]  ;;  %v10178_v42 = vld [vmem:[#allocation14 + $0xae4] sm:$0xf0] }
  0xca   :  { %5214 = vmatpush.bf16.msrb.mxu2 %v6719_v37  ;;  %v7971_v1 = vor.u32 %v10141_v56, %v7968_v57  ;;  %v6915_v37 = vor.u32 %v9877_v34, %v6912_v35  ;;  %v10021_v55 = vld [vmem:[#allocation14 + $0x604] sm:$0xf]  ;;  %v10538_v34 = vld [vmem:[#allocation14 + $0x1624] sm:$0xf0] }
  0xcb   :  { %v7488_v56 = vld [vmem:[#allocation14 + $0x660] sm:$0xf0] }
  0xcc   :  { %5227 = vmatpush.bf16.msrb.mxu3 %v7487_v38  ;;  %v7680_v38 = vld [vmem:[#allocation14 + $0x7e0] sm:$0xf0]  ;;  %v7491_v57 = vor.u32 %v10021_v55, %v7488_v56  ;;  %v7974_v55 = vld [vmem:[#allocation14 + $0x9c8] sm:$0xf] }
  0xcd   :  { %5252 = vmatpush.bf16.msra.mxu1 %v9119_v7  ;;  %v9411_v7 = vor.u32 %v10501_v62, %v9408_v63  ;;  %v8934_v63 = vld [vmem:[#allocation14 + $0x1148] sm:$0xf] }
  0xce   :  { %v8935_v9 = vor.u32 %v10394_v2, %v8934_v63  ;;  %v10154_v56 = vld [vmem:[#allocation14 + $0xa24] sm:$0xf0] }
  0xcf   :  { %v9938_v2 = vld [vmem:[#allocation14 + $0x364] sm:$0xf0] }
  0xd1   :  { %5253 = vmatpush.bf16.msra.mxu1 %v9023_v27  ;;  %v7779_v27 = vor.u32 %v10093_v24, %v7776_v26  ;;  %v10202_v24 = vld [vmem:[#allocation14 + $0xba4] sm:$0xf0] }
 0x131   :  { %v277_v6 = vpop.f32.mrf.mxu1 }
 0x132   :  { %v278_v10 = vadd.f32 %v10614_v60, %v277_v6  ;;  %v10309_v60 = vld [vmem:[#allocation14 + $0xf04] sm:$0xf] }
 0x133   :  { %v8643_v6 = vor.u32 %v10309_v60, %v8640_v61 }
 0x134   :  { %v281_v19 = vmax.f32 %v278_v10, 0.0  ;;  %v10477_v10 = vld [vmem:[#allocation14 + $0x1444] sm:$0xf] }
 0x135   :  { %v9315_v15 = vor.u32 %v10477_v10, %v9312_v11  ;;  %v9703_v10 = vor.u32 %v10586_v4, %v9702_v3  ;;  %v8838_v11 = vld [vmem:[#allocation14 + $0x1088] sm:$0xf] }
 0x136   :  { %v282_v25 = vpack.c.bf16 %v281_v19, %v281_v19  ;;  %v9216_v19 = vld [vmem:[#allocation14 + $0x13e0] sm:$0xf0]  ;;  %v8839_v29 = vor.u32 %v10370_v16, %v8838_v11  ;;  %v7878_v3 = vld [vmem:[#allocation14 + $0x908] sm:$0xf] }
 0x137   :  { %v9219_v21 = vor.u32 %v10453_v18, %v9216_v19  ;;  %v10562_v18 = vld [vmem:[#allocation14 + $0x16e4] sm:$0xf0] }
 0x138   :  { %493 = vmatmul.bf16.vlgmr.msra.gmra.mxu2 %v282_v25  ;;  %506 = vmatmul.bf16.vlgmr.msra.gmra.mxu3 %v282_v25  ;;  %v10130_v4 = vld [vmem:[#allocation14 + $0x964] sm:$0xf0] }
 0x139   :  { %519 = vmatmul.bf16.vlgmr.msrb.gmra.mxu0 %v282_v25  ;;  %532 = vmatmul.bf16.vlgmr.msrb.gmra.mxu1 %v282_v25  ;;  %v279_v39 = vpop.f32.mrf.mxu1  ;;  %v7011_v25 = vor.u32 %v9901_v22, %v7008_v23  ;;  %v10010_v22 = vld [vmem:[#allocation14 + $0x5a4] sm:$0xf0] }
 0x13a   :  { %5285 = vmatpush.bf16.msrb.mxu0 %v8931_v31  ;;  %5298 = vmatpush.bf16.msrb.mxu1 %v9699_v32  ;;  %v10429_v31 = vld [vmem:[#allocation14 + $0x12c4] sm:$0xf]  ;;  %v7683_v39 = vor.u32 %v10069_v36, %v7680_v38  ;;  %v8166_v23 = vld [vmem:[#allocation14 + $0xb48] sm:$0xf] }
 0x13b   :  { %5259 = vmatpush.bf16.msra.mxu2 %v7395_v40  ;;  %5272 = vmatpush.bf16.msra.mxu3 %v8163_v41  ;;  %v9120_v32 = vld [vmem:[#allocation14 + $0x1320] sm:$0xf0]  ;;  %v8167_v38 = vor.u32 %v10202_v24, %v8166_v23  ;;  %v9914_v16 = vld [vmem:[#allocation14 + $0x2a4] sm:$0xf0] }
 0x13c   :  { %v9123_v33 = vor.u32 %v10429_v31, %v9120_v32  ;;  %v10213_v40 = vld [vmem:[#allocation14 + $0xc04] sm:$0xf]  ;;  %v8742_v31 = vld [vmem:[#allocation14 + $0xfc8] sm:$0xf] }
 0x13d   :  { %v8256_v41 = vld [vmem:[#allocation14 + $0xc60] sm:$0xf0]  ;;  %v10346_v32 = vld [vmem:[#allocation14 + $0x1024] sm:$0xf0] }
 0x13e   :  { %5286 = vmatpush.bf16.msrb.mxu0 %v8835_v46  ;;  %5299 = vmatpush.bf16.msrb.mxu1 %v9603_v47  ;;  %v8259_v43 = vor.u32 %v10213_v40, %v8256_v41  ;;  %v9853_v46 = vld [vmem:[#allocation14 + $0xc4] sm:$0xf]  ;;  %v9986_v40 = vld [vmem:[#allocation14 + $0x4e4] sm:$0xf0] }
 0x13f   :  { %5260 = vmatpush.bf16.msra.mxu2 %v7299_v52  ;;  %5273 = vmatpush.bf16.msra.mxu3 %v8067_v53  ;;  %v6816_v47 = vld [vmem:[#allocation14 + $0x120] sm:$0xf0]  ;;  %v8070_v41 = vld [vmem:[#allocation14 + $0xa88] sm:$0xf] }
 0x140   :  { %v6819_v49 = vor.u32 %v9853_v46, %v6816_v47  ;;  %v9829_v52 = vld [vmem:[#allocation14 + $0x4] sm:$0xf]  ;;  %v9126_v23 = vld [vmem:[#allocation14 + $0x12c8] sm:$0xf] }
 0x141   :  { %v6720_v53 = vld [vmem:[#allocation14 + $0x60] sm:$0xf0]  ;;  %v10442_v24 = vld [vmem:[#allocation14 + $0x1324] sm:$0xf0] }
 0x142   :  { %5287 = vmatpush.bf16.msrb.mxu0 %v8739_v58  ;;  %5300 = vmatpush.bf16.msrb.mxu1 %v9507_v59  ;;  %v6723_v54 = vor.u32 %v9829_v52, %v6720_v53  ;;  %v315_v58 = vld [vmem:[#allocation13] sm:$0xf]  ;;  %v8071_v52 = vor.u32 %v10178_v42, %v8070_v41  ;;  %v7206_v53 = vld [vmem:[#allocation14 + $0x3c8] sm:$0xf] }
 0x143   :  { %5261 = vmatpush.bf16.msra.mxu2 %v7203_v0  ;;  %5274 = vmatpush.bf16.msra.mxu3 %v7971_v1  ;;  %v319_v59 = vperm.slane %v315_v58, 2  ;;  %v320_v60 = vperm.slane %v315_v58, 3  ;;  %v317_v5 = vperm.slane %v315_v58, 0 }
 0x146   :  { %5288 = vmatpush.bf16.msrb.mxu0 %v8643_v6  ;;  %5301 = vmatpush.bf16.msrb.mxu1 %v9411_v7  ;;  %v318_v6 = vperm.slane %v315_v58, 1 }
 0x147   :  { %5262 = vmatpush.bf16.msra.mxu2 %v7107_v12  ;;  %5275 = vmatpush.bf16.msra.mxu3 %v7875_v13 }
 0x14a   :  { %5289 = vmatpush.bf16.msrb.mxu0 %v8547_v14  ;;  %5302 = vmatpush.bf16.msrb.mxu1 %v9315_v15 }
 0x14b   :  { %5263 = vmatpush.bf16.msra.mxu2 %v7011_v25  ;;  %5276 = vmatpush.bf16.msra.mxu3 %v7779_v27 }
 0x14e   :  { %5290 = vmatpush.bf16.msrb.mxu0 %v8451_v20  ;;  %5303 = vmatpush.bf16.msrb.mxu1 %v9219_v21  ;;  %v7398_v21 = vld [vmem:[#allocation14 + $0x548] sm:$0xf] }
 0x14f   :  { %5264 = vmatpush.bf16.msra.mxu2 %v6915_v37  ;;  %5277 = vmatpush.bf16.msra.mxu3 %v7683_v39  ;;  %v7399_v37 = vor.u32 %v10010_v22, %v7398_v21  ;;  %v7302_v39 = vld [vmem:[#allocation14 + $0x488] sm:$0xf] }
 0x150   :  { %v8358_v21 = vld [vmem:[#allocation14 + $0xcc8] sm:$0xf] }
 0x151   :  { %v10250_v22 = vld [vmem:[#allocation14 + $0xd24] sm:$0xf0] }
 0x152   :  { %5291 = vmatpush.bf16.msrb.mxu0 %v8355_v30  ;;  %5304 = vmatpush.bf16.msrb.mxu1 %v9123_v33  ;;  %v9607_v30 = vor.u32 %v10562_v18, %v9606_v17  ;;  %v9510_v33 = vld [vmem:[#allocation14 + $0x15c8] sm:$0xf] }
 0x153   :  { %5265 = vmatpush.bf16.msra.mxu2 %v6819_v49  ;;  %5278 = vmatpush.bf16.msra.mxu3 %v7587_v51  ;;  %v9511_v44 = vor.u32 %v10538_v34, %v9510_v33  ;;  %v9414_v49 = vld [vmem:[#allocation14 + $0x1508] sm:$0xf]  ;;  %v7303_v51 = vor.u32 %v9986_v40, %v7302_v39  ;;  %v10382_v39 = vld [vmem:[#allocation14 + $0x114c] sm:$0xf] }
 0x154   :  { %v9415_v58 = vor.u32 %v10514_v50, %v9414_v49  ;;  %v7782_v17 = vld [vmem:[#allocation14 + $0x848] sm:$0xf]  ;;  %v8936_v40 = vld [vmem:[#allocation14 + $0x11a8] sm:$0xf0] }
 0x155   :  { %v10106_v18 = vld [vmem:[#allocation14 + $0x8a4] sm:$0xf0] }
 0x156   :  { %5292 = vmatpush.bf16.msrb.mxu0 %v8259_v43  ;;  %5305 = vmatpush.bf16.msrb.mxu1 %v9027_v45  ;;  %v8743_v43 = vor.u32 %v10346_v32, %v8742_v31  ;;  %v8646_v45 = vld [vmem:[#allocation14 + $0xf08] sm:$0xf]  ;;  %v8359_v31 = vor.u32 %v10250_v22, %v8358_v21  ;;  %v9127_v32 = vor.u32 %v10442_v24, %v9126_v23  ;;  %v10310_v21 = vld [vmem:[#allocation14 + $0xf0c] sm:$0xf] }
 0x157   :  { %5266 = vmatpush.bf16.msra.mxu2 %v6723_v54  ;;  %5279 = vmatpush.bf16.msra.mxu3 %v7491_v57  ;;  %v9962_v54 = vld [vmem:[#allocation14 + $0x424] sm:$0xf0]  ;;  %v8647_v57 = vor.u32 %v10322_v48, %v8646_v45  ;;  %v8648_v22 = vld [vmem:[#allocation14 + $0xf68] sm:$0xf0] }
 0x158   :  { %v7207_v63 = vor.u32 %v9962_v54, %v7206_v53  ;;  %v8262_v33 = vld [vmem:[#allocation14 + $0xc08] sm:$0xf]  ;;  %v10358_v53 = vld [vmem:[#allocation14 + $0x108c] sm:$0xf] }
 0x159   :  { %v10226_v34 = vld [vmem:[#allocation14 + $0xc64] sm:$0xf0]  ;;  %v8840_v54 = vld [vmem:[#allocation14 + $0x10e8] sm:$0xf0] }
 0x15a   :  { %v6822_v45 = vld [vmem:[#allocation14 + $0xc8] sm:$0xf]  ;;  %v8263_v49 = vor.u32 %v10226_v34, %v8262_v33  ;;  %v10502_v23 = vld [vmem:[#allocation14 + $0x150c] sm:$0xf] }
 0x15b   :  { %v10058_v48 = vld [vmem:[#allocation14 + $0x724] sm:$0xf0]  ;;  %v9416_v24 = vld [vmem:[#allocation14 + $0x1568] sm:$0xf0] }
 0x15c   :  { %v10286_v33 = vld [vmem:[#allocation14 + $0xe4c] sm:$0xf] }
 0x15d   :  { %v8552_v34 = vld [vmem:[#allocation14 + $0xea8] sm:$0xf0] }
 0x1b6   :  { %v520_v61 = vpop.f32.mrf.mxu0  ;;  %v533_v62 = vpop.f32.mrf.mxu1 }
 0x1b7   :  { %v521_v0 = vadd.f32 %v520_v61, %v319_v59  ;;  %v534_v1 = vadd.f32 %v533_v62, %v320_v60  ;;  %v8550_v59 = vld [vmem:[#allocation14 + $0xe48] sm:$0xf] }
 0x1b8   :  { %v10298_v60 = vld [vmem:[#allocation14 + $0xea4] sm:$0xf0] }
 0x1b9   :  { %v539_v7 = vmax.f32 %v521_v0, 0.0  ;;  %v540_v8 = vmax.f32 %v534_v1, 0.0  ;;  %v9318_v61 = vld [vmem:[#allocation14 + $0x1448] sm:$0xf]  ;;  %v7975_v0 = vor.u32 %v10154_v56, %v7974_v55  ;;  %v10550_v55 = vld [vmem:[#allocation14 + $0x168c] sm:$0xf] }
 0x1ba   :  { %v10490_v62 = vld [vmem:[#allocation14 + $0x14a4] sm:$0xf0] }
 0x1bb   :  { %v10962_v12 = vpack.c.bf16 %v539_v7, %v539_v7  ;;  %v10964_v13 = vpack.c.bf16 %v540_v8, %v540_v8  ;;  %v494_v14 = vpop.f32.mrf.mxu2  ;;  %v507_v15 = vpop.f32.mrf.mxu3  ;;  %v7110_v1 = vld [vmem:[#allocation14 + $0x308] sm:$0xf] }
 0x1bc   :  { %v495_v19 = vadd.f32 %v494_v14, %v317_v5  ;;  %v508_v20 = vadd.f32 %v507_v15, %v318_v6  ;;  %v8551_v5 = vor.u32 %v10298_v60, %v8550_v59  ;;  %v9319_v6 = vor.u32 %v10490_v62, %v9318_v61  ;;  %v8454_v7 = vld [vmem:[#allocation14 + $0xd88] sm:$0xf] }
 0x1bd   :  { %5241 = vmatmul.bf16.vlgmr.msra.gmra.mxu0 %v10962_v12  ;;  %5254 = vmatmul.bf16.vlgmr.msra.gmra.mxu1 %v10964_v13  ;;  %v10274_v8 = vld [vmem:[#allocation14 + $0xde4] sm:$0xf0]  ;;  %v7111_v11 = vor.u32 %v9938_v2, %v7110_v1  ;;  %v7879_v14 = vor.u32 %v10130_v4, %v7878_v3  ;;  %v10190_v1 = vld [vmem:[#allocation14 + $0xb4c] sm:$0xf]  ;;  %v8843_v3 = vor.u32 %v10358_v53, %v8840_v54 }
 0x1be   :  { %v537_v25 = vmax.f32 %v495_v19, 0.0  ;;  %v538_v26 = vmax.f32 %v508_v20, 0.0  ;;  %5337 = vmatpush.bf16.msra.mxu0 %v8935_v9  ;;  %5350 = vmatpush.bf16.msra.mxu1 %v9703_v10  ;;  %v522_v27 = vpop.f32.mrf.mxu0  ;;  %v535_v28 = vpop.f32.mrf.mxu1  ;;  %v9222_v9 = vld [vmem:[#allocation14 + $0x1388] sm:$0xf]  ;;  %v8455_v19 = vor.u32 %v10274_v8, %v8454_v7  ;;  %v8168_v2 = vld [vmem:[#allocation14 + $0xba8] sm:$0xf0] }
 0x1bf   :  { %v10466_v10 = vld [vmem:[#allocation14 + $0x13e4] sm:$0xf0]  ;;  %v8744_v8 = vld [vmem:[#allocation14 + $0x1028] sm:$0xf0] }
 0x1c0   :  { %v10968_v35 = vpack.c.bf16 %v537_v25, %v537_v25  ;;  %v10970_v36 = vpack.c.bf16 %v538_v26, %v538_v26  ;;  %v7014_v15 = vld [vmem:[#allocation14 + $0x248] sm:$0xf]  ;;  %v9223_v20 = vor.u32 %v10466_v10, %v9222_v9  ;;  %v7783_v26 = vor.u32 %v10106_v18, %v7782_v17  ;;  %v10526_v9 = vld [vmem:[#allocation14 + $0x15cc] sm:$0xf] }
 0x1c1   :  { %v7015_v25 = vor.u32 %v9914_v16, %v7014_v15  ;;  %v6918_v27 = vld [vmem:[#allocation14 + $0x188] sm:$0xf]  ;;  %v9512_v10 = vld [vmem:[#allocation14 + $0x1628] sm:$0xf0] }
 0x1c2   :  { %5338 = vmatpush.bf16.msra.mxu0 %v8839_v29  ;;  %5351 = vmatpush.bf16.msra.mxu1 %v9607_v30  ;;  %v9890_v28 = vld [vmem:[#allocation14 + $0x1e4] sm:$0xf0]  ;;  %v9974_v15 = vld [vmem:[#allocation14 + $0x48c] sm:$0xf] }
 0x1c3   :  { %5215 = vmatmul.bf16.vlgmr.msrb.gmra.mxu2 %v10968_v35  ;;  %5228 = vmatmul.bf16.vlgmr.msrb.gmra.mxu3 %v10970_v36  ;;  %v496_v46 = vpop.f32.mrf.mxu2  ;;  %v509_v47 = vpop.f32.mrf.mxu3  ;;  %v7686_v29 = vld [vmem:[#allocation14 + $0x788] sm:$0xf]  ;;  %v6919_v41 = vor.u32 %v9890_v28, %v6918_v27  ;;  %v7304_v16 = vld [vmem:[#allocation14 + $0x4e8] sm:$0xf0] }
 0x1c4   :  { %5311 = vmatpush.bf16.msrb.mxu2 %v7399_v37  ;;  %5324 = vmatpush.bf16.msrb.mxu3 %v8167_v38  ;;  %v10082_v30 = vld [vmem:[#allocation14 + $0x7e4] sm:$0xf0]  ;;  %v10166_v17 = vld [vmem:[#allocation14 + $0xa8c] sm:$0xf] }
 0x1c5   :  { %v9030_v37 = vld [vmem:[#allocation14 + $0x1208] sm:$0xf]  ;;  %v7687_v42 = vor.u32 %v10082_v30, %v7686_v29  ;;  %v8072_v18 = vld [vmem:[#allocation14 + $0xae8] sm:$0xf0] }
 0x1c6   :  { %5339 = vmatpush.bf16.msra.mxu0 %v8743_v43  ;;  %5352 = vmatpush.bf16.msra.mxu1 %v9511_v44  ;;  %v10418_v38 = vld [vmem:[#allocation14 + $0x1264] sm:$0xf0]  ;;  %v10574_v43 = vld [vmem:[#allocation14 + $0x174c] sm:$0xf] }
 0x1c7   :  { %v9704_v44 = vld [vmem:[#allocation14 + $0x17a8] sm:$0xf0]  ;;  %v9866_v46 = vld [vmem:[#allocation14 + $0x124] sm:$0xf0]  ;;  %v9031_v50 = vor.u32 %v10418_v38, %v9030_v37 }
 0x1c8   :  { %5312 = vmatpush.bf16.msrb.mxu2 %v7303_v51  ;;  %5325 = vmatpush.bf16.msrb.mxu3 %v8071_v52  ;;  %v7590_v47 = vld [vmem:[#allocation14 + $0x6c8] sm:$0xf]  ;;  %v8939_v51 = vor.u32 %v10382_v39, %v8936_v40  ;;  %v9707_v52 = vor.u32 %v10574_v43, %v9704_v44  ;;  %v6823_v56 = vor.u32 %v9866_v46, %v6822_v45  ;;  %v9950_v27 = vld [vmem:[#allocation14 + $0x3cc] sm:$0xf] }
 0x1c9   :  { %v6726_v59 = vld [vmem:[#allocation14 + $0x8] sm:$0xf]  ;;  %v7208_v28 = vld [vmem:[#allocation14 + $0x428] sm:$0xf0]  ;;  %v8555_v45 = vor.u32 %v10286_v33, %v8552_v34 }
 0x1ca   :  { %5340 = vmatpush.bf16.msra.mxu0 %v8647_v57  ;;  %5353 = vmatpush.bf16.msra.mxu1 %v9415_v58  ;;  %v7591_v57 = vor.u32 %v10058_v48, %v7590_v47  ;;  %v9608_v58 = vld [vmem:[#allocation14 + $0x16e8] sm:$0xf0]  ;;  %v9842_v60 = vld [vmem:[#allocation14 + $0x64] sm:$0xf0]  ;;  %v7211_v39 = vor.u32 %v9950_v27, %v7208_v28  ;;  %v8846_v27 = vld [vmem:[#allocation14 + $0x1090] sm:$0xf] }
 0x1cb   :  { %v7494_v61 = vld [vmem:[#allocation14 + $0x608] sm:$0xf]  ;;  %v9611_v4 = vor.u32 %v10550_v55, %v9608_v58  ;;  %v10142_v29 = vld [vmem:[#allocation14 + $0x9cc] sm:$0xf]  ;;  %v10371_v28 = vld [vmem:[#allocation14 + $0x10ec] sm:$0xf0] }
 0x1cc   :  { %5313 = vmatpush.bf16.msrb.mxu2 %v7207_v63  ;;  %5326 = vmatpush.bf16.msrb.mxu3 %v7975_v0  ;;  %v10034_v62 = vld [vmem:[#allocation14 + $0x664] sm:$0xf0]  ;;  %v9998_v63 = vld [vmem:[#allocation14 + $0x54c] sm:$0xf] }
 0x1cd   :  { %5293 = vmatmul.bf16.vlgmr.msrb.gmra.mxu0 %v10962_v12  ;;  %5306 = vmatmul.bf16.vlgmr.msrb.gmra.mxu1 %v10964_v13  ;;  %v7400_v0 = vld [vmem:[#allocation14 + $0x5a8] sm:$0xf0]  ;;  %v7495_v7 = vor.u32 %v10034_v62, %v7494_v61 }
 0x1ce   :  { %5341 = vmatpush.bf16.msra.mxu0 %v8551_v5  ;;  %5354 = vmatpush.bf16.msra.mxu1 %v9319_v6  ;;  %v10334_v5 = vld [vmem:[#allocation14 + $0xfcc] sm:$0xf]  ;;  %v6727_v6 = vor.u32 %v9842_v60, %v6726_v59 }
 0x1cf   :  { %v7976_v30 = vld [vmem:[#allocation14 + $0xa28] sm:$0xf0] }
 0x1d0   :  { %5314 = vmatpush.bf16.msrb.mxu2 %v7111_v11  ;;  %5327 = vmatpush.bf16.msrb.mxu3 %v7879_v14  ;;  %v7403_v11 = vor.u32 %v9998_v63, %v7400_v0  ;;  %v8171_v14 = vor.u32 %v10190_v1, %v8168_v2  ;;  %v10478_v37 = vld [vmem:[#allocation14 + $0x144c] sm:$0xf]  ;;  %v7979_v40 = vor.u32 %v10142_v29, %v7976_v30  ;;  %v9614_v29 = vld [vmem:[#allocation14 + $0x1690] sm:$0xf] }
 0x1d1   :  { %v9320_v38 = vld [vmem:[#allocation14 + $0x14a8] sm:$0xf0] }
 0x1d2   :  { %5342 = vmatpush.bf16.msra.mxu0 %v8455_v19  ;;  %5355 = vmatpush.bf16.msra.mxu1 %v9223_v20  ;;  %v8747_v19 = vor.u32 %v10334_v5, %v8744_v8  ;;  %v9515_v20 = vor.u32 %v10526_v9, %v9512_v10  ;;  %v10118_v43 = vld [vmem:[#allocation14 + $0x90c] sm:$0xf]  ;;  %v9323_v46 = vor.u32 %v10478_v37, %v9320_v38 }
 0x1d3   :  { %5267 = vmatmul.bf16.vlgmr.msra.gmra.mxu2 %v10968_v35  ;;  %5280 = vmatmul.bf16.vlgmr.msra.gmra.mxu3 %v10970_v36  ;;  %v7880_v44 = vld [vmem:[#allocation14 + $0x968] sm:$0xf0] }
 0x1d4   :  { %5315 = vmatpush.bf16.msrb.mxu2 %v7015_v25  ;;  %5328 = vmatpush.bf16.msrb.mxu3 %v7783_v26  ;;  %v7307_v25 = vor.u32 %v9974_v15, %v7304_v16  ;;  %v8075_v26 = vor.u32 %v10166_v17, %v8072_v18  ;;  %v10262_v47 = vld [vmem:[#allocation14 + $0xd8c] sm:$0xf]  ;;  %v9710_v17 = vld [vmem:[#allocation14 + $0x1750] sm:$0xf] }
 0x1d5   :  { %v8456_v48 = vld [vmem:[#allocation14 + $0xde8] sm:$0xf0]  ;;  %v10587_v18 = vld [vmem:[#allocation14 + $0x17ac] sm:$0xf0] }
 0x1d6   :  { %5343 = vmatpush.bf16.msra.mxu0 %v8359_v31  ;;  %5356 = vmatpush.bf16.msra.mxu1 %v9127_v32  ;;  %v8651_v31 = vor.u32 %v10310_v21, %v8648_v22  ;;  %v9419_v32 = vor.u32 %v10502_v23, %v9416_v24  ;;  %v9902_v53 = vld [vmem:[#allocation14 + $0x24c] sm:$0xf] }
 0x1d7   :  { %v7016_v54 = vld [vmem:[#allocation14 + $0x2a8] sm:$0xf0] }
 0x1d8   :  { %5316 = vmatpush.bf16.msrb.mxu2 %v6919_v41  ;;  %5329 = vmatpush.bf16.msrb.mxu3 %v7687_v42  ;;  %v9926_v41 = vld [vmem:[#allocation14 + $0x30c] sm:$0xf]  ;;  %v7019_v63 = vor.u32 %v9902_v53, %v7016_v54  ;;  %v7310_v53 = vld [vmem:[#allocation14 + $0x490] sm:$0xf] }
 0x1d9   :  { %v7112_v42 = vld [vmem:[#allocation14 + $0x368] sm:$0xf0]  ;;  %v9987_v54 = vld [vmem:[#allocation14 + $0x4ec] sm:$0xf0] }
 0x1da   :  { %5344 = vmatpush.bf16.msra.mxu0 %v8263_v49  ;;  %5357 = vmatpush.bf16.msra.mxu1 %v9031_v50  ;;  %v10454_v49 = vld [vmem:[#allocation14 + $0x138c] sm:$0xf] }
 0x1db   :  { %v9224_v50 = vld [vmem:[#allocation14 + $0x13e8] sm:$0xf0] }
 0x1dc   :  { %5317 = vmatpush.bf16.msrb.mxu2 %v6823_v56  ;;  %5330 = vmatpush.bf16.msrb.mxu3 %v7591_v57  ;;  %v10094_v55 = vld [vmem:[#allocation14 + $0x84c] sm:$0xf]  ;;  %v8459_v57 = vor.u32 %v10262_v47, %v8456_v48  ;;  %v9227_v58 = vor.u32 %v10454_v49, %v9224_v50  ;;  %v8750_v47 = vld [vmem:[#allocation14 + $0xfd0] sm:$0xf] }
 0x1dd   :  { %5345 = vmatmul.bf16.vlgmr.msra.gmra.mxu0 %v10962_v12  ;;  %5358 = vmatmul.bf16.vlgmr.msra.gmra.mxu1 %v10964_v13  ;;  %v7784_v56 = vld [vmem:[#allocation14 + $0x8a8] sm:$0xf0]  ;;  %v10347_v48 = vld [vmem:[#allocation14 + $0x102c] sm:$0xf0] }
 0x1de   :  { %5389 = vmatpush.bf16.msrb.mxu0 %v8939_v51  ;;  %5402 = vmatpush.bf16.msrb.mxu1 %v9707_v52  ;;  %v7115_v51 = vor.u32 %v9926_v41, %v7112_v42  ;;  %v7883_v52 = vor.u32 %v10118_v43, %v7880_v44  ;;  %v10238_v59 = vld [vmem:[#allocation14 + $0xccc] sm:$0xf]  ;;  %v7787_v0 = vor.u32 %v10094_v55, %v7784_v56  ;;  %v8174_v41 = vld [vmem:[#allocation14 + $0xb50] sm:$0xf] }
 0x1df   :  { %v8360_v60 = vld [vmem:[#allocation14 + $0xd28] sm:$0xf0]  ;;  %v10203_v42 = vld [vmem:[#allocation14 + $0xbac] sm:$0xf0]  ;;  %v8847_v43 = vor.u32 %v10371_v28, %v8846_v27 }
 0x1e0   :  { %5318 = vmatpush.bf16.msrb.mxu2 %v6727_v6  ;;  %5331 = vmatpush.bf16.msrb.mxu3 %v7495_v7  ;;  %v10430_v61 = vld [vmem:[#allocation14 + $0x12cc] sm:$0xf]  ;;  %v8363_v5 = vor.u32 %v10238_v59, %v8360_v60  ;;  %v8175_v50 = vor.u32 %v10203_v42, %v8174_v41  ;;  %v8078_v55 = vld [vmem:[#allocation14 + $0xa90] sm:$0xf] }
 0x1e1   :  { %v9128_v62 = vld [vmem:[#allocation14 + $0x1328] sm:$0xf0]  ;;  %v10179_v56 = vld [vmem:[#allocation14 + $0xaec] sm:$0xf0] }
 0x1e2   :  { %5390 = vmatpush.bf16.msrb.mxu0 %v8843_v3  ;;  %5403 = vmatpush.bf16.msrb.mxu1 %v9611_v4  ;;  %v9878_v1 = vld [vmem:[#allocation14 + $0x18c] sm:$0xf]  ;;  %v9131_v6 = vor.u32 %v10430_v61, %v9128_v62  ;;  %v8654_v59 = vld [vmem:[#allocation14 + $0xf10] sm:$0xf]  ;;  %v7311_v61 = vor.u32 %v9987_v54, %v7310_v53  ;;  %v8079_v62 = vor.u32 %v10179_v56, %v8078_v55  ;;  %v10383_v53 = vld [vmem:[#allocation14 + $0x1154] sm:$0xf] }
 0x1e3   :  { %5319 = vmatmul.bf16.vlgmr.msrb.gmra.mxu2 %v10968_v35  ;;  %5332 = vmatmul.bf16.vlgmr.msrb.gmra.mxu3 %v10970_v36  ;;  %v6920_v2 = vld [vmem:[#allocation14 + $0x1e8] sm:$0xf0]  ;;  %v10323_v60 = vld [vmem:[#allocation14 + $0xf6c] sm:$0xf0]  ;;  %v8944_v54 = vld [vmem:[#allocation14 + $0x11b0] sm:$0xf0] }
 0x1e4   :  { %5363 = vmatpush.bf16.msra.mxu2 %v7403_v11  ;;  %5376 = vmatpush.bf16.msra.mxu3 %v8171_v14  ;;  %v10070_v3 = vld [vmem:[#allocation14 + $0x78c] sm:$0xf]  ;;  %v8942_v11 = vld [vmem:[#allocation14 + $0x1150] sm:$0xf]  ;;  %v6923_v15 = vor.u32 %v9878_v1, %v6920_v2  ;;  %v10575_v55 = vld [vmem:[#allocation14 + $0x1754] sm:$0xf] }
 0x1e5   :  { %v7688_v4 = vld [vmem:[#allocation14 + $0x7e8] sm:$0xf0]  ;;  %v10395_v14 = vld [vmem:[#allocation14 + $0x11ac] sm:$0xf0]  ;;  %v9712_v56 = vld [vmem:[#allocation14 + $0x17b0] sm:$0xf0] }
 0x1e6   :  { %5391 = vmatpush.bf16.msrb.mxu0 %v8747_v19  ;;  %5404 = vmatpush.bf16.msrb.mxu1 %v9515_v20  ;;  %v10214_v7 = vld [vmem:[#allocation14 + $0xc0c] sm:$0xf]  ;;  %v7691_v16 = vor.u32 %v10070_v3, %v7688_v4  ;;  %v7214_v1 = vld [vmem:[#allocation14 + $0x3d0] sm:$0xf] }
 0x1e7   :  { %v8264_v8 = vld [vmem:[#allocation14 + $0xc68] sm:$0xf0]  ;;  %v9963_v2 = vld [vmem:[#allocation14 + $0x42c] sm:$0xf0] }
 0x1e8   :  { %5364 = vmatpush.bf16.msra.mxu2 %v7307_v25  ;;  %5377 = vmatpush.bf16.msra.mxu3 %v8075_v26  ;;  %v10406_v9 = vld [vmem:[#allocation14 + $0x120c] sm:$0xf]  ;;  %v8267_v23 = vor.u32 %v10214_v7, %v8264_v8  ;;  %v8943_v25 = vor.u32 %v10395_v14, %v8942_v11  ;;  %v9711_v26 = vor.u32 %v10587_v18, %v9710_v17  ;;  %v7982_v3 = vld [vmem:[#allocation14 + $0x9d0] sm:$0xf] }
 0x1e9   :  { %v9032_v10 = vld [vmem:[#allocation14 + $0x1268] sm:$0xf0]  ;;  %v10155_v4 = vld [vmem:[#allocation14 + $0xa2c] sm:$0xf0] }
 0x1ea   :  { %5392 = vmatpush.bf16.msrb.mxu0 %v8651_v31  ;;  %5405 = vmatpush.bf16.msrb.mxu1 %v9419_v32  ;;  %v9854_v19 = vld [vmem:[#allocation14 + $0xcc] sm:$0xf]  ;;  %v9035_v24 = vor.u32 %v10406_v9, %v9032_v10  ;;  %v10563_v32 = vld [vmem:[#allocation14 + $0x16ec] sm:$0xf0]  ;;  %v7215_v9 = vor.u32 %v9963_v2, %v7214_v1  ;;  %v7983_v10 = vor.u32 %v10155_v4, %v7982_v3  ;;  %v10359_v1 = vld [vmem:[#allocation14 + $0x1094] sm:$0xf] }
 0x1eb   :  { %v6824_v20 = vld [vmem:[#allocation14 + $0x128] sm:$0xf0]  ;;  %v9615_v44 = vor.u32 %v10563_v32, %v9614_v29  ;;  %v8558_v7 = vld [vmem:[#allocation14 + $0xe50] sm:$0xf]  ;;  %v8848_v2 = vld [vmem:[#allocation14 + $0x10f0] sm:$0xf0] }
 0x1ec   :  { %5365 = vmatpush.bf16.msra.mxu2 %v7211_v39  ;;  %5378 = vmatpush.bf16.msra.mxu3 %v7979_v40  ;;  %v10046_v21 = vld [vmem:[#allocation14 + $0x6cc] sm:$0xf]  ;;  %v6827_v30 = vor.u32 %v9854_v19, %v6824_v20  ;;  %v7406_v39 = vld [vmem:[#allocation14 + $0x550] sm:$0xf]  ;;  %v10551_v3 = vld [vmem:[#allocation14 + $0x1694] sm:$0xf] }
 0x1ed   :  { %v7592_v22 = vld [vmem:[#allocation14 + $0x728] sm:$0xf0]  ;;  %v10011_v40 = vld [vmem:[#allocation14 + $0x5ac] sm:$0xf0] }
 0x1ee   :  { %5393 = vmatpush.bf16.msrb.mxu0 %v8555_v45  ;;  %5406 = vmatpush.bf16.msrb.mxu1 %v9323_v46  ;;  %v7595_v31 = vor.u32 %v10046_v21, %v7592_v22  ;;  %v9830_v33 = vld [vmem:[#allocation14 + $0xc] sm:$0xf]  ;;  %v7407_v49 = vor.u32 %v10011_v40, %v7406_v39  ;;  %v10299_v8 = vld [vmem:[#allocation14 + $0xeac] sm:$0xf0] }
 0x1ef   :  { %v6728_v34 = vld [vmem:[#allocation14 + $0x68] sm:$0xf0]  ;;  %v9326_v11 = vld [vmem:[#allocation14 + $0x1450] sm:$0xf]  ;;  %v8559_v19 = vor.u32 %v10299_v8, %v8558_v7 }
 0x1f0   :  { %5366 = vmatpush.bf16.msra.mxu2 %v7115_v51  ;;  %5379 = vmatpush.bf16.msra.mxu3 %v7883_v52  ;;  %v10022_v37 = vld [vmem:[#allocation14 + $0x60c] sm:$0xf]  ;;  %v6731_v45 = vor.u32 %v9830_v33, %v6728_v34  ;;  %v9518_v51 = vld [vmem:[#allocation14 + $0x15d0] sm:$0xf] }
 0x1f1   :  { %v7496_v38 = vld [vmem:[#allocation14 + $0x668] sm:$0xf0]  ;;  %v10539_v52 = vld [vmem:[#allocation14 + $0x162c] sm:$0xf0] }
 0x1f2   :  { %5394 = vmatpush.bf16.msrb.mxu0 %v8459_v57  ;;  %5407 = vmatpush.bf16.msrb.mxu1 %v9227_v58  ;;  %v7499_v46 = vor.u32 %v10022_v37, %v7496_v38  ;;  %v8751_v57 = vor.u32 %v10347_v48, %v8750_v47  ;;  %v9519_v58 = vor.u32 %v10539_v52, %v9518_v51  ;;  %v10491_v14 = vld [vmem:[#allocation14 + $0x14ac] sm:$0xf0] }
 0x1f3   :  { %v7886_v17 = vld [vmem:[#allocation14 + $0x910] sm:$0xf]  ;;  %v9327_v20 = vor.u32 %v10491_v14, %v9326_v11  ;;  %v9999_v11 = vld [vmem:[#allocation14 + $0x554] sm:$0xf] }
 0x1f4   :  { %5367 = vmatpush.bf16.msra.mxu2 %v7019_v63  ;;  %5380 = vmatpush.bf16.msra.mxu3 %v7787_v0  ;;  %v9422_v63 = vld [vmem:[#allocation14 + $0x1510] sm:$0xf]  ;;  %v7408_v14 = vld [vmem:[#allocation14 + $0x5b0] sm:$0xf0] }
 0x1f5   :  { %v10515_v0 = vld [vmem:[#allocation14 + $0x156c] sm:$0xf0] }
 0x1f6   :  { %5395 = vmatpush.bf16.msrb.mxu0 %v8363_v5  ;;  %5408 = vmatpush.bf16.msrb.mxu1 %v9131_v6  ;;  %v8655_v5 = vor.u32 %v10323_v60, %v8654_v59  ;;  %v9423_v6 = vor.u32 %v10515_v0, %v9422_v63  ;;  %v10131_v18 = vld [vmem:[#allocation14 + $0x96c] sm:$0xf0]  ;;  %v8947_v63 = vor.u32 %v10383_v53, %v8944_v54  ;;  %v9927_v53 = vld [vmem:[#allocation14 + $0x314] sm:$0xf] }
 0x1f7   :  { %v8462_v21 = vld [vmem:[#allocation14 + $0xd90] sm:$0xf]  ;;  %v9715_v0 = vor.u32 %v10575_v55, %v9712_v56  ;;  %v7120_v54 = vld [vmem:[#allocation14 + $0x370] sm:$0xf0] }
 0x1f8   :  { %5368 = vmatpush.bf16.msra.mxu2 %v6923_v15  ;;  %5381 = vmatpush.bf16.msra.mxu3 %v7691_v16  ;;  %v7118_v15 = vld [vmem:[#allocation14 + $0x310] sm:$0xf]  ;;  %v10119_v55 = vld [vmem:[#allocation14 + $0x914] sm:$0xf] }
 0x1f9   :  { %v9939_v16 = vld [vmem:[#allocation14 + $0x36c] sm:$0xf0]  ;;  %v7888_v56 = vld [vmem:[#allocation14 + $0x970] sm:$0xf0] }
 0x1fa   :  { %5396 = vmatpush.bf16.msrb.mxu0 %v8267_v23  ;;  %5409 = vmatpush.bf16.msrb.mxu1 %v9035_v24  ;;  %v10275_v22 = vld [vmem:[#allocation14 + $0xdec] sm:$0xf0]  ;;  %v7119_v23 = vor.u32 %v9939_v16, %v7118_v15  ;;  %v7887_v24 = vor.u32 %v10131_v18, %v7886_v17  ;;  %v10191_v15 = vld [vmem:[#allocation14 + $0xb54] sm:$0xf]  ;;  %v8851_v17 = vor.u32 %v10359_v1, %v8848_v2 }
 0x1fb   :  { %v7022_v27 = vld [vmem:[#allocation14 + $0x250] sm:$0xf]  ;;  %v8176_v16 = vld [vmem:[#allocation14 + $0xbb0] sm:$0xf0] }
 0x1fc   :  { %5369 = vmatpush.bf16.msra.mxu2 %v6827_v30  ;;  %5382 = vmatpush.bf16.msra.mxu3 %v7595_v31  ;;  %v9915_v28 = vld [vmem:[#allocation14 + $0x2ac] sm:$0xf0]  ;;  %v8463_v31 = vor.u32 %v10275_v22, %v8462_v21  ;;  %v10335_v21 = vld [vmem:[#allocation14 + $0xfd4] sm:$0xf] }
 0x1fd   :  { %5397 = vmatmul.bf16.vlgmr.msrb.gmra.mxu0 %v10962_v12  ;;  %5410 = vmatmul.bf16.vlgmr.msrb.gmra.mxu1 %v10964_v13  ;;  %v7790_v29 = vld [vmem:[#allocation14 + $0x850] sm:$0xf]  ;;  %v7023_v37 = vor.u32 %v9915_v28, %v7022_v27  ;;  %v8752_v22 = vld [vmem:[#allocation14 + $0x1030] sm:$0xf0] }
 0x1fe   :  { %5441 = vmatpush.bf16.msra.mxu0 %v8943_v25  ;;  %5454 = vmatpush.bf16.msra.mxu1 %v9711_v26  ;;  %v9230_v25 = vld [vmem:[#allocation14 + $0x1390] sm:$0xf]  ;;  %v9975_v27 = vld [vmem:[#allocation14 + $0x494] sm:$0xf] }
 0x1ff   :  { %v10467_v26 = vld [vmem:[#allocation14 + $0x13ec] sm:$0xf0]  ;;  %v7312_v28 = vld [vmem:[#allocation14 + $0x4f0] sm:$0xf0] }
 0x200   :  { %5370 = vmatpush.bf16.msra.mxu2 %v6731_v45  ;;  %5383 = vmatpush.bf16.msra.mxu3 %v7499_v46  ;;  %v10107_v30 = vld [vmem:[#allocation14 + $0x8ac] sm:$0xf0]  ;;  %v9231_v32 = vor.u32 %v10467_v26, %v9230_v25  ;;  %v10527_v25 = vld [vmem:[#allocation14 + $0x15d4] sm:$0xf] }
 0x201   :  { %v8366_v33 = vld [vmem:[#allocation14 + $0xcd0] sm:$0xf]  ;;  %v7791_v38 = vor.u32 %v10107_v30, %v7790_v29  ;;  %v9520_v26 = vld [vmem:[#allocation14 + $0x1630] sm:$0xf0] }
 0x202   :  { %5442 = vmatpush.bf16.msra.mxu0 %v8847_v43  ;;  %5455 = vmatpush.bf16.msra.mxu1 %v9615_v44  ;;  %v10251_v34 = vld [vmem:[#allocation14 + $0xd2c] sm:$0xf0]  ;;  %v10167_v29 = vld [vmem:[#allocation14 + $0xa94] sm:$0xf] }
 0x203   :  { %5371 = vmatmul.bf16.vlgmr.msra.gmra.mxu2 %v10968_v35  ;;  %5384 = vmatmul.bf16.vlgmr.msra.gmra.mxu3 %v10970_v36  ;;  %v9134_v39 = vld [vmem:[#allocation14 + $0x12d0] sm:$0xf]  ;;  %v8367_v45 = vor.u32 %v10251_v34, %v8366_v33  ;;  %v8080_v30 = vld [vmem:[#allocation14 + $0xaf0] sm:$0xf0] }
 0x204   :  { %5415 = vmatpush.bf16.msrb.mxu2 %v7407_v49  ;;  %5428 = vmatpush.bf16.msrb.mxu3 %v8175_v50  ;;  %v10443_v40 = vld [vmem:[#allocation14 + $0x132c] sm:$0xf0]  ;;  %v10311_v33 = vld [vmem:[#allocation14 + $0xf14] sm:$0xf] }
 0x205   :  { %v6926_v41 = vld [vmem:[#allocation14 + $0x190] sm:$0xf]  ;;  %v9135_v46 = vor.u32 %v10443_v40, %v9134_v39  ;;  %v8656_v34 = vld [vmem:[#allocation14 + $0xf70] sm:$0xf0] }
 0x206   :  { %5443 = vmatpush.bf16.msra.mxu0 %v8751_v57  ;;  %5456 = vmatpush.bf16.msra.mxu1 %v9519_v58  ;;  %v9891_v42 = vld [vmem:[#allocation14 + $0x1ec] sm:$0xf0]  ;;  %v10503_v39 = vld [vmem:[#allocation14 + $0x1514] sm:$0xf] }
 0x207   :  { %v7694_v43 = vld [vmem:[#allocation14 + $0x790] sm:$0xf]  ;;  %v6927_v50 = vor.u32 %v9891_v42, %v6926_v41  ;;  %v9424_v40 = vld [vmem:[#allocation14 + $0x1570] sm:$0xf0] }
 0x208   :  { %5416 = vmatpush.bf16.msrb.mxu2 %v7311_v61  ;;  %5429 = vmatpush.bf16.msrb.mxu3 %v8079_v62  ;;  %v10083_v44 = vld [vmem:[#allocation14 + $0x7ec] sm:$0xf0]  ;;  %v9951_v41 = vld [vmem:[#allocation14 + $0x3d4] sm:$0xf] }
 0x209   :  { %v8270_v47 = vld [vmem:[#allocation14 + $0xc10] sm:$0xf]  ;;  %v7695_v51 = vor.u32 %v10083_v44, %v7694_v43  ;;  %v7216_v42 = vld [vmem:[#allocation14 + $0x430] sm:$0xf0] }
 0x20a   :  { %5444 = vmatpush.bf16.msra.mxu0 %v8655_v5  ;;  %5457 = vmatpush.bf16.msra.mxu1 %v9423_v6  ;;  %v10227_v48 = vld [vmem:[#allocation14 + $0xc6c] sm:$0xf0]  ;;  %v9616_v6 = vld [vmem:[#allocation14 + $0x16f0] sm:$0xf0] }
 0x20b   :  { %v9038_v49 = vld [vmem:[#allocation14 + $0x1210] sm:$0xf]  ;;  %v8271_v61 = vor.u32 %v10227_v48, %v8270_v47  ;;  %v9619_v18 = vor.u32 %v10551_v3, %v9616_v6  ;;  %v10143_v43 = vld [vmem:[#allocation14 + $0x9d4] sm:$0xf] }
 0x20c   :  { %5417 = vmatpush.bf16.msrb.mxu2 %v7215_v9  ;;  %5430 = vmatpush.bf16.msrb.mxu3 %v7983_v10  ;;  %v10419_v52 = vld [vmem:[#allocation14 + $0x126c] sm:$0xf0]  ;;  %v7984_v44 = vld [vmem:[#allocation14 + $0xa30] sm:$0xf0] }
 0x20d   :  { %v6830_v57 = vld [vmem:[#allocation14 + $0xd0] sm:$0xf]  ;;  %v9039_v62 = vor.u32 %v10419_v52, %v9038_v49  ;;  %v10287_v47 = vld [vmem:[#allocation14 + $0xe54] sm:$0xf]  ;;  %v7219_v49 = vor.u32 %v9951_v41, %v7216_v42  ;;  %v8854_v41 = vld [vmem:[#allocation14 + $0x1098] sm:$0xf] }
 0x20e   :  { %5445 = vmatpush.bf16.msra.mxu0 %v8559_v19  ;;  %5458 = vmatpush.bf16.msra.mxu1 %v9327_v20  ;;  %v9867_v58 = vld [vmem:[#allocation14 + $0x12c] sm:$0xf0]  ;;  %v8560_v48 = vld [vmem:[#allocation14 + $0xeb0] sm:$0xf0]  ;;  %v10372_v42 = vld [vmem:[#allocation14 + $0x10f4] sm:$0xf0] }
 0x20f   :  { %v7598_v59 = vld [vmem:[#allocation14 + $0x6d0] sm:$0xf]  ;;  %v6831_v4 = vor.u32 %v9867_v58, %v6830_v57  ;;  %v9328_v52 = vld [vmem:[#allocation14 + $0x14b0] sm:$0xf0]  ;;  %v8563_v57 = vor.u32 %v10287_v47, %v8560_v48 }
 0x210   :  { %5418 = vmatpush.bf16.msrb.mxu2 %v7119_v23  ;;  %5431 = vmatpush.bf16.msrb.mxu3 %v7887_v24  ;;  %v10059_v60 = vld [vmem:[#allocation14 + $0x72c] sm:$0xf0]  ;;  %v7411_v23 = vor.u32 %v9999_v11, %v7408_v14  ;;  %v8179_v24 = vor.u32 %v10191_v15, %v8176_v16  ;;  %v9903_v1 = vld [vmem:[#allocation14 + $0x254] sm:$0xf] }
 0x211   :  { %v7599_v5 = vor.u32 %v10059_v60, %v7598_v59  ;;  %v6734_v7 = vld [vmem:[#allocation14 + $0x10] sm:$0xf]  ;;  %v10263_v59 = vld [vmem:[#allocation14 + $0xd94] sm:$0xf] }
 0x212   :  { %5446 = vmatpush.bf16.msra.mxu0 %v8463_v31  ;;  %5459 = vmatpush.bf16.msra.mxu1 %v9231_v32  ;;  %v9843_v8 = vld [vmem:[#allocation14 + $0x6c] sm:$0xf0]  ;;  %v8755_v31 = vor.u32 %v10335_v21, %v8752_v22  ;;  %v9523_v32 = vor.u32 %v10527_v25, %v9520_v26  ;;  %v8464_v60 = vld [vmem:[#allocation14 + $0xdf0] sm:$0xf0] }
 0x213   :  { %v7502_v9 = vld [vmem:[#allocation14 + $0x610] sm:$0xf]  ;;  %v6735_v19 = vor.u32 %v9843_v8, %v6734_v7  ;;  %v7024_v2 = vld [vmem:[#allocation14 + $0x2b0] sm:$0xf0] }
 0x214   :  { %5419 = vmatpush.bf16.msrb.mxu2 %v7023_v37  ;;  %5432 = vmatpush.bf16.msrb.mxu3 %v7791_v38  ;;  %v10035_v10 = vld [vmem:[#allocation14 + $0x66c] sm:$0xf0]  ;;  %v7315_v37 = vor.u32 %v9975_v27, %v7312_v28  ;;  %v8083_v38 = vor.u32 %v10167_v29, %v8080_v30  ;;  %v10095_v3 = vld [vmem:[#allocation14 + $0x854] sm:$0xf]  ;;  %v8950_v27 = vld [vmem:[#allocation14 + $0x1158] sm:$0xf] }
 0x215   :  { %v7503_v20 = vor.u32 %v10035_v10, %v7502_v9  ;;  %v10239_v7 = vld [vmem:[#allocation14 + $0xcd4] sm:$0xf]  ;;  %v7027_v9 = vor.u32 %v9903_v1, %v7024_v2  ;;  %v10396_v28 = vld [vmem:[#allocation14 + $0x11b4] sm:$0xf0] }
 0x216   :  { %5447 = vmatpush.bf16.msra.mxu0 %v8367_v45  ;;  %5460 = vmatpush.bf16.msra.mxu1 %v9135_v46  ;;  %v8659_v45 = vor.u32 %v10311_v33, %v8656_v34  ;;  %v9427_v46 = vor.u32 %v10503_v39, %v9424_v40  ;;  %v8368_v8 = vld [vmem:[#allocation14 + $0xd30] sm:$0xf0]  ;;  %v9718_v29 = vld [vmem:[#allocation14 + $0x1758] sm:$0xf]  ;;  %v8951_v39 = vor.u32 %v10396_v28, %v8950_v27 }
 0x217   :  { %v10431_v11 = vld [vmem:[#allocation14 + $0x12d4] sm:$0xf]  ;;  %v10588_v30 = vld [vmem:[#allocation14 + $0x17b4] sm:$0xf0] }
 0x218   :  { %5420 = vmatpush.bf16.msrb.mxu2 %v6927_v50  ;;  %5433 = vmatpush.bf16.msrb.mxu3 %v7695_v51  ;;  %v7987_v50 = vor.u32 %v10143_v43, %v7984_v44  ;;  %v10479_v51 = vld [vmem:[#allocation14 + $0x1454] sm:$0xf]  ;;  %v9719_v40 = vor.u32 %v10588_v30, %v9718_v29  ;;  %v9622_v43 = vld [vmem:[#allocation14 + $0x1698] sm:$0xf] }
 0x219   :  { %v9331_v58 = vor.u32 %v10479_v51, %v9328_v52  ;;  %v9136_v14 = vld [vmem:[#allocation14 + $0x1330] sm:$0xf0]  ;;  %v7414_v51 = vld [vmem:[#allocation14 + $0x558] sm:$0xf] }
 0x21a   :  { %5448 = vmatpush.bf16.msra.mxu0 %v8271_v61  ;;  %5461 = vmatpush.bf16.msra.mxu1 %v9039_v62  ;;  %v7123_v61 = vor.u32 %v9927_v53, %v7120_v54  ;;  %v7891_v62 = vor.u32 %v10119_v55, %v7888_v56  ;;  %v9879_v15 = vld [vmem:[#allocation14 + $0x194] sm:$0xf]  ;;  %v10012_v52 = vld [vmem:[#allocation14 + $0x5b4] sm:$0xf0]  ;;  %v8855_v55 = vor.u32 %v10372_v42, %v8854_v41 }
 0x21b   :  { %v6928_v16 = vld [vmem:[#allocation14 + $0x1f0] sm:$0xf0]  ;;  %v8182_v53 = vld [vmem:[#allocation14 + $0xb58] sm:$0xf] }
 0x21c   :  { %5421 = vmatpush.bf16.msrb.mxu2 %v6831_v4  ;;  %5434 = vmatpush.bf16.msrb.mxu3 %v7599_v5  ;;  %v7792_v4 = vld [vmem:[#allocation14 + $0x8b0] sm:$0xf0]  ;;  %v8467_v5 = vor.u32 %v10263_v59, %v8464_v60  ;;  %v10204_v54 = vld [vmem:[#allocation14 + $0xbb4] sm:$0xf0] }
 0x21d   :  { %5449 = vmatmul.bf16.vlgmr.msra.gmra.mxu0 %v10962_v12  ;;  %5462 = vmatmul.bf16.vlgmr.msra.gmra.mxu1 %v10964_v13  ;;  %v7795_v10 = vor.u32 %v10095_v3, %v7792_v4  ;;  %v10215_v21 = vld [vmem:[#allocation14 + $0xc14] sm:$0xf]  ;;  %v8758_v59 = vld [vmem:[#allocation14 + $0xfd8] sm:$0xf] }
 0x21e   :  { %5493 = vmatpush.bf16.msrb.mxu0 %v8947_v63  ;;  %5506 = vmatpush.bf16.msrb.mxu1 %v9715_v0  ;;  %v10455_v63 = vld [vmem:[#allocation14 + $0x1394] sm:$0xf]  ;;  %v10348_v60 = vld [vmem:[#allocation14 + $0x1034] sm:$0xf0] }
 0x21f   :  { %v9232_v0 = vld [vmem:[#allocation14 + $0x13f0] sm:$0xf0]  ;;  %v7318_v1 = vld [vmem:[#allocation14 + $0x498] sm:$0xf] }
 0x220   :  { %5422 = vmatpush.bf16.msrb.mxu2 %v6735_v19  ;;  %5435 = vmatpush.bf16.msrb.mxu3 %v7503_v20  ;;  %v9235_v6 = vor.u32 %v10455_v63, %v9232_v0  ;;  %v8371_v19 = vor.u32 %v10239_v7, %v8368_v8  ;;  %v9139_v20 = vor.u32 %v10431_v11, %v9136_v14  ;;  %v8272_v22 = vld [vmem:[#allocation14 + $0xc70] sm:$0xf0]  ;;  %v9526_v63 = vld [vmem:[#allocation14 + $0x15d8] sm:$0xf] }
 0x221   :  { %v9040_v26 = vld [vmem:[#allocation14 + $0x1270] sm:$0xf0]  ;;  %v10540_v0 = vld [vmem:[#allocation14 + $0x1634] sm:$0xf0] }
 0x222   :  { %5494 = vmatpush.bf16.msrb.mxu0 %v8851_v17  ;;  %5507 = vmatpush.bf16.msrb.mxu1 %v9619_v18  ;;  %v10071_v17 = vld [vmem:[#allocation14 + $0x794] sm:$0xf]  ;;  %v9988_v2 = vld [vmem:[#allocation14 + $0x4f4] sm:$0xf0] }
 0x223   :  { %5423 = vmatmul.bf16.vlgmr.msrb.gmra.mxu2 %v10968_v35  ;;  %5436 = vmatmul.bf16.vlgmr.msrb.gmra.mxu3 %v10970_v36  ;;  %v7696_v18 = vld [vmem:[#allocation14 + $0x7f0] sm:$0xf0]  ;;  %v8086_v3 = vld [vmem:[#allocation14 + $0xa98] sm:$0xf]  ;;  %v7319_v11 = vor.u32 %v9988_v2, %v7318_v1 }
 0x224   :  { %5467 = vmatpush.bf16.msra.mxu2 %v7411_v23  ;;  %5480 = vmatpush.bf16.msra.mxu3 %v8179_v24  ;;  %v10407_v23 = vld [vmem:[#allocation14 + $0x1214] sm:$0xf]  ;;  %v6931_v24 = vor.u32 %v9879_v15, %v6928_v16  ;;  %v7699_v25 = vor.u32 %v10071_v17, %v7696_v18  ;;  %v10180_v4 = vld [vmem:[#allocation14 + $0xaf4] sm:$0xf0] }
 0x225   :  { %v10047_v33 = vld [vmem:[#allocation14 + $0x6d4] sm:$0xf]  ;;  %v8662_v7 = vld [vmem:[#allocation14 + $0xf18] sm:$0xf]  ;;  %v8087_v14 = vor.u32 %v10180_v4, %v8086_v3 }
 0x226   :  { %5495 = vmatpush.bf16.msrb.mxu0 %v8755_v31  ;;  %5508 = vmatpush.bf16.msrb.mxu1 %v9523_v32  ;;  %v9855_v31 = vld [vmem:[#allocation14 + $0xd4] sm:$0xf]  ;;  %v10324_v8 = vld [vmem:[#allocation14 + $0xf74] sm:$0xf0] }
 0x227   :  { %v6832_v32 = vld [vmem:[#allocation14 + $0x130] sm:$0xf0]  ;;  %v9430_v15 = vld [vmem:[#allocation14 + $0x1518] sm:$0xf] }
 0x228   :  { %5468 = vmatpush.bf16.msra.mxu2 %v7315_v37  ;;  %5481 = vmatpush.bf16.msra.mxu3 %v8083_v38  ;;  %v7600_v34 = vld [vmem:[#allocation14 + $0x730] sm:$0xf0]  ;;  %v8275_v37 = vor.u32 %v10215_v21, %v8272_v22  ;;  %v9043_v38 = vor.u32 %v10407_v23, %v9040_v26  ;;  %v6835_v44 = vor.u32 %v9855_v31, %v6832_v32  ;;  %v10516_v16 = vld [vmem:[#allocation14 + $0x1574] sm:$0xf0] }
 0x229   :  { %v9831_v47 = vld [vmem:[#allocation14 + $0x14] sm:$0xf]  ;;  %v7222_v17 = vld [vmem:[#allocation14 + $0x3d8] sm:$0xf]  ;;  %v8663_v21 = vor.u32 %v10324_v8, %v8662_v7  ;;  %v9431_v22 = vor.u32 %v10516_v16, %v9430_v15 }
 0x22a   :  { %5496 = vmatpush.bf16.msrb.mxu0 %v8659_v45  ;;  %5509 = vmatpush.bf16.msrb.mxu1 %v9427_v46  ;;  %v7603_v45 = vor.u32 %v10047_v33, %v7600_v34  ;;  %v10564_v46 = vld [vmem:[#allocation14 + $0x16f4] sm:$0xf0]  ;;  %v6736_v48 = vld [vmem:[#allocation14 + $0x70] sm:$0xf0]  ;;  %v10998_v33 = vld [vmem:[#allocation16] sm:$0xff] }
 0x22b   :  { %v9623_v56 = vor.u32 %v10564_v46, %v9622_v43  ;;  %v9964_v18 = vld [vmem:[#allocation14 + $0x434] sm:$0xf0] }
 0x22c   :  { %5469 = vmatpush.bf16.msra.mxu2 %v7219_v49  ;;  %5482 = vmatpush.bf16.msra.mxu3 %v7987_v50  ;;  %v10023_v49 = vld [vmem:[#allocation14 + $0x614] sm:$0xf]  ;;  %v8566_v23 = vld [vmem:[#allocation14 + $0xe58] sm:$0xf] }
 0x22d   :  { %v7504_v50 = vld [vmem:[#allocation14 + $0x670] sm:$0xf0]  ;;  %v9334_v27 = vld [vmem:[#allocation14 + $0x1458] sm:$0xf] }
 0x22e   :  { %5497 = vmatpush.bf16.msrb.mxu0 %v8563_v57  ;;  %5510 = vmatpush.bf16.msrb.mxu1 %v9331_v58  ;;  %v6739_v57 = vor.u32 %v9831_v47, %v6736_v48  ;;  %v7507_v58 = vor.u32 %v10023_v49, %v7504_v50  ;;  %v10492_v28 = vld [vmem:[#allocation14 + $0x14b4] sm:$0xf0]  ;;  %v1319_v48 = vperm.slane %v10998_v33, 0 }
 0x22f   :  { %v7126_v29 = vld [vmem:[#allocation14 + $0x318] sm:$0xf] }
 0x230   :  { %5470 = vmatpush.bf16.msra.mxu2 %v7123_v61  ;;  %5483 = vmatpush.bf16.msra.mxu3 %v7891_v62  ;;  %v7415_v61 = vor.u32 %v10012_v52, %v7414_v51  ;;  %v8183_v62 = vor.u32 %v10204_v54, %v8182_v53  ;;  %v9940_v30 = vld [vmem:[#allocation14 + $0x374] sm:$0xf0] }
 0x231   :  { %v7894_v31 = vld [vmem:[#allocation14 + $0x918] sm:$0xf]  ;;  %v7127_v43 = vor.u32 %v9940_v30, %v7126_v29 }
 0x232   :  { %5498 = vmatpush.bf16.msrb.mxu0 %v8467_v5  ;;  %5511 = vmatpush.bf16.msrb.mxu1 %v9235_v6  ;;  %v8759_v5 = vor.u32 %v10348_v60, %v8758_v59  ;;  %v9527_v6 = vor.u32 %v10540_v0, %v9526_v63  ;;  %v10132_v32 = vld [vmem:[#allocation14 + $0x974] sm:$0xf0] }
 0x233   :  { %v7030_v46 = vld [vmem:[#allocation14 + $0x258] sm:$0xf] }
 0x234   :  { %5471 = vmatpush.bf16.msra.mxu2 %v7027_v9  ;;  %5484 = vmatpush.bf16.msra.mxu3 %v7795_v10  ;;  %v9916_v47 = vld [vmem:[#allocation14 + $0x2b4] sm:$0xf0] }
 0x235   :  { %v7798_v49 = vld [vmem:[#allocation14 + $0x858] sm:$0xf] }
 0x236   :  { %5499 = vmatpush.bf16.msrb.mxu0 %v8371_v19  ;;  %5512 = vmatpush.bf16.msrb.mxu1 %v9139_v20  ;;  %v7990_v19 = vld [vmem:[#allocation14 + $0x9d8] sm:$0xf] }
 0x237   :  { %v10156_v20 = vld [vmem:[#allocation14 + $0xa34] sm:$0xf0] }
 0x238   :  { %5472 = vmatpush.bf16.msra.mxu2 %v6931_v24  ;;  %5485 = vmatpush.bf16.msra.mxu3 %v7699_v25  ;;  %v10300_v24 = vld [vmem:[#allocation14 + $0xeb4] sm:$0xf0]  ;;  %v7223_v25 = vor.u32 %v9964_v18, %v7222_v17  ;;  %v7991_v26 = vor.u32 %v10156_v20, %v7990_v19  ;;  %v10384_v17 = vld [vmem:[#allocation14 + $0x115c] sm:$0xf] }
 0x239   :  { %v8567_v34 = vor.u32 %v10300_v24, %v8566_v23  ;;  %v10108_v50 = vld [vmem:[#allocation14 + $0x8b4] sm:$0xf0]  ;;  %v8952_v18 = vld [vmem:[#allocation14 + $0x11b8] sm:$0xf0] }
 0x23a   :  { %5500 = vmatpush.bf16.msrb.mxu0 %v8275_v37  ;;  %5513 = vmatpush.bf16.msrb.mxu1 %v9043_v38  ;;  %v10992_v9 = vpop.f32.mrf.mxu0  ;;  %v10994_v10 = vpop.f32.mrf.mxu1  ;;  %v9335_v37 = vor.u32 %v10492_v28, %v9334_v27  ;;  %v8470_v38 = vld [vmem:[#allocation14 + $0xd98] sm:$0xf]  ;;  %v10576_v20 = vld [vmem:[#allocation14 + $0x175c] sm:$0xf] }
 0x23b   :  { %v8374_v53 = vld [vmem:[#allocation14 + $0xcd8] sm:$0xf] }
 0x23c   :  { %5473 = vmatpush.bf16.msra.mxu2 %v6835_v44  ;;  %5486 = vmatpush.bf16.msra.mxu3 %v7603_v45  ;;  %v7895_v44 = vor.u32 %v10132_v32, %v7894_v31  ;;  %v10468_v45 = vld [vmem:[#allocation14 + $0x13f4] sm:$0xf0]  ;;  %v8955_v31 = vor.u32 %v10384_v17, %v8952_v18  ;;  %v7224_v17 = vld [vmem:[#allocation14 + $0x438] sm:$0xf0] }
 0x23d   :  { %5501 = vmatmul.bf16.vlgmr.msrb.gmra.mxu0 %v10962_v12  ;;  %5514 = vmatmul.bf16.vlgmr.msrb.gmra.mxu1 %v10964_v13  ;;  %v10252_v54 = vld [vmem:[#allocation14 + $0xd34] sm:$0xf0]  ;;  %v10144_v18 = vld [vmem:[#allocation14 + $0x9dc] sm:$0xf] }
 0x23e   :  { %5545 = vmatpush.bf16.msra.mxu0 %v8951_v39  ;;  %5558 = vmatpush.bf16.msra.mxu1 %v9719_v40  ;;  %v10276_v39 = vld [vmem:[#allocation14 + $0xdf4] sm:$0xf0]  ;;  %v8375_v3 = vor.u32 %v10252_v54, %v8374_v53  ;;  %v10336_v54 = vld [vmem:[#allocation14 + $0xfdc] sm:$0xf] }
 0x23f   :  { %v9238_v40 = vld [vmem:[#allocation14 + $0x1398] sm:$0xf]  ;;  %v8471_v51 = vor.u32 %v10276_v39, %v8470_v38 }
 0x240   :  { %5474 = vmatpush.bf16.msra.mxu2 %v6739_v57  ;;  %5487 = vmatpush.bf16.msra.mxu3 %v7507_v58  ;;  %v9239_v52 = vor.u32 %v10468_v45, %v9238_v40  ;;  %v7031_v57 = vor.u32 %v9916_v47, %v7030_v46  ;;  %v7799_v58 = vor.u32 %v10108_v50, %v7798_v49  ;;  %v9142_v59 = vld [vmem:[#allocation14 + $0x12d8] sm:$0xf]  ;;  %v9624_v40 = vld [vmem:[#allocation14 + $0x16f8] sm:$0xf0] }
 0x241   :  { %v10444_v60 = vld [vmem:[#allocation14 + $0x1334] sm:$0xf0]  ;;  %v7416_v45 = vld [vmem:[#allocation14 + $0x5b8] sm:$0xf0] }
 0x242   :  { %5546 = vmatpush.bf16.msra.mxu0 %v8855_v55  ;;  %5559 = vmatpush.bf16.msra.mxu1 %v9623_v56  ;;  %v5244_v41 = vpop.f32.mrf.mxu0  ;;  %v5257_v42 = vpop.f32.mrf.mxu1  ;;  %v9892_v63 = vld [vmem:[#allocation14 + $0x1f4] sm:$0xf0]  ;;  %v9143_v4 = vor.u32 %v10444_v60, %v9142_v59  ;;  %v10192_v46 = vld [vmem:[#allocation14 + $0xb5c] sm:$0xf] }
 0x243   :  { %5475 = vmatmul.bf16.vlgmr.msra.gmra.mxu2 %v10968_v35  ;;  %5488 = vmatmul.bf16.vlgmr.msra.gmra.mxu3 %v10970_v36  ;;  %v7702_v0 = vld [vmem:[#allocation14 + $0x798] sm:$0xf]  ;;  %v8184_v47 = vld [vmem:[#allocation14 + $0xbb8] sm:$0xf0] }
 0x244   :  { %5519 = vmatpush.bf16.msrb.mxu2 %v7415_v61  ;;  %5532 = vmatpush.bf16.msrb.mxu3 %v8183_v62  ;;  %v6934_v61 = vld [vmem:[#allocation14 + $0x198] sm:$0xf]  ;;  %v9528_v59 = vld [vmem:[#allocation14 + $0x1638] sm:$0xf0] }
 0x245   :  { %v10084_v1 = vld [vmem:[#allocation14 + $0x7f4] sm:$0xf0]  ;;  %v9976_v60 = vld [vmem:[#allocation14 + $0x49c] sm:$0xf] }
 0x246   :  { %5547 = vmatpush.bf16.msra.mxu0 %v8759_v5  ;;  %5560 = vmatpush.bf16.msra.mxu1 %v9527_v6  ;;  %v5216_v55 = vpop.f32.mrf.mxu2  ;;  %v5229_v56 = vpop.f32.mrf.mxu3  ;;  %v8278_v5 = vld [vmem:[#allocation14 + $0xc18] sm:$0xf]  ;;  %v7703_v15 = vor.u32 %v10084_v1, %v7702_v0 }
 0x247   :  { %v5217_v62 = vadd.f32 %v5216_v55, %v1319_v48  ;;  %v10228_v6 = vld [vmem:[#allocation14 + $0xc74] sm:$0xf0]  ;;  %v8760_v55 = vld [vmem:[#allocation14 + $0x1038] sm:$0xf0] }
 0x248   :  { %5520 = vmatpush.bf16.msrb.mxu2 %v7319_v11  ;;  %5533 = vmatpush.bf16.msrb.mxu3 %v8087_v14  ;;  %v9046_v7 = vld [vmem:[#allocation14 + $0x1218] sm:$0xf]  ;;  %v6935_v14 = vor.u32 %v9892_v63, %v6934_v61  ;;  %v8279_v27 = vor.u32 %v10228_v6, %v8278_v5  ;;  %v7320_v61 = vld [vmem:[#allocation14 + $0x4f8] sm:$0xf0] }
 0x249   :  { %v5230_v2 = vadd.f32 %v5229_v56, %v5217_v62  ;;  %v10420_v16 = vld [vmem:[#allocation14 + $0x1274] sm:$0xf0]  ;;  %v10168_v62 = vld [vmem:[#allocation14 + $0xa9c] sm:$0xf]  ;;  %v7323_v6 = vor.u32 %v9976_v60, %v7320_v61 }
 0x24a   :  { %5548 = vmatpush.bf16.msra.mxu0 %v8663_v21  ;;  %5561 = vmatpush.bf16.msra.mxu1 %v9431_v22  ;;  %v11001_v8 = vpop.f32.mrf.mxu0  ;;  %v11003_v11 = vpop.f32.mrf.mxu1  ;;  %v9720_v21 = vld [vmem:[#allocation14 + $0x17b8] sm:$0xf0]  ;;  %v6838_v22 = vld [vmem:[#allocation14 + $0xd8] sm:$0xf]  ;;  %v9047_v28 = vor.u32 %v10420_v16, %v9046_v7 }
 0x24b   :  { %v5243_v19 = vadd.f32 %v10992_v9, %v5230_v2  ;;  %v9868_v23 = vld [vmem:[#allocation14 + $0x134] sm:$0xf0]  ;;  %v9723_v32 = vor.u32 %v10576_v20, %v9720_v21  ;;  %v10360_v9 = vld [vmem:[#allocation14 + $0x109c] sm:$0xf]  ;;  %v8763_v2 = vor.u32 %v10336_v54, %v8760_v55 }
 0x24c   :  { %5521 = vmatpush.bf16.msrb.mxu2 %v7223_v25  ;;  %5534 = vmatpush.bf16.msrb.mxu3 %v7991_v26  ;;  %v7606_v24 = vld [vmem:[#allocation14 + $0x6d8] sm:$0xf]  ;;  %v6839_v38 = vor.u32 %v9868_v23, %v6838_v22  ;;  %v8088_v63 = vld [vmem:[#allocation14 + $0xaf8] sm:$0xf0] }
 0x24d   :  { %v10060_v25 = vld [vmem:[#allocation14 + $0x734] sm:$0xf0]  ;;  %v11007_v26 = vadd.f32 %v10994_v10, %v5243_v19  ;;  %v8664_v5 = vld [vmem:[#allocation14 + $0xf78] sm:$0xf0]  ;;  %v8091_v7 = vor.u32 %v10168_v62, %v8088_v63 }
 0x24e   :  { %5549 = vmatpush.bf16.msra.mxu0 %v8567_v34  ;;  %5562 = vmatpush.bf16.msra.mxu1 %v9335_v37  ;;  %v5218_v29 = vpop.f32.mrf.mxu2  ;;  %v5231_v30 = vpop.f32.mrf.mxu3  ;;  %v8856_v34 = vld [vmem:[#allocation14 + $0x10f8] sm:$0xf0]  ;;  %v7607_v39 = vor.u32 %v10060_v25, %v7606_v24  ;;  %v6742_v41 = vld [vmem:[#allocation14 + $0x18] sm:$0xf] }
 0x24f   :  { %v10552_v37 = vld [vmem:[#allocation14 + $0x169c] sm:$0xf]  ;;  %v9844_v42 = vld [vmem:[#allocation14 + $0x74] sm:$0xf0]  ;;  %v8859_v50 = vor.u32 %v10360_v9, %v8856_v34 }
 0x250   :  { %5522 = vmatpush.bf16.msrb.mxu2 %v7127_v43  ;;  %5535 = vmatpush.bf16.msrb.mxu3 %v7895_v44  ;;  %v7510_v10 = vld [vmem:[#allocation14 + $0x618] sm:$0xf]  ;;  %v10000_v44 = vld [vmem:[#allocation14 + $0x55c] sm:$0xf] }
 0x251   :  { %v10036_v43 = vld [vmem:[#allocation14 + $0x674] sm:$0xf0]  ;;  %v7419_v56 = vor.u32 %v10000_v44, %v7416_v45  ;;  %v9952_v16 = vld [vmem:[#allocation14 + $0x3dc] sm:$0xf] }
 0x252   :  { %5550 = vmatpush.bf16.msra.mxu0 %v8471_v51  ;;  %5563 = vmatpush.bf16.msra.mxu1 %v9239_v52  ;;  %v5296_v48 = vpop.f32.mrf.mxu0  ;;  %v5309_v49 = vpop.f32.mrf.mxu1  ;;  %v9627_v51 = vor.u32 %v10552_v37, %v9624_v40  ;;  %v6743_v52 = vor.u32 %v9844_v42, %v6742_v41  ;;  %v7511_v53 = vor.u32 %v10036_v43, %v7510_v10  ;;  %v7992_v19 = vld [vmem:[#allocation14 + $0xa38] sm:$0xf0] }
 0x253   :  { %v10288_v24 = vld [vmem:[#allocation14 + $0xe5c] sm:$0xf] }
 0x254   :  { %5523 = vmatpush.bf16.msrb.mxu2 %v7031_v57  ;;  %5536 = vmatpush.bf16.msrb.mxu3 %v7799_v58  ;;  %v8187_v57 = vor.u32 %v10192_v46, %v8184_v47  ;;  %v10528_v58 = vld [vmem:[#allocation14 + $0x15dc] sm:$0xf] }
 0x255   :  { %v8568_v25 = vld [vmem:[#allocation14 + $0xeb8] sm:$0xf0] }
 0x256   :  { %5551 = vmatpush.bf16.msra.mxu0 %v8375_v3  ;;  %5564 = vmatpush.bf16.msra.mxu1 %v9143_v4  ;;  %v11011_v0 = vpop.f32.mrf.mxu2  ;;  %v11013_v1 = vpop.f32.mrf.mxu3  ;;  %v9531_v3 = vor.u32 %v10528_v58, %v9528_v59  ;;  %v10312_v4 = vld [vmem:[#allocation14 + $0xf1c] sm:$0xf] }
 0x257   :  { %v8667_v22 = vor.u32 %v10312_v4, %v8664_v5  ;;  %v10480_v29 = vld [vmem:[#allocation14 + $0x145c] sm:$0xf] }
 0x258   :  { %5524 = vmatpush.bf16.msrb.mxu2 %v6935_v14  ;;  %5537 = vmatpush.bf16.msrb.mxu3 %v7703_v15  ;;  %v10504_v14 = vld [vmem:[#allocation14 + $0x151c] sm:$0xf] }
 0x259   :  { %v9432_v15 = vld [vmem:[#allocation14 + $0x1578] sm:$0xf0] }
 0x25a   :  { %5552 = vmatpush.bf16.msra.mxu0 %v8279_v27  ;;  %5565 = vmatpush.bf16.msra.mxu1 %v9047_v28  ;;  %v11017_v20 = vpop.f32.mrf.mxu0  ;;  %v11019_v21 = vpop.f32.mrf.mxu1  ;;  %v9435_v23 = vor.u32 %v10504_v14, %v9432_v15  ;;  %v7227_v27 = vor.u32 %v9952_v16, %v7224_v17  ;;  %v7995_v28 = vor.u32 %v10144_v18, %v7992_v19  ;;  %v9336_v30 = vld [vmem:[#allocation14 + $0x14b8] sm:$0xf0]  ;;  %v8958_v18 = vld [vmem:[#allocation14 + $0x1160] sm:$0xf] }
 0x25b   :  { %v10120_v9 = vld [vmem:[#allocation14 + $0x91c] sm:$0xf]  ;;  %v9339_v40 = vor.u32 %v10480_v29, %v9336_v30  ;;  %v10397_v19 = vld [vmem:[#allocation14 + $0x11bc] sm:$0xf0] }
 0x25c   :  { %5525 = vmatpush.bf16.msrb.mxu2 %v6839_v38  ;;  %5538 = vmatpush.bf16.msrb.mxu3 %v7607_v39  ;;  %v7896_v34 = vld [vmem:[#allocation14 + $0x978] sm:$0xf0]  ;;  %v8571_v39 = vor.u32 %v10288_v24, %v8568_v25 }
 0x25d   :  { %5553 = vmatmul.bf16.vlgmr.msra.gmra.mxu0 %v10962_v12  ;;  %5566 = vmatmul.bf16.vlgmr.msra.gmra.mxu1 %v10964_v13  ;;  %v10264_v41 = vld [vmem:[#allocation14 + $0xd9c] sm:$0xf]  ;;  %v7899_v43 = vor.u32 %v10120_v9, %v7896_v34  ;;  %v8862_v9 = vld [vmem:[#allocation14 + $0x10a0] sm:$0xf] }
 0x25e   :  { %5597 = vmatpush.bf16.msrb.mxu0 %v8955_v31  ;;  %5610 = vmatpush.bf16.msrb.mxu1 %v9723_v32  ;;  %v9928_v31 = vld [vmem:[#allocation14 + $0x31c] sm:$0xf]  ;;  %v5270_v37 = vpop.f32.mrf.mxu2  ;;  %v5283_v38 = vpop.f32.mrf.mxu3  ;;  %v10373_v34 = vld [vmem:[#allocation14 + $0x10fc] sm:$0xf0] }
 0x25f   :  { %v7128_v32 = vld [vmem:[#allocation14 + $0x378] sm:$0xf0]  ;;  %v9630_v37 = vld [vmem:[#allocation14 + $0x16a0] sm:$0xf] }
 0x260   :  { %5526 = vmatpush.bf16.msrb.mxu2 %v6743_v52  ;;  %5539 = vmatpush.bf16.msrb.mxu3 %v7511_v53  ;;  %v8472_v42 = vld [vmem:[#allocation14 + $0xdf8] sm:$0xf0]  ;;  %v7131_v10 = vor.u32 %v9928_v31, %v7128_v32  ;;  %v8959_v31 = vor.u32 %v10397_v19, %v8958_v18  ;;  %v9438_v18 = vld [vmem:[#allocation14 + $0x1520] sm:$0xf] }
 0x261   :  { %v10456_v44 = vld [vmem:[#allocation14 + $0x139c] sm:$0xf]  ;;  %v8475_v52 = vor.u32 %v10264_v41, %v8472_v42  ;;  %v10517_v19 = vld [vmem:[#allocation14 + $0x157c] sm:$0xf0] }
 0x262   :  { %5598 = vmatpush.bf16.msrb.mxu0 %v8859_v50  ;;  %5611 = vmatpush.bf16.msrb.mxu1 %v9627_v51  ;;  %v9240_v45 = vld [vmem:[#allocation14 + $0x13f8] sm:$0xf0]  ;;  %v5348_v50 = vpop.f32.mrf.mxu0  ;;  %v5361_v51 = vpop.f32.mrf.mxu1 }
 0x263   :  { %5527 = vmatmul.bf16.vlgmr.msrb.gmra.mxu2 %v10968_v35  ;;  %5540 = vmatmul.bf16.vlgmr.msrb.gmra.mxu3 %v10970_v36  ;;  %v9904_v46 = vld [vmem:[#allocation14 + $0x25c] sm:$0xf]  ;;  %v9243_v53 = vor.u32 %v10456_v44, %v9240_v45  ;;  %v7422_v44 = vld [vmem:[#allocation14 + $0x560] sm:$0xf]  ;;  %v1320_v50 = vperm.slane %v10998_v33, 1  ;;  %v8863_v51 = vor.u32 %v10373_v34, %v8862_v9 }
 0x264   :  { %5571 = vmatpush.bf16.msra.mxu2 %v7419_v56  ;;  %5584 = vmatpush.bf16.msra.mxu3 %v8187_v57  ;;  %v7032_v47 = vld [vmem:[#allocation14 + $0x2b8] sm:$0xf0]  ;;  %v10301_v9 = vld [vmem:[#allocation14 + $0xebc] sm:$0xf0] }
 0x265   :  { %v10096_v48 = vld [vmem:[#allocation14 + $0x85c] sm:$0xf]  ;;  %v7035_v56 = vor.u32 %v9904_v46, %v7032_v47  ;;  %v10013_v47 = vld [vmem:[#allocation14 + $0x5bc] sm:$0xf0] }
 0x266   :  { %5599 = vmatpush.bf16.msrb.mxu0 %v8763_v2  ;;  %5612 = vmatpush.bf16.msrb.mxu1 %v9531_v3  ;;  %v7800_v49 = vld [vmem:[#allocation14 + $0x8b8] sm:$0xf0]  ;;  %v11021_v2 = vpop.f32.mrf.mxu2  ;;  %v11023_v3 = vpop.f32.mrf.mxu3 }
 0x267   :  { %v10240_v54 = vld [vmem:[#allocation14 + $0xcdc] sm:$0xf]  ;;  %v7803_v57 = vor.u32 %v10096_v48, %v7800_v49  ;;  %v8190_v48 = vld [vmem:[#allocation14 + $0xb60] sm:$0xf] }
 0x268   :  { %5572 = vmatpush.bf16.msra.mxu2 %v7323_v6  ;;  %5585 = vmatpush.bf16.msra.mxu3 %v8091_v7  ;;  %v8376_v55 = vld [vmem:[#allocation14 + $0xd38] sm:$0xf0]  ;;  %v10205_v49 = vld [vmem:[#allocation14 + $0xbbc] sm:$0xf0] }
 0x269   :  { %v10432_v58 = vld [vmem:[#allocation14 + $0x12dc] sm:$0xf]  ;;  %v8379_v4 = vor.u32 %v10240_v54, %v8376_v55  ;;  %v8766_v55 = vld [vmem:[#allocation14 + $0xfe0] sm:$0xf] }
 0x26a   :  { %5600 = vmatpush.bf16.msrb.mxu0 %v8667_v22  ;;  %5613 = vmatpush.bf16.msrb.mxu1 %v9435_v23  ;;  %v9144_v59 = vld [vmem:[#allocation14 + $0x1338] sm:$0xf0]  ;;  %v9726_v22 = vld [vmem:[#allocation14 + $0x1760] sm:$0xf] }
 0x26b   :  { %v9880_v60 = vld [vmem:[#allocation14 + $0x19c] sm:$0xf]  ;;  %v9147_v5 = vor.u32 %v10432_v58, %v9144_v59  ;;  %v10589_v23 = vld [vmem:[#allocation14 + $0x17bc] sm:$0xf0]  ;;  %v8191_v58 = vor.u32 %v10205_v49, %v8190_v48 }
 0x26c   :  { %5573 = vmatpush.bf16.msra.mxu2 %v7227_v27  ;;  %5586 = vmatpush.bf16.msra.mxu3 %v7995_v28  ;;  %v6936_v61 = vld [vmem:[#allocation14 + $0x1f8] sm:$0xf0]  ;;  %v9727_v32 = vor.u32 %v10589_v23, %v9726_v22  ;;  %v9534_v59 = vld [vmem:[#allocation14 + $0x15e0] sm:$0xf] }
 0x26d   :  { %v10072_v62 = vld [vmem:[#allocation14 + $0x79c] sm:$0xf]  ;;  %v6939_v15 = vor.u32 %v9880_v60, %v6936_v61  ;;  %v10541_v60 = vld [vmem:[#allocation14 + $0x163c] sm:$0xf0] }
 0x26e   :  { %5601 = vmatpush.bf16.msrb.mxu0 %v8571_v39  ;;  %5614 = vmatpush.bf16.msrb.mxu1 %v9339_v40  ;;  %v7704_v63 = vld [vmem:[#allocation14 + $0x7f8] sm:$0xf0]  ;;  %v10565_v40 = vld [vmem:[#allocation14 + $0x16fc] sm:$0xf0]  ;;  %v5322_v45 = vpop.f32.mrf.mxu2  ;;  %v5335_v46 = vpop.f32.mrf.mxu3 }
 0x26f   :  { %v10216_v6 = vld [vmem:[#allocation14 + $0xc1c] sm:$0xf]  ;;  %v7707_v16 = vor.u32 %v10072_v62, %v7704_v63  ;;  %v7326_v61 = vld [vmem:[#allocation14 + $0x4a0] sm:$0xf] }
 0x270   :  { %5574 = vmatpush.bf16.msra.mxu2 %v7131_v10  ;;  %5587 = vmatpush.bf16.msra.mxu3 %v7899_v43  ;;  %v8280_v7 = vld [vmem:[#allocation14 + $0xc78] sm:$0xf0]  ;;  %v9989_v62 = vld [vmem:[#allocation14 + $0x4fc] sm:$0xf0] }
 0x271   :  { %v10408_v14 = vld [vmem:[#allocation14 + $0x121c] sm:$0xf]  ;;  %v8283_v29 = vor.u32 %v10216_v6, %v8280_v7  ;;  %v8094_v63 = vld [vmem:[#allocation14 + $0xaa0] sm:$0xf]  ;;  %v9535_v7 = vor.u32 %v10541_v60, %v9534_v59 }
 0x272   :  { %5602 = vmatpush.bf16.msrb.mxu0 %v8475_v52  ;;  %5615 = vmatpush.bf16.msrb.mxu1 %v9243_v53  ;;  %v9048_v17 = vld [vmem:[#allocation14 + $0x1278] sm:$0xf0]  ;;  %v9631_v52 = vor.u32 %v10565_v40, %v9630_v37  ;;  %v7230_v22 = vld [vmem:[#allocation14 + $0x3e0] sm:$0xf] }
 0x273   :  { %v9856_v24 = vld [vmem:[#allocation14 + $0xdc] sm:$0xf]  ;;  %v9051_v30 = vor.u32 %v10408_v14, %v9048_v17  ;;  %v8670_v14 = vld [vmem:[#allocation14 + $0xf20] sm:$0xf] }
 0x274   :  { %5575 = vmatpush.bf16.msra.mxu2 %v7035_v56  ;;  %5588 = vmatpush.bf16.msra.mxu3 %v7803_v57  ;;  %v6840_v25 = vld [vmem:[#allocation14 + $0x138] sm:$0xf0]  ;;  %v10349_v56 = vld [vmem:[#allocation14 + $0x103c] sm:$0xf0]  ;;  %v7423_v57 = vor.u32 %v10013_v47, %v7422_v44 }
 0x275   :  { %v10048_v27 = vld [vmem:[#allocation14 + $0x6dc] sm:$0xf]  ;;  %v6843_v38 = vor.u32 %v9856_v24, %v6840_v25  ;;  %v8767_v6 = vor.u32 %v10349_v56, %v8766_v55  ;;  %v7998_v25 = vld [vmem:[#allocation14 + $0x9e0] sm:$0xf] }
 0x276   :  { %v7608_v28 = vld [vmem:[#allocation14 + $0x738] sm:$0xf0]  ;;  %5603 = vmatpush.bf16.msrb.mxu0 %v8379_v4  ;;  %5616 = vmatpush.bf16.msrb.mxu1 %v9147_v5  ;;  %v10181_v4 = vld [vmem:[#allocation14 + $0xafc] sm:$0xf0]  ;;  %v5269_v5 = vadd.f32 %v11011_v0, %v1320_v50 }
 0x277   :  { %v7611_v39 = vor.u32 %v10048_v27, %v7608_v28  ;;  %v9832_v41 = vld [vmem:[#allocation14 + $0x1c] sm:$0xf]  ;;  %v8095_v17 = vor.u32 %v10181_v4, %v8094_v63  ;;  %v9965_v0 = vld [vmem:[#allocation14 + $0x43c] sm:$0xf0] }
 0x278   :  { %5576 = vmatpush.bf16.msra.mxu2 %v6939_v15  ;;  %5589 = vmatpush.bf16.msra.mxu3 %v7707_v16  ;;  %v6744_v42 = vld [vmem:[#allocation14 + $0x78] sm:$0xf0]  ;;  %v10325_v15 = vld [vmem:[#allocation14 + $0xf7c] sm:$0xf0]  ;;  %v7327_v16 = vor.u32 %v9989_v62, %v7326_v61  ;;  %v5282_v28 = vadd.f32 %v11013_v1, %v5269_v5  ;;  %v7231_v34 = vor.u32 %v9965_v0, %v7230_v22 }
 0x279   :  { %v10024_v10 = vld [vmem:[#allocation14 + $0x61c] sm:$0xf]  ;;  %v6747_v53 = vor.u32 %v9832_v41, %v6744_v42  ;;  %v10157_v27 = vld [vmem:[#allocation14 + $0xa3c] sm:$0xf0] }
 0x27a   :  { %v7512_v43 = vld [vmem:[#allocation14 + $0x678] sm:$0xf0]  ;;  %5604 = vmatpush.bf16.msrb.mxu0 %v8283_v29  ;;  %5617 = vmatpush.bf16.msrb.mxu1 %v9051_v30  ;;  %v11029_v23 = vpop.f32.mrf.mxu0  ;;  %v11031_v24 = vpop.f32.mrf.mxu1  ;;  %v1321_v29 = vperm.slane %v10998_v33, 2  ;;  %v8671_v30 = vor.u32 %v10325_v15, %v8670_v14  ;;  %v7999_v37 = vor.u32 %v10157_v27, %v7998_v25  ;;  %v7134_v40 = vld [vmem:[#allocation14 + $0x320] sm:$0xf] }
 0x27b   :  { %v7515_v54 = vor.u32 %v10024_v10, %v7512_v43  ;;  %v9941_v1 = vld [vmem:[#allocation14 + $0x37c] sm:$0xf0]  ;;  %v5295_v10 = vadd.f32 %v11001_v8, %v5282_v28 }
 0x27c   :  { %5577 = vmatpush.bf16.msra.mxu2 %v6843_v38  ;;  %5590 = vmatpush.bf16.msra.mxu3 %v7611_v39  ;;  %v9342_v38 = vld [vmem:[#allocation14 + $0x1460] sm:$0xf]  ;;  %v5321_v43 = vadd.f32 %v11021_v2, %v1321_v29  ;;  %v7135_v48 = vor.u32 %v9941_v1, %v7134_v40 }
 0x27d   :  { %5605 = vmatmul.bf16.vlgmr.msrb.gmra.mxu0 %v10962_v12  ;;  %5618 = vmatmul.bf16.vlgmr.msrb.gmra.mxu1 %v10964_v13  ;;  %v10493_v39 = vld [vmem:[#allocation14 + $0x14bc] sm:$0xf0]  ;;  %v11040_v2 = vadd.f32 %v11003_v11, %v5295_v10 }
 0x27e   :  { %5649 = vmatpush.bf16.msra.mxu0 %v8959_v31  ;;  %5662 = vmatpush.bf16.msra.mxu1 %v9727_v32  ;;  %v9439_v31 = vor.u32 %v10517_v19, %v9438_v18  ;;  %v8574_v32 = vld [vmem:[#allocation14 + $0xe60] sm:$0xf]  ;;  %v9343_v45 = vor.u32 %v10493_v39, %v9342_v38  ;;  %v9728_v38 = vld [vmem:[#allocation14 + $0x17c0] sm:$0xf0] }
 0x27f   :  { %v7902_v41 = vld [vmem:[#allocation14 + $0x920] sm:$0xf]  ;;  %v8575_v44 = vor.u32 %v10301_v9, %v8574_v32  ;;  %v10385_v9 = vld [vmem:[#allocation14 + $0x1164] sm:$0xf] }
 0x280   :  { %5578 = vmatpush.bf16.msra.mxu2 %v6747_v53  ;;  %5591 = vmatpush.bf16.msra.mxu3 %v7515_v54  ;;  %v10133_v42 = vld [vmem:[#allocation14 + $0x97c] sm:$0xf0] }
 0x281   :  { %v8478_v46 = vld [vmem:[#allocation14 + $0xda0] sm:$0xf]  ;;  %v7903_v49 = vor.u32 %v10133_v42, %v7902_v41 }
 0x282   :  { %5650 = vmatpush.bf16.msra.mxu0 %v8863_v51  ;;  %5663 = vmatpush.bf16.msra.mxu1 %v9631_v52  ;;  %v10277_v47 = vld [vmem:[#allocation14 + $0xdfc] sm:$0xf0]  ;;  %v5400_v53 = vpop.f32.mrf.mxu0  ;;  %v5413_v54 = vpop.f32.mrf.mxu1 }
 0x283   :  { %5579 = vmatmul.bf16.vlgmr.msra.gmra.mxu2 %v10968_v35  ;;  %5592 = vmatmul.bf16.vlgmr.msra.gmra.mxu3 %v10970_v36  ;;  %v9246_v50 = vld [vmem:[#allocation14 + $0x13a0] sm:$0xf]  ;;  %v8479_v59 = vor.u32 %v10277_v47, %v8478_v46 }
 0x284   :  { %5623 = vmatpush.bf16.msrb.mxu2 %v7423_v57  ;;  %5636 = vmatpush.bf16.msrb.mxu3 %v8191_v58  ;;  %v10469_v51 = vld [vmem:[#allocation14 + $0x13fc] sm:$0xf0]  ;;  %v5334_v57 = vadd.f32 %v11023_v3, %v5321_v43  ;;  %v1322_v58 = vperm.slane %v10998_v33, 3 }
 0x285   :  { %v7038_v52 = vld [vmem:[#allocation14 + $0x260] sm:$0xf]  ;;  %v9247_v60 = vor.u32 %v10469_v51, %v9246_v50 }
 0x286   :  { %5651 = vmatpush.bf16.msra.mxu0 %v8767_v6  ;;  %5664 = vmatpush.bf16.msra.mxu1 %v9535_v7  ;;  %v9917_v55 = vld [vmem:[#allocation14 + $0x2bc] sm:$0xf0]  ;;  %v5372_v14 = vpop.f32.mrf.mxu2  ;;  %v5385_v11 = vpop.f32.mrf.mxu3  ;;  %v5347_v18 = vadd.f32 %v11017_v20, %v5334_v57  ;;  %v10001_v57 = vld [vmem:[#allocation14 + $0x564] sm:$0xf] }
 0x287   :  { %v7806_v56 = vld [vmem:[#allocation14 + $0x860] sm:$0xf]  ;;  %v7039_v63 = vor.u32 %v9917_v55, %v7038_v52  ;;  %v5373_v19 = vadd.f32 %v5372_v14, %v1322_v58  ;;  %v7424_v58 = vld [vmem:[#allocation14 + $0x5c0] sm:$0xf0] }
 0x288   :  { %5624 = vmatpush.bf16.msrb.mxu2 %v7327_v16  ;;  %5637 = vmatpush.bf16.msrb.mxu3 %v8095_v17  ;;  %v10109_v8 = vld [vmem:[#allocation14 + $0x8bc] sm:$0xf0]  ;;  %v6479_v17 = vrot.slane %v11040_v2, 6  ;;  %v5360_v20 = vadd.f32 %v11019_v21, %v5347_v18  ;;  %v10553_v21 = vld [vmem:[#allocation14 + $0x16a4] sm:$0xf] }
 0x289   :  { %v8382_v61 = vld [vmem:[#allocation14 + $0xce0] sm:$0xf]  ;;  %v7807_v4 = vor.u32 %v10109_v8, %v7806_v56  ;;  %v5386_v29 = vadd.f32 %v5385_v11, %v5373_v19  ;;  %v8768_v14 = vld [vmem:[#allocation14 + $0x1040] sm:$0xf0]  ;;  %v7427_v11 = vor.u32 %v10001_v57, %v7424_v58  ;;  %v1323_v58 = vperm.slane %v10998_v33, 4 }
 0x28a   :  { %5652 = vmatpush.bf16.msra.mxu0 %v8671_v30  ;;  %5665 = vmatpush.bf16.msra.mxu1 %v9439_v31  ;;  %v10253_v62 = vld [vmem:[#allocation14 + $0xd3c] sm:$0xf0]  ;;  %v6480_v56 = vrot.slane %v5360_v20, 4  ;;  %v10169_v18 = vld [vmem:[#allocation14 + $0xaa4] sm:$0xf] }
 0x28b   :  { %v9150_v5 = vld [vmem:[#allocation14 + $0x12e0] sm:$0xf]  ;;  %v8383_v22 = vor.u32 %v10253_v62, %v8382_v61  ;;  %v5399_v40 = vadd.f32 %v11029_v23, %v5386_v29  ;;  %v8096_v19 = vld [vmem:[#allocation14 + $0xb00] sm:$0xf0] }
 0x28c   :  { %5625 = vmatpush.bf16.msrb.mxu2 %v7231_v34  ;;  %5638 = vmatpush.bf16.msrb.mxu3 %v7999_v37  ;;  %v10445_v6 = vld [vmem:[#allocation14 + $0x133c] sm:$0xf0]  ;;  %v8960_v34 = vld [vmem:[#allocation14 + $0x11c0] sm:$0xf0]  ;;  %v8099_v29 = vor.u32 %v10169_v18, %v8096_v19 }
 0x28d   :  { %v6942_v7 = vld [vmem:[#allocation14 + $0x1a0] sm:$0xf]  ;;  %v9151_v0 = vor.u32 %v10445_v6, %v9150_v5  ;;  %v10577_v37 = vld [vmem:[#allocation14 + $0x1764] sm:$0xf]  ;;  %v8963_v46 = vor.u32 %v10385_v9, %v8960_v34 }
 0x28e   :  { %5653 = vmatpush.bf16.msra.mxu0 %v8575_v44  ;;  %5666 = vmatpush.bf16.msra.mxu1 %v9343_v45  ;;  %v9893_v15 = vld [vmem:[#allocation14 + $0x1fc] sm:$0xf0]  ;;  %v10361_v44 = vld [vmem:[#allocation14 + $0x10a4] sm:$0xf]  ;;  %v5412_v45 = vadd.f32 %v11031_v24, %v5399_v40  ;;  %v9731_v47 = vor.u32 %v10577_v37, %v9728_v38  ;;  %v5374_v51 = vpop.f32.mrf.mxu2  ;;  %v5387_v52 = vpop.f32.mrf.mxu3  ;;  %v6498_v24 = vsel %vm6497_vm2, %v11007_v26, %v6479_v17 }
 0x28f   :  { %v7710_v16 = vld [vmem:[#allocation14 + $0x7a0] sm:$0xf]  ;;  %v6943_v30 = vor.u32 %v9893_v15, %v6942_v7  ;;  %v10337_v7 = vld [vmem:[#allocation14 + $0xfe4] sm:$0xf] }
 0x290   :  { %5626 = vmatpush.bf16.msrb.mxu2 %v7135_v48  ;;  %5639 = vmatpush.bf16.msrb.mxu3 %v7903_v49  ;;  %v10085_v3 = vld [vmem:[#allocation14 + $0x7fc] sm:$0xf0]  ;;  %v8864_v48 = vld [vmem:[#allocation14 + $0x1100] sm:$0xf0]  ;;  %v6481_v8 = vrot.slane %v5412_v45, 2 }
 0x291   :  { %v8286_v25 = vld [vmem:[#allocation14 + $0xc20] sm:$0xf]  ;;  %v7711_v31 = vor.u32 %v10085_v3, %v7710_v16  ;;  %v9632_v49 = vld [vmem:[#allocation14 + $0x1700] sm:$0xf0]  ;;  %v8867_v62 = vor.u32 %v10361_v44, %v8864_v48 }
 0x292   :  { %5654 = vmatpush.bf16.msra.mxu0 %v8479_v59  ;;  %5667 = vmatpush.bf16.msra.mxu1 %v9247_v60  ;;  %v10229_v27 = vld [vmem:[#allocation14 + $0xc7c] sm:$0xf0]  ;;  %v10193_v59 = vld [vmem:[#allocation14 + $0xb64] sm:$0xf]  ;;  %v6500_v61 = vsel %vm6499_vm3, %v6480_v56, %v6481_v8 }
 0x293   :  { %v9054_v28 = vld [vmem:[#allocation14 + $0x1220] sm:$0xf]  ;;  %v8287_v10 = vor.u32 %v10229_v27, %v8286_v25  ;;  %v8192_v60 = vld [vmem:[#allocation14 + $0xbc0] sm:$0xf0] }
 0x294   :  { %5627 = vmatpush.bf16.msrb.mxu2 %v7039_v63  ;;  %5640 = vmatpush.bf16.msrb.mxu3 %v7807_v4  ;;  %v10421_v32 = vld [vmem:[#allocation14 + $0x127c] sm:$0xf0]  ;;  %v9635_v63 = vor.u32 %v10553_v21, %v9632_v49  ;;  %v6502_v4 = vsel %vm6501_vm4, %v6498_v24, %v6500_v61  ;;  %v10529_v26 = vld [vmem:[#allocation14 + $0x15e4] sm:$0xf]  ;;  %v8195_v15 = vor.u32 %v10193_v59, %v8192_v60 }
 0x295   :  { %v6846_v39 = vld [vmem:[#allocation14 + $0xe0] sm:$0xf]  ;;  %v9055_v43 = vor.u32 %v10421_v32, %v9054_v28  ;;  %6524 = vst [vmem:[#allocation17] sm:$0xff] %v6502_v4  ;;  %v9536_v16 = vld [vmem:[#allocation14 + $0x1640] sm:$0xf0] }
 0x296   :  { %v9869_v1 = vld [vmem:[#allocation14 + $0x13c] sm:$0xf0]  ;;  %5655 = vmatpush.bf16.msra.mxu0 %v8383_v22  ;;  %5668 = vmatpush.bf16.msra.mxu1 %v9151_v0  ;;  %v9977_v3 = vld [vmem:[#allocation14 + $0x4a4] sm:$0xf]  ;;  %v8771_v22 = vor.u32 %v10337_v7, %v8768_v14  ;;  %v9539_v0 = vor.u32 %v10529_v26, %v9536_v16 }
 0x297   :  { %v7614_v41 = vld [vmem:[#allocation14 + $0x6e0] sm:$0xf]  ;;  %v6847_v23 = vor.u32 %v9869_v1, %v6846_v39  ;;  %v7328_v17 = vld [vmem:[#allocation14 + $0x500] sm:$0xf0] }
 0x298   :  { %v10061_v42 = vld [vmem:[#allocation14 + $0x73c] sm:$0xf0]  ;;  %5628 = vmatpush.bf16.msrb.mxu2 %v6943_v30  ;;  %5641 = vmatpush.bf16.msrb.mxu3 %v7711_v31  ;;  %v10313_v25 = vld [vmem:[#allocation14 + $0xf24] sm:$0xf]  ;;  %v7331_v28 = vor.u32 %v9977_v3, %v7328_v17 }
 0x299   :  { %v7615_v50 = vor.u32 %v10061_v42, %v7614_v41  ;;  %v6750_v53 = vld [vmem:[#allocation14 + $0x20] sm:$0xf]  ;;  %v8672_v27 = vld [vmem:[#allocation14 + $0xf80] sm:$0xf0] }
 0x29a   :  { %v9845_v54 = vld [vmem:[#allocation14 + $0x7c] sm:$0xf0]  ;;  %5656 = vmatpush.bf16.msra.mxu0 %v8287_v10  ;;  %5669 = vmatpush.bf16.msra.mxu1 %v9055_v43  ;;  %v10505_v30 = vld [vmem:[#allocation14 + $0x1524] sm:$0xf]  ;;  %v11055_v9 = vpop.f32.mrf.mxu0  ;;  %v11057_v34 = vpop.f32.mrf.mxu1  ;;  %v8675_v20 = vor.u32 %v10313_v25, %v8672_v27 }
 0x29b   :  { %v7518_v55 = vld [vmem:[#allocation14 + $0x620] sm:$0xf]  ;;  %v6751_v5 = vor.u32 %v9845_v54, %v6750_v53  ;;  %v9440_v31 = vld [vmem:[#allocation14 + $0x1580] sm:$0xf0] }
 0x29c   :  { %v10037_v2 = vld [vmem:[#allocation14 + $0x67c] sm:$0xf0]  ;;  %5629 = vmatpush.bf16.msrb.mxu2 %v6847_v23  ;;  %5642 = vmatpush.bf16.msrb.mxu3 %v7615_v50  ;;  %v9953_v32 = vld [vmem:[#allocation14 + $0x3e4] sm:$0xf]  ;;  %v9443_v40 = vor.u32 %v10505_v30, %v9440_v31  ;;  %v10398_v30 = vld [vmem:[#allocation14 + $0x11c4] sm:$0xf0] }
 0x29d   :  { %v7519_v6 = vor.u32 %v10037_v2, %v7518_v55  ;;  %5657 = vmatmul.bf16.vlgmr.msra.gmra.mxu0 %v10962_v12  ;;  %5670 = vmatmul.bf16.vlgmr.msra.gmra.mxu1 %v10964_v13  ;;  %v7232_v37 = vld [vmem:[#allocation14 + $0x440] sm:$0xf0]  ;;  %v9734_v31 = vld [vmem:[#allocation14 + $0x1768] sm:$0xf] }
 0x29e   :  { %5701 = vmatpush.bf16.msrb.mxu0 %v8963_v46  ;;  %5714 = vmatpush.bf16.msrb.mxu1 %v9731_v47  ;;  %v10145_v38 = vld [vmem:[#allocation14 + $0x9e4] sm:$0xf]  ;;  %v7235_v42 = vor.u32 %v9953_v32, %v7232_v37  ;;  %v10590_v32 = vld [vmem:[#allocation14 + $0x17c4] sm:$0xf0] }
 0x29f   :  { %v8000_v39 = vld [vmem:[#allocation14 + $0xa40] sm:$0xf0] }
 0x2a0   :  { %5630 = vmatpush.bf16.msrb.mxu2 %v6751_v5  ;;  %5643 = vmatpush.bf16.msrb.mxu3 %v7519_v6  ;;  %v10289_v1 = vld [vmem:[#allocation14 + $0xe64] sm:$0xf]  ;;  %v8003_v10 = vor.u32 %v10145_v38, %v8000_v39 }
 0x2a1   :  { %v8576_v41 = vld [vmem:[#allocation14 + $0xec0] sm:$0xf0] }
 0x2a2   :  { %5702 = vmatpush.bf16.msrb.mxu0 %v8867_v62  ;;  %5715 = vmatpush.bf16.msrb.mxu1 %v9635_v63  ;;  %v10481_v43 = vld [vmem:[#allocation14 + $0x1464] sm:$0xf]  ;;  %v8579_v21 = vor.u32 %v10289_v1, %v8576_v41  ;;  %v5452_v56 = vpop.f32.mrf.mxu0  ;;  %v5465_v8 = vpop.f32.mrf.mxu1 }
 0x2a3   :  { %5631 = vmatmul.bf16.vlgmr.msrb.gmra.mxu2 %v10968_v35  ;;  %5644 = vmatmul.bf16.vlgmr.msrb.gmra.mxu3 %v10970_v36  ;;  %v9344_v44 = vld [vmem:[#allocation14 + $0x14c0] sm:$0xf0] }
 0x2a4   :  { %5675 = vmatpush.bf16.msra.mxu2 %v7427_v11  ;;  %5688 = vmatpush.bf16.msra.mxu3 %v8195_v15  ;;  %v9929_v45 = vld [vmem:[#allocation14 + $0x324] sm:$0xf]  ;;  %v9347_v49 = vor.u32 %v10481_v43, %v9344_v44  ;;  %v9735_v43 = vor.u32 %v10590_v32, %v9734_v31  ;;  %v8870_v44 = vld [vmem:[#allocation14 + $0x10a8] sm:$0xf] }
 0x2a5   :  { %v7136_v46 = vld [vmem:[#allocation14 + $0x380] sm:$0xf0] }
 0x2a6   :  { %5703 = vmatpush.bf16.msrb.mxu0 %v8771_v22  ;;  %5716 = vmatpush.bf16.msrb.mxu1 %v9539_v0  ;;  %v10121_v47 = vld [vmem:[#allocation14 + $0x924] sm:$0xf]  ;;  %v7139_v51 = vor.u32 %v9929_v45, %v7136_v46  ;;  %v5424_v14 = vpop.f32.mrf.mxu2  ;;  %v5437_v26 = vpop.f32.mrf.mxu3  ;;  %v10374_v45 = vld [vmem:[#allocation14 + $0x1104] sm:$0xf0] }
 0x2a7   :  { %v7904_v48 = vld [vmem:[#allocation14 + $0x980] sm:$0xf0]  ;;  %v5425_v3 = vadd.f32 %v5424_v14, %v1323_v58  ;;  %v9638_v46 = vld [vmem:[#allocation14 + $0x16a8] sm:$0xf]  ;;  %v8871_v56 = vor.u32 %v10374_v45, %v8870_v44 }
 0x2a8   :  { %5676 = vmatpush.bf16.msra.mxu2 %v7331_v28  ;;  %5689 = vmatpush.bf16.msra.mxu3 %v8099_v29  ;;  %v10265_v23 = vld [vmem:[#allocation14 + $0xda4] sm:$0xf]  ;;  %v7907_v52 = vor.u32 %v10121_v47, %v7904_v48  ;;  %v8966_v29 = vld [vmem:[#allocation14 + $0x1168] sm:$0xf] }
 0x2a9   :  { %v8480_v50 = vld [vmem:[#allocation14 + $0xe00] sm:$0xf0]  ;;  %v5438_v0 = vadd.f32 %v5437_v26, %v5425_v3  ;;  %v10350_v58 = vld [vmem:[#allocation14 + $0x1044] sm:$0xf0] }
 0x2aa   :  { %5704 = vmatpush.bf16.msrb.mxu0 %v8675_v20  ;;  %5717 = vmatpush.bf16.msrb.mxu1 %v9443_v40  ;;  %v10457_v53 = vld [vmem:[#allocation14 + $0x13a4] sm:$0xf]  ;;  %v8483_v59 = vor.u32 %v10265_v23, %v8480_v50  ;;  %v8678_v26 = vld [vmem:[#allocation14 + $0xf28] sm:$0xf] }
 0x2ab   :  { %v9248_v54 = vld [vmem:[#allocation14 + $0x1400] sm:$0xf0]  ;;  %v5451_v38 = vadd.f32 %v11055_v9, %v5438_v0  ;;  %v9446_v3 = vld [vmem:[#allocation14 + $0x1528] sm:$0xf] }
 0x2ac   :  { %5677 = vmatpush.bf16.msra.mxu2 %v7235_v42  ;;  %5690 = vmatpush.bf16.msra.mxu3 %v8003_v10  ;;  %v9905_v55 = vld [vmem:[#allocation14 + $0x264] sm:$0xf]  ;;  %v9251_v60 = vor.u32 %v10457_v53, %v9248_v54  ;;  %v8967_v10 = vor.u32 %v10398_v30, %v8966_v29  ;;  %v7430_v53 = vld [vmem:[#allocation14 + $0x568] sm:$0xf] }
 0x2ad   :  { %v7040_v2 = vld [vmem:[#allocation14 + $0x2c0] sm:$0xf0]  ;;  %v11064_v42 = vadd.f32 %v11057_v34, %v5451_v38  ;;  %v10014_v34 = vld [vmem:[#allocation14 + $0x5c4] sm:$0xf0] }
 0x2ae   :  { %v10097_v57 = vld [vmem:[#allocation14 + $0x864] sm:$0xf]  ;;  %5705 = vmatpush.bf16.msrb.mxu0 %v8579_v21  ;;  %5718 = vmatpush.bf16.msrb.mxu1 %v9347_v49  ;;  %v7043_v63 = vor.u32 %v9905_v55, %v7040_v2  ;;  %v5426_v9 = vpop.f32.mrf.mxu2  ;;  %v5439_v21 = vpop.f32.mrf.mxu3  ;;  %v10566_v49 = vld [vmem:[#allocation14 + $0x1704] sm:$0xf0] }
 0x2af   :  { %v7808_v24 = vld [vmem:[#allocation14 + $0x8c0] sm:$0xf0]  ;;  %v8198_v54 = vld [vmem:[#allocation14 + $0xb68] sm:$0xf]  ;;  %v9639_v8 = vor.u32 %v10566_v49, %v9638_v46 }
 0x2b0   :  { %v10241_v61 = vld [vmem:[#allocation14 + $0xce4] sm:$0xf]  ;;  %5678 = vmatpush.bf16.msra.mxu2 %v7139_v51  ;;  %5691 = vmatpush.bf16.msra.mxu3 %v7907_v52  ;;  %v7811_v4 = vor.u32 %v10097_v57, %v7808_v24  ;;  %v10206_v55 = vld [vmem:[#allocation14 + $0xbc4] sm:$0xf0] }
 0x2b1   :  { %v8384_v62 = vld [vmem:[#allocation14 + $0xd40] sm:$0xf0]  ;;  %v8774_v24 = vld [vmem:[#allocation14 + $0xfe8] sm:$0xf] }
 0x2b2   :  { %v10433_v5 = vld [vmem:[#allocation14 + $0x12e4] sm:$0xf]  ;;  %5706 = vmatpush.bf16.msrb.mxu0 %v8483_v59  ;;  %5719 = vmatpush.bf16.msrb.mxu1 %v9251_v60  ;;  %v8387_v33 = vor.u32 %v10241_v61, %v8384_v62  ;;  %v7431_v59 = vor.u32 %v10014_v34, %v7430_v53  ;;  %v8199_v60 = vor.u32 %v10206_v55, %v8198_v54  ;;  %v9542_v61 = vld [vmem:[#allocation14 + $0x15e8] sm:$0xf] }
 0x2b3   :  { %v9152_v6 = vld [vmem:[#allocation14 + $0x1340] sm:$0xf0]  ;;  %v10542_v62 = vld [vmem:[#allocation14 + $0x1644] sm:$0xf0] }
 0x2b4   :  { %v9881_v7 = vld [vmem:[#allocation14 + $0x1a4] sm:$0xf]  ;;  %v9155_v17 = vor.u32 %v10433_v5, %v9152_v6  ;;  %5679 = vmatpush.bf16.msra.mxu2 %v7043_v63  ;;  %5692 = vmatpush.bf16.msra.mxu3 %v7811_v4  ;;  %v7334_v63 = vld [vmem:[#allocation14 + $0x4a8] sm:$0xf]  ;;  %v9543_v14 = vor.u32 %v10542_v62, %v9542_v61 }
 0x2b5   :  { %v6944_v11 = vld [vmem:[#allocation14 + $0x200] sm:$0xf0]  ;;  %v9990_v4 = vld [vmem:[#allocation14 + $0x504] sm:$0xf0] }
 0x2b6   :  { %v10073_v15 = vld [vmem:[#allocation14 + $0x7a4] sm:$0xf]  ;;  %v6947_v25 = vor.u32 %v9881_v7, %v6944_v11  ;;  %5707 = vmatpush.bf16.msrb.mxu0 %v8387_v33  ;;  %5720 = vmatpush.bf16.msrb.mxu1 %v9155_v17  ;;  %v8102_v5 = vld [vmem:[#allocation14 + $0xaa8] sm:$0xf]  ;;  %v8775_v7 = vor.u32 %v10350_v58, %v8774_v24 }
 0x2b7   :  { %v7712_v16 = vld [vmem:[#allocation14 + $0x800] sm:$0xf0]  ;;  %v10182_v6 = vld [vmem:[#allocation14 + $0xb04] sm:$0xf0] }
 0x2b8   :  { %v10217_v18 = vld [vmem:[#allocation14 + $0xc24] sm:$0xf]  ;;  %v7715_v27 = vor.u32 %v10073_v15, %v7712_v16  ;;  %5680 = vmatpush.bf16.msra.mxu2 %v6947_v25  ;;  %v10326_v11 = vld [vmem:[#allocation14 + $0xf84] sm:$0xf0]  ;;  %v7335_v15 = vor.u32 %v9990_v4, %v7334_v63  ;;  %v8103_v16 = vor.u32 %v10182_v6, %v8102_v5 }
 0x2b9   :  { %v8288_v19 = vld [vmem:[#allocation14 + $0xc80] sm:$0xf0]  ;;  %v10518_v33 = vld [vmem:[#allocation14 + $0x1584] sm:$0xf0] }
 0x2ba   :  { %v10409_v22 = vld [vmem:[#allocation14 + $0x1224] sm:$0xf]  ;;  %v8291_v1 = vor.u32 %v10217_v18, %v8288_v19  ;;  %5693 = vmatpush.bf16.msra.mxu3 %v7715_v27  ;;  %v7238_v17 = vld [vmem:[#allocation14 + $0x3e8] sm:$0xf]  ;;  %v11068_v18 = vpop.f32.mrf.mxu0  ;;  %v11070_v19 = vpop.f32.mrf.mxu1  ;;  %v8679_v27 = vor.u32 %v10326_v11, %v8678_v26 }
 0x2bb   :  { %v9056_v28 = vld [vmem:[#allocation14 + $0x1280] sm:$0xf0]  ;;  %v8006_v0 = vld [vmem:[#allocation14 + $0x9e8] sm:$0xf] }
 0x2bc   :  { %v9857_v37 = vld [vmem:[#allocation14 + $0xe4] sm:$0xf]  ;;  %v9059_v41 = vor.u32 %v10409_v22, %v9056_v28  ;;  %5708 = vmatpush.bf16.msrb.mxu0 %v8291_v1  ;;  %v9966_v22 = vld [vmem:[#allocation14 + $0x444] sm:$0xf0]  ;;  %v9447_v28 = vor.u32 %v10518_v33, %v9446_v3  ;;  %v10386_v33 = vld [vmem:[#allocation14 + $0x116c] sm:$0xf] }
 0x2bd   :  { %v6848_v39 = vld [vmem:[#allocation14 + $0x140] sm:$0xf0]  ;;  %v10158_v25 = vld [vmem:[#allocation14 + $0xa44] sm:$0xf0]  ;;  %v7239_v31 = vor.u32 %v9966_v22, %v7238_v17  ;;  %v8968_v17 = vld [vmem:[#allocation14 + $0x11c8] sm:$0xf0] }
 0x2be   :  { %v10049_v20 = vld [vmem:[#allocation14 + $0x6e4] sm:$0xf]  ;;  %v6851_v47 = vor.u32 %v9857_v37, %v6848_v39  ;;  %5721 = vmatpush.bf16.msrb.mxu1 %v9059_v41  ;;  %v8582_v29 = vld [vmem:[#allocation14 + $0xe68] sm:$0xf]  ;;  %v8007_v32 = vor.u32 %v10158_v25, %v8006_v0  ;;  %v10578_v22 = vld [vmem:[#allocation14 + $0x176c] sm:$0xf] }
 0x2bf   :  { %v7616_v40 = vld [vmem:[#allocation14 + $0x740] sm:$0xf0]  ;;  %5709 = vmatmul.bf16.vlgmr.msrb.gmra.mxu0 %v10962_v12  ;;  %v10302_v30 = vld [vmem:[#allocation14 + $0xec4] sm:$0xf0]  ;;  %v9736_v0 = vld [vmem:[#allocation14 + $0x17c8] sm:$0xf0] }
 0x2c0   :  { %v7619_v48 = vor.u32 %v10049_v20, %v7616_v40  ;;  %v9833_v23 = vld [vmem:[#allocation14 + $0x24] sm:$0xf]  ;;  %5753 = vmatpush.bf16.msra.mxu0 %v8967_v10  ;;  %5681 = vmatpush.bf16.msra.mxu2 %v6851_v47  ;;  %v9350_v37 = vld [vmem:[#allocation14 + $0x1468] sm:$0xf]  ;;  %v8583_v41 = vor.u32 %v10302_v30, %v8582_v29 }
 0x2c1   :  { %v6752_v50 = vld [vmem:[#allocation14 + $0x80] sm:$0xf0]  ;;  %5722 = vmatmul.bf16.vlgmr.msrb.gmra.mxu1 %v10964_v13  ;;  %v10494_v38 = vld [vmem:[#allocation14 + $0x14c4] sm:$0xf0] }
 0x2c2   :  { %v10025_v51 = vld [vmem:[#allocation14 + $0x624] sm:$0xf]  ;;  %5766 = vmatpush.bf16.msra.mxu1 %v9735_v43  ;;  %5694 = vmatpush.bf16.msra.mxu3 %v7619_v48  ;;  %v6755_v2 = vor.u32 %v9833_v23, %v6752_v50  ;;  %v7142_v39 = vld [vmem:[#allocation14 + $0x328] sm:$0xf]  ;;  %v9351_v10 = vor.u32 %v10494_v38, %v9350_v37  ;;  %v5504_v21 = vpop.f32.mrf.mxu0  ;;  %v5517_v49 = vpop.f32.mrf.mxu1  ;;  %v10362_v37 = vld [vmem:[#allocation14 + $0x10ac] sm:$0xf] }
 0x2c3   :  { %v7520_v52 = vld [vmem:[#allocation14 + $0x680] sm:$0xf0]  ;;  %v9942_v20 = vld [vmem:[#allocation14 + $0x384] sm:$0xf0]  ;;  %v10002_v21 = vld [vmem:[#allocation14 + $0x56c] sm:$0xf] }
 0x2c4   :  { %v7523_v57 = vor.u32 %v10025_v51, %v7520_v52  ;;  %5754 = vmatpush.bf16.msra.mxu0 %v8871_v56  ;;  %5682 = vmatpush.bf16.msra.mxu2 %v6755_v2  ;;  %v7910_v40 = vld [vmem:[#allocation14 + $0x928] sm:$0xf]  ;;  %v7143_v45 = vor.u32 %v9942_v20, %v7142_v39  ;;  %v11074_v52 = vld [vmem:[#allocation16] sm:$0xff]  ;;  %v8971_v39 = vor.u32 %v10386_v33, %v8968_v17  ;;  %v10194_v49 = vld [vmem:[#allocation14 + $0xb6c] sm:$0xf] }
 0x2c5   :  { %v10134_v1 = vld [vmem:[#allocation14 + $0x984] sm:$0xf0]  ;;  %v1324_v53 = vperm.slane %v11074_v52, 5  ;;  %v9739_v20 = vor.u32 %v10578_v22, %v9736_v0  ;;  %v8008_v33 = vld [vmem:[#allocation14 + $0xa48] sm:$0xf0] }
 0x2c6   :  { %5767 = vmatpush.bf16.msra.mxu1 %v9639_v8  ;;  %5695 = vmatpush.bf16.msra.mxu3 %v7523_v57  ;;  %v8486_v43 = vld [vmem:[#allocation14 + $0xda8] sm:$0xf]  ;;  %v7911_v46 = vor.u32 %v10134_v1, %v7910_v40  ;;  %v8872_v40 = vld [vmem:[#allocation14 + $0x1108] sm:$0xf0] }
 0x2c7   :  { %5683 = vmatmul.bf16.vlgmr.msra.gmra.mxu2 %v10968_v35  ;;  %v10278_v44 = vld [vmem:[#allocation14 + $0xe04] sm:$0xf0]  ;;  %v10554_v1 = vld [vmem:[#allocation14 + $0x16ac] sm:$0xf] }
 0x2c8   :  { %5727 = vmatpush.bf16.msrb.mxu2 %v7431_v59  ;;  %5755 = vmatpush.bf16.msra.mxu0 %v8775_v7  ;;  %v9254_v47 = vld [vmem:[#allocation14 + $0x13a8] sm:$0xf]  ;;  %v8487_v34 = vor.u32 %v10278_v44, %v8486_v43  ;;  %v5476_v59 = vpop.f32.mrf.mxu2  ;;  %v10290_v0 = vld [vmem:[#allocation14 + $0xe6c] sm:$0xf] }
 0x2c9   :  { %5696 = vmatmul.bf16.vlgmr.msra.gmra.mxu3 %v10970_v36  ;;  %v10470_v48 = vld [vmem:[#allocation14 + $0x1404] sm:$0xf0]  ;;  %v5477_v4 = vadd.f32 %v5476_v59, %v1324_v53  ;;  %v10170_v59 = vld [vmem:[#allocation14 + $0xaac] sm:$0xf] }
 0x2ca   :  { %5740 = vmatpush.bf16.msrb.mxu3 %v8199_v60  ;;  %5768 = vmatpush.bf16.msra.mxu1 %v9543_v14  ;;  %v7046_v9 = vld [vmem:[#allocation14 + $0x268] sm:$0xf]  ;;  %v9255_v54 = vor.u32 %v10470_v48, %v9254_v47  ;;  %v5489_v60 = vpop.f32.mrf.mxu3 }
 0x2cb   :  { %v9918_v23 = vld [vmem:[#allocation14 + $0x2c4] sm:$0xf0]  ;;  %v5490_v11 = vadd.f32 %v5489_v60, %v5477_v4  ;;  %v8104_v60 = vld [vmem:[#allocation14 + $0xb08] sm:$0xf0] }
 0x2cc   :  { %5728 = vmatpush.bf16.msrb.mxu2 %v7335_v15  ;;  %5756 = vmatpush.bf16.msra.mxu0 %v8679_v27  ;;  %v7814_v50 = vld [vmem:[#allocation14 + $0x868] sm:$0xf]  ;;  %v7047_v8 = vor.u32 %v9918_v23, %v7046_v9  ;;  %v8200_v23 = vld [vmem:[#allocation14 + $0xbc8] sm:$0xf0] }
 0x2cd   :  { %v10110_v51 = vld [vmem:[#allocation14 + $0x8c4] sm:$0xf0]  ;;  %v5503_v27 = vadd.f32 %v11068_v18, %v5490_v11  ;;  %v8680_v4 = vld [vmem:[#allocation14 + $0xf88] sm:$0xf0] }
 0x2ce   :  { %5741 = vmatpush.bf16.msrb.mxu3 %v8103_v16  ;;  %5769 = vmatpush.bf16.msra.mxu1 %v9447_v28  ;;  %v8390_v55 = vld [vmem:[#allocation14 + $0xce8] sm:$0xf]  ;;  %v7815_v2 = vor.u32 %v10110_v51, %v7814_v50  ;;  %v8875_v51 = vor.u32 %v10362_v37, %v8872_v40  ;;  %v10122_v37 = vld [vmem:[#allocation14 + $0x92c] sm:$0xf] }
 0x2cf   :  { %v10254_v56 = vld [vmem:[#allocation14 + $0xd44] sm:$0xf0]  ;;  %v5516_v38 = vadd.f32 %v11070_v19, %v5503_v27  ;;  %v7432_v19 = vld [vmem:[#allocation14 + $0x5c8] sm:$0xf0] }
 0x2d0   :  { %5729 = vmatpush.bf16.msrb.mxu2 %v7239_v31  ;;  %5757 = vmatpush.bf16.msra.mxu0 %v8583_v41  ;;  %v9158_v57 = vld [vmem:[#allocation14 + $0x12e8] sm:$0xf]  ;;  %v8391_v5 = vor.u32 %v10254_v56, %v8390_v55  ;;  %v9640_v41 = vld [vmem:[#allocation14 + $0x1708] sm:$0xf0]  ;;  %v5478_v18 = vpop.f32.mrf.mxu2 }
 0x2d1   :  { %v10446_v24 = vld [vmem:[#allocation14 + $0x1344] sm:$0xf0]  ;;  %v6482_v48 = vrot.slane %v5516_v38, 6  ;;  %v9643_v53 = vor.u32 %v10554_v1, %v9640_v41  ;;  %v10338_v55 = vld [vmem:[#allocation14 + $0xfec] sm:$0xf] }
 0x2d2   :  { %5742 = vmatpush.bf16.msrb.mxu3 %v8007_v32  ;;  %5770 = vmatpush.bf16.msra.mxu1 %v9351_v10  ;;  %v6950_v58 = vld [vmem:[#allocation14 + $0x1a8] sm:$0xf]  ;;  %v9159_v6 = vor.u32 %v10446_v24, %v9158_v57  ;;  %v5491_v44 = vpop.f32.mrf.mxu3  ;;  %v8776_v56 = vld [vmem:[#allocation14 + $0x1048] sm:$0xf0] }
 0x2d3   :  { %v9894_v61 = vld [vmem:[#allocation14 + $0x204] sm:$0xf0]  ;;  %v11081_v50 = vsel %vm6497_vm2, %v11064_v42, %v6482_v48  ;;  %v10530_v57 = vld [vmem:[#allocation14 + $0x15ec] sm:$0xf] }
 0x2d4   :  { %5730 = vmatpush.bf16.msrb.mxu2 %v7143_v45  ;;  %v7718_v62 = vld [vmem:[#allocation14 + $0x7a8] sm:$0xf]  ;;  %5758 = vmatpush.bf16.msra.mxu0 %v8487_v34  ;;  %v6951_v15 = vor.u32 %v9894_v61, %v6950_v58  ;;  %v9544_v24 = vld [vmem:[#allocation14 + $0x1648] sm:$0xf0]  ;;  %v8779_v61 = vor.u32 %v10338_v55, %v8776_v56 }
 0x2d5   :  { %v10086_v63 = vld [vmem:[#allocation14 + $0x804] sm:$0xf0]  ;;  %v9978_v42 = vld [vmem:[#allocation14 + $0x4ac] sm:$0xf] }
 0x2d6   :  { %5743 = vmatpush.bf16.msrb.mxu3 %v7911_v46  ;;  %5771 = vmatpush.bf16.msra.mxu1 %v9255_v54  ;;  %v8294_v7 = vld [vmem:[#allocation14 + $0xc28] sm:$0xf]  ;;  %v7719_v16 = vor.u32 %v10086_v63, %v7718_v62  ;;  %v7336_v58 = vld [vmem:[#allocation14 + $0x508] sm:$0xf0]  ;;  %v9547_v62 = vor.u32 %v10530_v57, %v9544_v24 }
 0x2d7   :  { %v10230_v14 = vld [vmem:[#allocation14 + $0xc84] sm:$0xf0]  ;;  %v10314_v63 = vld [vmem:[#allocation14 + $0xf2c] sm:$0xf] }
 0x2d8   :  { %v9062_v26 = vld [vmem:[#allocation14 + $0x1228] sm:$0xf]  ;;  %5731 = vmatpush.bf16.msrb.mxu2 %v7047_v8  ;;  %5759 = vmatpush.bf16.msra.mxu0 %v8391_v5  ;;  %v8295_v31 = vor.u32 %v10230_v14, %v8294_v7  ;;  %v7435_v8 = vor.u32 %v10002_v21, %v7432_v19  ;;  %v7339_v5 = vor.u32 %v9978_v42, %v7336_v58  ;;  %v10506_v7 = vld [vmem:[#allocation14 + $0x152c] sm:$0xf] }
 0x2d9   :  { %v10422_v3 = vld [vmem:[#allocation14 + $0x1284] sm:$0xf0]  ;;  %v9448_v14 = vld [vmem:[#allocation14 + $0x1588] sm:$0xf0]  ;;  %v8683_v17 = vor.u32 %v10314_v63, %v8680_v4 }
 0x2da   :  { %5744 = vmatpush.bf16.msrb.mxu3 %v7815_v2  ;;  %v6854_v25 = vld [vmem:[#allocation14 + $0xe8] sm:$0xf]  ;;  %5772 = vmatpush.bf16.msra.mxu1 %v9159_v6  ;;  %v9063_v32 = vor.u32 %v10422_v3, %v9062_v26  ;;  %v8203_v2 = vor.u32 %v10194_v49, %v8200_v23  ;;  %v8107_v6 = vor.u32 %v10170_v59, %v8104_v60  ;;  %v9954_v26 = vld [vmem:[#allocation14 + $0x3ec] sm:$0xf]  ;;  %v11085_v11 = vpop.f32.mrf.mxu0 }
 0x2db   :  { %v9870_v28 = vld [vmem:[#allocation14 + $0x144] sm:$0xf0]  ;;  %v10146_v3 = vld [vmem:[#allocation14 + $0x9ec] sm:$0xf]  ;;  %v9451_v22 = vor.u32 %v10506_v7, %v9448_v14  ;;  %v9742_v7 = vld [vmem:[#allocation14 + $0x1770] sm:$0xf] }
 0x2dc   :  { %v7622_v29 = vld [vmem:[#allocation14 + $0x6e8] sm:$0xf]  ;;  %5732 = vmatpush.bf16.msrb.mxu2 %v6951_v15  ;;  %v6855_v10 = vor.u32 %v9870_v28, %v6854_v25  ;;  %5760 = vmatpush.bf16.msra.mxu0 %v8295_v31  ;;  %v11087_v15 = vpop.f32.mrf.mxu1  ;;  %v8584_v25 = vld [vmem:[#allocation14 + $0xec8] sm:$0xf0]  ;;  %v8011_v28 = vor.u32 %v10146_v3, %v8008_v33  ;;  %v10591_v14 = vld [vmem:[#allocation14 + $0x17cc] sm:$0xf0] }
 0x2dd   :  { %v10062_v30 = vld [vmem:[#allocation14 + $0x744] sm:$0xf0]  ;;  %v9930_v31 = vld [vmem:[#allocation14 + $0x32c] sm:$0xf] }
 0x2de   :  { %5745 = vmatpush.bf16.msrb.mxu3 %v7719_v16  ;;  %v7623_v43 = vor.u32 %v10062_v30, %v7622_v29  ;;  %v6758_v45 = vld [vmem:[#allocation14 + $0x28] sm:$0xf]  ;;  %5773 = vmatpush.bf16.msra.mxu1 %v9063_v32  ;;  %v7240_v16 = vld [vmem:[#allocation14 + $0x448] sm:$0xf0] }
 0x2df   :  { %v9846_v46 = vld [vmem:[#allocation14 + $0x84] sm:$0xf0]  ;;  %5761 = vmatmul.bf16.vlgmr.msra.gmra.mxu0 %v10962_v12  ;;  %v7243_v27 = vor.u32 %v9954_v26, %v7240_v16  ;;  %v10482_v29 = vld [vmem:[#allocation14 + $0x146c] sm:$0xf] }
 0x2e0   :  { %v7526_v47 = vld [vmem:[#allocation14 + $0x628] sm:$0xf]  ;;  %5805 = vmatpush.bf16.msrb.mxu0 %v8971_v39  ;;  %5733 = vmatpush.bf16.msrb.mxu2 %v6855_v10  ;;  %v6759_v34 = vor.u32 %v9846_v46, %v6758_v45  ;;  %v9352_v30 = vld [vmem:[#allocation14 + $0x14c8] sm:$0xf0]  ;;  %v8587_v39 = vor.u32 %v10290_v0, %v8584_v25  ;;  %v9743_v25 = vor.u32 %v10591_v14, %v9742_v7  ;;  %v1325_v7 = vperm.slane %v11074_v52, 6 }
 0x2e1   :  { %v10038_v9 = vld [vmem:[#allocation14 + $0x684] sm:$0xf0]  ;;  %5774 = vmatmul.bf16.vlgmr.msra.gmra.mxu1 %v10964_v13  ;;  %v7144_v32 = vld [vmem:[#allocation14 + $0x388] sm:$0xf0] }
 0x2e2   :  { %5818 = vmatpush.bf16.msrb.mxu1 %v9739_v20  ;;  %5746 = vmatpush.bf16.msrb.mxu3 %v7623_v43  ;;  %v7527_v54 = vor.u32 %v10038_v9, %v7526_v47  ;;  %v7912_v38 = vld [vmem:[#allocation14 + $0x988] sm:$0xf0]  ;;  %v9355_v20 = vor.u32 %v10482_v29, %v9352_v30  ;;  %v7147_v41 = vor.u32 %v9930_v31, %v7144_v32  ;;  %v5556_v45 = vpop.f32.mrf.mxu0  ;;  %v9646_v29 = vld [vmem:[#allocation14 + $0x16b0] sm:$0xf] }
 0x2e3   :  { %v10266_v40 = vld [vmem:[#allocation14 + $0xdac] sm:$0xf]  ;;  %v7915_v10 = vor.u32 %v10122_v37, %v7912_v38  ;;  %v10567_v38 = vld [vmem:[#allocation14 + $0x170c] sm:$0xf0] }
 0x2e4   :  { %5806 = vmatpush.bf16.msrb.mxu0 %v8875_v51  ;;  %5734 = vmatpush.bf16.msrb.mxu2 %v6759_v34  ;;  %v8488_v1 = vld [vmem:[#allocation14 + $0xe08] sm:$0xf0]  ;;  %v5569_v46 = vpop.f32.mrf.mxu1  ;;  %v9647_v45 = vor.u32 %v10567_v38, %v9646_v29  ;;  %v10135_v29 = vld [vmem:[#allocation14 + $0x98c] sm:$0xf0] }
 0x2e5   :  { %v10458_v43 = vld [vmem:[#allocation14 + $0x13ac] sm:$0xf]  ;;  %v8491_v21 = vor.u32 %v10266_v40, %v8488_v1  ;;  %v10279_v38 = vld [vmem:[#allocation14 + $0xe0c] sm:$0xf0] }
 0x2e6   :  { %5819 = vmatpush.bf16.msrb.mxu1 %v9643_v53  ;;  %5747 = vmatpush.bf16.msrb.mxu3 %v7527_v54  ;;  %v9256_v18 = vld [vmem:[#allocation14 + $0x1408] sm:$0xf0]  ;;  %v11091_v56 = vpop.f32.mrf.mxu2 }
 0x2e7   :  { %5735 = vmatmul.bf16.vlgmr.msrb.gmra.mxu2 %v10968_v35  ;;  %v9906_v44 = vld [vmem:[#allocation14 + $0x26c] sm:$0xf]  ;;  %v9259_v19 = vor.u32 %v10458_v43, %v9256_v18  ;;  %v8206_v43 = vld [vmem:[#allocation14 + $0xb70] sm:$0xf] }
 0x2e8   :  { %5779 = vmatpush.bf16.msra.mxu2 %v7435_v8  ;;  %5807 = vmatpush.bf16.msrb.mxu0 %v8779_v61  ;;  %v7048_v47 = vld [vmem:[#allocation14 + $0x2c8] sm:$0xf0]  ;;  %v11093_v8 = vpop.f32.mrf.mxu3  ;;  %v10207_v18 = vld [vmem:[#allocation14 + $0xbcc] sm:$0xf0] }
 0x2e9   :  { %5748 = vmatmul.bf16.vlgmr.msrb.gmra.mxu3 %v10970_v36  ;;  %v10098_v48 = vld [vmem:[#allocation14 + $0x86c] sm:$0xf]  ;;  %v7051_v51 = vor.u32 %v9906_v44, %v7048_v47 }
 0x2ea   :  { %5792 = vmatpush.bf16.msra.mxu3 %v8203_v2  ;;  %5820 = vmatpush.bf16.msrb.mxu1 %v9547_v62  ;;  %v7816_v9 = vld [vmem:[#allocation14 + $0x8c8] sm:$0xf0] }
 0x2eb   :  { %v10242_v49 = vld [vmem:[#allocation14 + $0xcec] sm:$0xf]  ;;  %v7819_v53 = vor.u32 %v10098_v48, %v7816_v9  ;;  %v8782_v48 = vld [vmem:[#allocation14 + $0xff0] sm:$0xf] }
 0x2ec   :  { %5780 = vmatpush.bf16.msra.mxu2 %v7339_v5  ;;  %5808 = vmatpush.bf16.msrb.mxu0 %v8683_v17  ;;  %v8392_v23 = vld [vmem:[#allocation14 + $0xd48] sm:$0xf0]  ;;  %v8974_v5 = vld [vmem:[#allocation14 + $0x1170] sm:$0xf] }
 0x2ed   :  { %v10434_v34 = vld [vmem:[#allocation14 + $0x12ec] sm:$0xf]  ;;  %v8395_v42 = vor.u32 %v10242_v49, %v8392_v23  ;;  %v10351_v9 = vld [vmem:[#allocation14 + $0x104c] sm:$0xf0] }
 0x2ee   :  { %5793 = vmatpush.bf16.msra.mxu3 %v8107_v6  ;;  %5821 = vmatpush.bf16.msrb.mxu1 %v9451_v22  ;;  %v9160_v54 = vld [vmem:[#allocation14 + $0x1348] sm:$0xf0]  ;;  %v10399_v6 = vld [vmem:[#allocation14 + $0x11cc] sm:$0xf0]  ;;  %v5530_v32 = vpop.f32.mrf.mxu2 }
 0x2ef   :  { %v9882_v55 = vld [vmem:[#allocation14 + $0x1ac] sm:$0xf]  ;;  %v9163_v58 = vor.u32 %v10434_v34, %v9160_v54  ;;  %v8975_v0 = vor.u32 %v10399_v6, %v8974_v5  ;;  %v9550_v49 = vld [vmem:[#allocation14 + $0x15f0] sm:$0xf] }
 0x2f0   :  { %5781 = vmatpush.bf16.msra.mxu2 %v7243_v27  ;;  %5809 = vmatpush.bf16.msrb.mxu0 %v8587_v39  ;;  %v6952_v2 = vld [vmem:[#allocation14 + $0x208] sm:$0xf0]  ;;  %v8878_v27 = vld [vmem:[#allocation14 + $0x10b0] sm:$0xf]  ;;  %v5543_v37 = vpop.f32.mrf.mxu3 }
 0x2f1   :  { %v10074_v57 = vld [vmem:[#allocation14 + $0x7ac] sm:$0xf]  ;;  %v6955_v62 = vor.u32 %v9882_v55, %v6952_v2  ;;  %v10543_v23 = vld [vmem:[#allocation14 + $0x164c] sm:$0xf0]  ;;  %v8783_v55 = vor.u32 %v10351_v9, %v8782_v48 }
 0x2f2   :  { %5794 = vmatpush.bf16.msra.mxu3 %v8011_v28  ;;  %5822 = vmatpush.bf16.msrb.mxu1 %v9355_v20  ;;  %v7720_v24 = vld [vmem:[#allocation14 + $0x808] sm:$0xf0]  ;;  %v10375_v28 = vld [vmem:[#allocation14 + $0x110c] sm:$0xf0]  ;;  %v9551_v2 = vor.u32 %v10543_v23, %v9550_v49 }
 0x2f3   :  { %v10218_v59 = vld [vmem:[#allocation14 + $0xc2c] sm:$0xf]  ;;  %v7723_v63 = vor.u32 %v10074_v57, %v7720_v24  ;;  %v8879_v44 = vor.u32 %v10375_v28, %v8878_v27  ;;  %v8110_v34 = vld [vmem:[#allocation14 + $0xab0] sm:$0xf] }
 0x2f4   :  { %5782 = vmatpush.bf16.msra.mxu2 %v7147_v41  ;;  %5810 = vmatpush.bf16.msrb.mxu0 %v8491_v21  ;;  %v8296_v60 = vld [vmem:[#allocation14 + $0xc88] sm:$0xf0]  ;;  %v7438_v41 = vld [vmem:[#allocation14 + $0x570] sm:$0xf] }
 0x2f5   :  { %v10410_v61 = vld [vmem:[#allocation14 + $0x122c] sm:$0xf]  ;;  %v8299_v17 = vor.u32 %v10218_v59, %v8296_v60  ;;  %v10183_v54 = vld [vmem:[#allocation14 + $0xb0c] sm:$0xf0] }
 0x2f6   :  { %5795 = vmatpush.bf16.msra.mxu3 %v7915_v10  ;;  %5823 = vmatpush.bf16.msrb.mxu1 %v9259_v19  ;;  %v9064_v4 = vld [vmem:[#allocation14 + $0x1288] sm:$0xf0]  ;;  %v10015_v10 = vld [vmem:[#allocation14 + $0x5cc] sm:$0xf0]  ;;  %v8207_v19 = vor.u32 %v10207_v18, %v8206_v43 }
 0x2f7   :  { %v9858_v26 = vld [vmem:[#allocation14 + $0xec] sm:$0xf]  ;;  %v9067_v22 = vor.u32 %v10410_v61, %v9064_v4  ;;  %v7439_v21 = vor.u32 %v10015_v10, %v7438_v41  ;;  %v8686_v57 = vld [vmem:[#allocation14 + $0xf30] sm:$0xf] }
 0x2f8   :  { %5783 = vmatpush.bf16.msra.mxu2 %v7051_v51  ;;  %v6856_v16 = vld [vmem:[#allocation14 + $0x148] sm:$0xf0]  ;;  %5811 = vmatpush.bf16.msrb.mxu0 %v8395_v42  ;;  %v7342_v51 = vld [vmem:[#allocation14 + $0x4b0] sm:$0xf] }
 0x2f9   :  { %v10050_v3 = vld [vmem:[#allocation14 + $0x6ec] sm:$0xf]  ;;  %v6859_v30 = vor.u32 %v9858_v26, %v6856_v16  ;;  %v10327_v24 = vld [vmem:[#allocation14 + $0xf8c] sm:$0xf0] }
 0x2fa   :  { %5796 = vmatpush.bf16.msra.mxu3 %v7819_v53  ;;  %v7624_v33 = vld [vmem:[#allocation14 + $0x748] sm:$0xf0]  ;;  %5824 = vmatpush.bf16.msrb.mxu1 %v9163_v58  ;;  %v9991_v53 = vld [vmem:[#allocation14 + $0x50c] sm:$0xf0]  ;;  %v8111_v58 = vor.u32 %v10183_v54, %v8110_v34  ;;  %v8687_v14 = vor.u32 %v10327_v24, %v8686_v57 }
 0x2fb   :  { %v7627_v31 = vor.u32 %v10050_v3, %v7624_v33  ;;  %v9834_v39 = vld [vmem:[#allocation14 + $0x2c] sm:$0xf]  ;;  %v7343_v42 = vor.u32 %v9991_v53, %v7342_v51  ;;  %v9454_v59 = vld [vmem:[#allocation14 + $0x1530] sm:$0xf] }
 0x2fc   :  { %5784 = vmatpush.bf16.msra.mxu2 %v6955_v62  ;;  %v6760_v20 = vld [vmem:[#allocation14 + $0x88] sm:$0xf0]  ;;  %5812 = vmatpush.bf16.msrb.mxu0 %v8299_v17  ;;  %v10519_v60 = vld [vmem:[#allocation14 + $0x158c] sm:$0xf0]  ;;  %v11097_v62 = vpop.f32.mrf.mxu0 }
 0x2fd   :  { %v10026_v40 = vld [vmem:[#allocation14 + $0x62c] sm:$0xf]  ;;  %v6763_v46 = vor.u32 %v9834_v39, %v6760_v20  ;;  %v7246_v61 = vld [vmem:[#allocation14 + $0x3f0] sm:$0xf]  ;;  %v9455_v26 = vor.u32 %v10519_v60, %v9454_v59 }
 0x2fe   :  { %5797 = vmatpush.bf16.msra.mxu3 %v7723_v63  ;;  %v7528_v1 = vld [vmem:[#allocation14 + $0x688] sm:$0xf0]  ;;  %5825 = vmatpush.bf16.msrb.mxu1 %v9067_v22  ;;  %v11099_v63 = vpop.f32.mrf.mxu1  ;;  %v9967_v4 = vld [vmem:[#allocation14 + $0x44c] sm:$0xf0] }
 0x2ff   :  { %v7531_v47 = vor.u32 %v10026_v40, %v7528_v1  ;;  %5813 = vmatmul.bf16.vlgmr.msrb.gmra.mxu0 %v10962_v12  ;;  %v8014_v5 = vld [vmem:[#allocation14 + $0x9f0] sm:$0xf]  ;;  %v7247_v33 = vor.u32 %v9967_v4, %v7246_v61 }
 0x300   :  { %5857 = vmatpush.bf16.msra.mxu0 %v8975_v0  ;;  %5785 = vmatpush.bf16.msra.mxu2 %v6859_v30  ;;  %v10159_v6 = vld [vmem:[#allocation14 + $0xa4c] sm:$0xf0]  ;;  %v5529_v30 = vadd.f32 %v11091_v56, %v1325_v7  ;;  %v10387_v7 = vld [vmem:[#allocation14 + $0x1174] sm:$0xf] }
 0x301   :  { %5826 = vmatmul.bf16.vlgmr.msrb.gmra.mxu1 %v10964_v13  ;;  %v8590_v16 = vld [vmem:[#allocation14 + $0xe70] sm:$0xf]  ;;  %v8015_v17 = vor.u32 %v10159_v6, %v8014_v5 }
 0x302   :  { %5870 = vmatpush.bf16.msra.mxu1 %v9743_v25  ;;  %5798 = vmatpush.bf16.msra.mxu3 %v7627_v31  ;;  %v10303_v3 = vld [vmem:[#allocation14 + $0xecc] sm:$0xf0]  ;;  %v5542_v56 = vadd.f32 %v11093_v8, %v5529_v30 }
 0x303   :  { %v9358_v22 = vld [vmem:[#allocation14 + $0x1470] sm:$0xf]  ;;  %v8591_v31 = vor.u32 %v10303_v3, %v8590_v16  ;;  %v9744_v16 = vld [vmem:[#allocation14 + $0x17d0] sm:$0xf0] }
 0x304   :  { %5858 = vmatpush.bf16.msra.mxu0 %v8879_v44  ;;  %5786 = vmatpush.bf16.msra.mxu2 %v6763_v46  ;;  %v10495_v0 = vld [vmem:[#allocation14 + $0x14cc] sm:$0xf0]  ;;  %v5608_v10 = vpop.f32.mrf.mxu0  ;;  %v1326_v46 = vperm.slane %v11074_v52, 7  ;;  %v5555_v52 = vadd.f32 %v11085_v11, %v5542_v56  ;;  %v8208_v56 = vld [vmem:[#allocation14 + $0xbd0] sm:$0xf0] }
 0x305   :  { %v7150_v25 = vld [vmem:[#allocation14 + $0x330] sm:$0xf]  ;;  %v9359_v32 = vor.u32 %v10495_v0, %v9358_v22 }
 0x306   :  { %5871 = vmatpush.bf16.msra.mxu1 %v9647_v45  ;;  %5799 = vmatpush.bf16.msra.mxu3 %v7531_v47  ;;  %v9943_v27 = vld [vmem:[#allocation14 + $0x38c] sm:$0xf0]  ;;  %v5621_v43 = vpop.f32.mrf.mxu1  ;;  %v5580_v34 = vpop.f32.mrf.mxu2  ;;  %v5568_v11 = vadd.f32 %v11087_v15, %v5555_v52  ;;  %v8112_v52 = vld [vmem:[#allocation14 + $0xb10] sm:$0xf0] }
 0x307   :  { %5787 = vmatmul.bf16.vlgmr.msra.gmra.mxu2 %v10968_v35  ;;  %v7918_v28 = vld [vmem:[#allocation14 + $0x930] sm:$0xf]  ;;  %v7151_v39 = vor.u32 %v9943_v27, %v7150_v25  ;;  %v5593_v54 = vpop.f32.mrf.mxu3  ;;  %v5581_v57 = vadd.f32 %v5580_v34, %v1326_v46 }
 0x308   :  { %5831 = vmatpush.bf16.msrb.mxu2 %v7439_v21  ;;  %5859 = vmatpush.bf16.msra.mxu0 %v8783_v55  ;;  %v8494_v37 = vld [vmem:[#allocation14 + $0xdb0] sm:$0xf]  ;;  %v7919_v20 = vor.u32 %v10135_v29, %v7918_v28  ;;  %v10363_v28 = vld [vmem:[#allocation14 + $0x10b4] sm:$0xf]  ;;  %v6483_v10 = vrot.slane %v5568_v11, 4 }
 0x309   :  { %5800 = vmatmul.bf16.vlgmr.msra.gmra.mxu3 %v10970_v36  ;;  %v9262_v40 = vld [vmem:[#allocation14 + $0x13b0] sm:$0xf]  ;;  %v8495_v47 = vor.u32 %v10279_v38, %v8494_v37  ;;  %v5594_v61 = vadd.f32 %v5593_v54, %v5581_v57  ;;  %v10555_v37 = vld [vmem:[#allocation14 + $0x16b4] sm:$0xf] }
 0x30a   :  { %5844 = vmatpush.bf16.msrb.mxu3 %v8207_v19  ;;  %5872 = vmatpush.bf16.msra.mxu1 %v9551_v2  ;;  %v10471_v1 = vld [vmem:[#allocation14 + $0x140c] sm:$0xf0]  ;;  %v9648_v38 = vld [vmem:[#allocation14 + $0x1710] sm:$0xf0] }
 0x30b   :  { %v7054_v41 = vld [vmem:[#allocation14 + $0x270] sm:$0xf]  ;;  %v9263_v48 = vor.u32 %v10471_v1, %v9262_v40  ;;  %v9552_v54 = vld [vmem:[#allocation14 + $0x1650] sm:$0xf0] }
 0x30c   :  { %5832 = vmatpush.bf16.msrb.mxu2 %v7343_v42  ;;  %5860 = vmatpush.bf16.msra.mxu0 %v8687_v14  ;;  %v9919_v18 = vld [vmem:[#allocation14 + $0x2cc] sm:$0xf0]  ;;  %v8976_v14 = vld [vmem:[#allocation14 + $0x11d0] sm:$0xf0] }
 0x30d   :  { %v7822_v44 = vld [vmem:[#allocation14 + $0x870] sm:$0xf]  ;;  %v7055_v19 = vor.u32 %v9919_v18, %v7054_v41  ;;  %v8979_v30 = vor.u32 %v10387_v7, %v8976_v14  ;;  %v7248_v7 = vld [vmem:[#allocation14 + $0x450] sm:$0xf0] }
 0x30e   :  { %5845 = vmatpush.bf16.msrb.mxu3 %v8111_v58  ;;  %5873 = vmatpush.bf16.msra.mxu1 %v9455_v26  ;;  %v10111_v45 = vld [vmem:[#allocation14 + $0x8cc] sm:$0xf0]  ;;  %v10579_v26 = vld [vmem:[#allocation14 + $0x1774] sm:$0xf] }
 0x30f   :  { %v8398_v9 = vld [vmem:[#allocation14 + $0xcf0] sm:$0xf]  ;;  %v7823_v49 = vor.u32 %v10111_v45, %v7822_v44  ;;  %v10003_v44 = vld [vmem:[#allocation14 + $0x574] sm:$0xf] }
 0x310   :  { %5833 = vmatpush.bf16.msrb.mxu2 %v7247_v33  ;;  %5861 = vmatpush.bf16.msra.mxu0 %v8591_v31  ;;  %v10255_v21 = vld [vmem:[#allocation14 + $0xd4c] sm:$0xf0]  ;;  %v5607_v33 = vadd.f32 %v11097_v62, %v5594_v61  ;;  %v9747_v31 = vor.u32 %v10579_v26, %v9744_v16  ;;  %v5582_v62 = vpop.f32.mrf.mxu2  ;;  %v10195_v45 = vld [vmem:[#allocation14 + $0xb74] sm:$0xf] }
 0x311   :  { %v9166_v23 = vld [vmem:[#allocation14 + $0x12f0] sm:$0xf]  ;;  %v8399_v24 = vor.u32 %v10255_v21, %v8398_v9  ;;  %v8211_v34 = vor.u32 %v10195_v45, %v8208_v56  ;;  %v9456_v61 = vld [vmem:[#allocation14 + $0x1590] sm:$0xf0] }
 0x312   :  { %5846 = vmatpush.bf16.msrb.mxu3 %v8015_v17  ;;  %5874 = vmatpush.bf16.msra.mxu1 %v9359_v32  ;;  %v10447_v51 = vld [vmem:[#allocation14 + $0x134c] sm:$0xf0]  ;;  %v5620_v29 = vadd.f32 %v11099_v63, %v5607_v33  ;;  %v8880_v32 = vld [vmem:[#allocation14 + $0x1110] sm:$0xf0] }
 0x313   :  { %v6958_v53 = vld [vmem:[#allocation14 + $0x1b0] sm:$0xf]  ;;  %v9167_v42 = vor.u32 %v10447_v51, %v9166_v23  ;;  %v7440_v63 = vld [vmem:[#allocation14 + $0x5d0] sm:$0xf0] }
 0x314   :  { %5834 = vmatpush.bf16.msrb.mxu2 %v7151_v39  ;;  %v9895_v55 = vld [vmem:[#allocation14 + $0x20c] sm:$0xf0]  ;;  %5862 = vmatpush.bf16.msra.mxu0 %v8495_v47  ;;  %v6484_v43 = vrot.slane %v5620_v29, 2  ;;  %v8883_v47 = vor.u32 %v10363_v28, %v8880_v32  ;;  %v8784_v23 = vld [vmem:[#allocation14 + $0x1050] sm:$0xf0] }
 0x315   :  { %v7726_v2 = vld [vmem:[#allocation14 + $0x7b0] sm:$0xf]  ;;  %v6959_v4 = vor.u32 %v9895_v55, %v6958_v53  ;;  %v10531_v51 = vld [vmem:[#allocation14 + $0x15f4] sm:$0xf]  ;;  %v7443_v53 = vor.u32 %v10003_v44, %v7440_v63 }
 0x316   :  { %5847 = vmatpush.bf16.msrb.mxu3 %v7919_v20  ;;  %v10087_v8 = vld [vmem:[#allocation14 + $0x80c] sm:$0xf0]  ;;  %5875 = vmatpush.bf16.msra.mxu1 %v9263_v48  ;;  %v5595_v20 = vpop.f32.mrf.mxu3  ;;  %v6504_v46 = vsel %vm6499_vm3, %v6483_v10, %v6484_v43  ;;  %v9651_v48 = vor.u32 %v10555_v37, %v9648_v38  ;;  %v9979_v55 = vld [vmem:[#allocation14 + $0x4b4] sm:$0xf]  ;;  %v9555_v57 = vor.u32 %v10531_v51, %v9552_v54 }
 0x317   :  { %v8302_v58 = vld [vmem:[#allocation14 + $0xc30] sm:$0xf]  ;;  %v7727_v5 = vor.u32 %v10087_v8, %v7726_v2  ;;  %v6505_v9 = vsel %vm6501_vm4, %v11081_v50, %v6504_v46  ;;  %v7344_v2 = vld [vmem:[#allocation14 + $0x510] sm:$0xf0] }
 0x318   :  { %v10231_v59 = vld [vmem:[#allocation14 + $0xc8c] sm:$0xf0]  ;;  %5835 = vmatpush.bf16.msrb.mxu2 %v7055_v19  ;;  %5863 = vmatpush.bf16.msra.mxu0 %v8399_v24  ;;  %6525 = vst [vmem:[#allocation17 + $0x8] sm:$0xff] %v6505_v9  ;;  %v10171_v8 = vld [vmem:[#allocation14 + $0xab4] sm:$0xf] }
 0x319   :  { %v9070_v60 = vld [vmem:[#allocation14 + $0x1230] sm:$0xf]  ;;  %v8303_v25 = vor.u32 %v10231_v59, %v8302_v58  ;;  %v10315_v24 = vld [vmem:[#allocation14 + $0xf34] sm:$0xf]  ;;  %v7347_v58 = vor.u32 %v9979_v55, %v7344_v2  ;;  %v8115_v59 = vor.u32 %v10171_v8, %v8112_v52 }
 0x31a   :  { %5848 = vmatpush.bf16.msrb.mxu3 %v7823_v49  ;;  %v10423_v6 = vld [vmem:[#allocation14 + $0x128c] sm:$0xf0]  ;;  %5876 = vmatpush.bf16.msra.mxu1 %v9167_v42  ;;  %v10339_v49 = vld [vmem:[#allocation14 + $0xff4] sm:$0xf] }
 0x31b   :  { %v6862_v3 = vld [vmem:[#allocation14 + $0xf0] sm:$0xf]  ;;  %v9071_v27 = vor.u32 %v10423_v6, %v9070_v60  ;;  %v8787_v50 = vor.u32 %v10339_v49, %v8784_v23  ;;  %v8688_v42 = vld [vmem:[#allocation14 + $0xf90] sm:$0xf0]  ;;  %v11118_v6 = vpop.f32.mrf.mxu1 }
 0x31c   :  { %v9871_v17 = vld [vmem:[#allocation14 + $0x14c] sm:$0xf0]  ;;  %5836 = vmatpush.bf16.msrb.mxu2 %v6959_v4  ;;  %5864 = vmatpush.bf16.msra.mxu0 %v8303_v25  ;;  %v10507_v60 = vld [vmem:[#allocation14 + $0x1534] sm:$0xf]  ;;  %v8691_v16 = vor.u32 %v10315_v24, %v8688_v42 }
 0x31d   :  { %v7630_v22 = vld [vmem:[#allocation14 + $0x6f0] sm:$0xf]  ;;  %v6863_v15 = vor.u32 %v9871_v17, %v6862_v3  ;;  %v9955_v4 = vld [vmem:[#allocation14 + $0x3f4] sm:$0xf]  ;;  %v9459_v3 = vor.u32 %v10507_v60, %v9456_v61  ;;  %v8982_v60 = vld [vmem:[#allocation14 + $0x1178] sm:$0xf] }
 0x31e   :  { %v10063_v0 = vld [vmem:[#allocation14 + $0x74c] sm:$0xf0]  ;;  %5849 = vmatpush.bf16.msrb.mxu3 %v7727_v5  ;;  %5877 = vmatpush.bf16.msra.mxu1 %v9071_v27  ;;  %v11116_v5 = vpop.f32.mrf.mxu0  ;;  %v10147_v14 = vld [vmem:[#allocation14 + $0x9f4] sm:$0xf]  ;;  %v7251_v17 = vor.u32 %v9955_v4, %v7248_v7  ;;  %v10400_v61 = vld [vmem:[#allocation14 + $0x11d4] sm:$0xf0] }
 0x31f   :  { %v7631_v39 = vor.u32 %v10063_v0, %v7630_v22  ;;  %v6766_v40 = vld [vmem:[#allocation14 + $0x30] sm:$0xf]  ;;  %5865 = vmatmul.bf16.vlgmr.msra.gmra.mxu0 %v10962_v12  ;;  %v8016_v26 = vld [vmem:[#allocation14 + $0xa50] sm:$0xf0]  ;;  %v9750_v4 = vld [vmem:[#allocation14 + $0x1778] sm:$0xf] }
 0x320   :  { %v9847_v1 = vld [vmem:[#allocation14 + $0x8c] sm:$0xf0]  ;;  %5909 = vmatpush.bf16.msrb.mxu0 %v8979_v30  ;;  %5837 = vmatpush.bf16.msrb.mxu2 %v6863_v15  ;;  %v10291_v11 = vld [vmem:[#allocation14 + $0xe74] sm:$0xf]  ;;  %v8019_v22 = vor.u32 %v10147_v14, %v8016_v26  ;;  %v11122_v15 = vld [vmem:[#allocation16 + $0x8] sm:$0xff] }
 0x321   :  { %v7534_v41 = vld [vmem:[#allocation14 + $0x630] sm:$0xf]  ;;  %v6767_v21 = vor.u32 %v9847_v1, %v6766_v40  ;;  %5878 = vmatmul.bf16.vlgmr.msra.gmra.mxu1 %v10964_v13  ;;  %v8592_v33 = vld [vmem:[#allocation14 + $0xed0] sm:$0xf0]  ;;  %v1327_v63 = vperm.slane %v11122_v15, 0 }
 0x322   :  { %v10039_v18 = vld [vmem:[#allocation14 + $0x68c] sm:$0xf0]  ;;  %5922 = vmatpush.bf16.msrb.mxu1 %v9747_v31  ;;  %5850 = vmatpush.bf16.msrb.mxu3 %v7631_v39  ;;  %v10483_v0 = vld [vmem:[#allocation14 + $0x1474] sm:$0xf]  ;;  %v8595_v31 = vor.u32 %v10291_v11, %v8592_v33  ;;  %v10592_v7 = vld [vmem:[#allocation14 + $0x17d4] sm:$0xf0] }
 0x323   :  { %v7535_v19 = vor.u32 %v10039_v18, %v7534_v41  ;;  %v9360_v25 = vld [vmem:[#allocation14 + $0x14d0] sm:$0xf0]  ;;  %v5673_v10 = vpop.f32.mrf.mxu1 }
 0x324   :  { %5910 = vmatpush.bf16.msrb.mxu0 %v8883_v47  ;;  %5838 = vmatpush.bf16.msrb.mxu2 %v6767_v21  ;;  %v9931_v27 = vld [vmem:[#allocation14 + $0x334] sm:$0xf]  ;;  %v9363_v32 = vor.u32 %v10483_v0, %v9360_v25  ;;  %v8983_v0 = vor.u32 %v10400_v61, %v8982_v60  ;;  %v9751_v25 = vor.u32 %v10592_v7, %v9750_v4  ;;  %v8598_v61 = vld [vmem:[#allocation14 + $0xe78] sm:$0xf] }
 0x325   :  { %v7152_v28 = vld [vmem:[#allocation14 + $0x390] sm:$0xf0]  ;;  %v10304_v4 = vld [vmem:[#allocation14 + $0xed4] sm:$0xf0] }
 0x326   :  { %5923 = vmatpush.bf16.msrb.mxu1 %v9651_v48  ;;  %5851 = vmatpush.bf16.msrb.mxu3 %v7535_v19  ;;  %v10123_v29 = vld [vmem:[#allocation14 + $0x934] sm:$0xf]  ;;  %v7155_v39 = vor.u32 %v9931_v27, %v7152_v28  ;;  %v5660_v41 = vpop.f32.mrf.mxu0  ;;  %v5632_v23 = vpop.f32.mrf.mxu2  ;;  %v8886_v27 = vld [vmem:[#allocation14 + $0x10b8] sm:$0xf] }
 0x327   :  { %5839 = vmatmul.bf16.vlgmr.msrb.gmra.mxu2 %v10968_v35  ;;  %v7920_v30 = vld [vmem:[#allocation14 + $0x990] sm:$0xf0]  ;;  %v5645_v51 = vpop.f32.mrf.mxu3  ;;  %v5633_v55 = vadd.f32 %v5632_v23, %v1327_v63  ;;  %v10376_v28 = vld [vmem:[#allocation14 + $0x1114] sm:$0xf0] }
 0x328   :  { %5883 = vmatpush.bf16.msra.mxu2 %v7443_v53  ;;  %5911 = vmatpush.bf16.msrb.mxu0 %v8787_v50  ;;  %v10267_v37 = vld [vmem:[#allocation14 + $0xdb4] sm:$0xf]  ;;  %v7923_v62 = vor.u32 %v10123_v29, %v7920_v30  ;;  %v9654_v29 = vld [vmem:[#allocation14 + $0x16b8] sm:$0xf]  ;;  %v8887_v10 = vor.u32 %v10376_v28, %v8886_v27 }
 0x329   :  { %5852 = vmatmul.bf16.vlgmr.msrb.gmra.mxu3 %v10970_v36  ;;  %v8496_v38 = vld [vmem:[#allocation14 + $0xe10] sm:$0xf0]  ;;  %v5646_v24 = vadd.f32 %v5645_v51, %v5633_v55  ;;  %v10208_v41 = vld [vmem:[#allocation14 + $0xbd4] sm:$0xf0] }
 0x32a   :  { %5896 = vmatpush.bf16.msra.mxu3 %v8211_v34  ;;  %5924 = vmatpush.bf16.msrb.mxu1 %v9555_v57  ;;  %v10459_v20 = vld [vmem:[#allocation14 + $0x13b4] sm:$0xf]  ;;  %v8499_v45 = vor.u32 %v10267_v37, %v8496_v38  ;;  %v10568_v37 = vld [vmem:[#allocation14 + $0x1714] sm:$0xf0] }
 0x32b   :  { %v9264_v40 = vld [vmem:[#allocation14 + $0x1410] sm:$0xf0]  ;;  %v5659_v26 = vadd.f32 %v11116_v5, %v5646_v24  ;;  %v8790_v63 = vld [vmem:[#allocation14 + $0xff8] sm:$0xf] }
 0x32c   :  { %5884 = vmatpush.bf16.msra.mxu2 %v7347_v58  ;;  %5912 = vmatpush.bf16.msrb.mxu0 %v8691_v16  ;;  %v9907_v1 = vld [vmem:[#allocation14 + $0x274] sm:$0xf]  ;;  %v9267_v56 = vor.u32 %v10459_v20, %v9264_v40  ;;  %v7446_v40 = vld [vmem:[#allocation14 + $0x578] sm:$0xf] }
 0x32d   :  { %v7056_v43 = vld [vmem:[#allocation14 + $0x2d0] sm:$0xf0]  ;;  %v9968_v24 = vld [vmem:[#allocation14 + $0x454] sm:$0xf0] }
 0x32e   :  { %5897 = vmatpush.bf16.msra.mxu3 %v8115_v59  ;;  %5925 = vmatpush.bf16.msrb.mxu1 %v9459_v3  ;;  %v10099_v18 = vld [vmem:[#allocation14 + $0x874] sm:$0xf]  ;;  %v7059_v48 = vor.u32 %v9907_v1, %v7056_v43  ;;  %v5634_v5 = vpop.f32.mrf.mxu2  ;;  %v8214_v1 = vld [vmem:[#allocation14 + $0xb78] sm:$0xf]  ;;  %v9655_v43 = vor.u32 %v10568_v37, %v9654_v29 }
 0x32f   :  { %v7824_v44 = vld [vmem:[#allocation14 + $0x8d0] sm:$0xf0]  ;;  %v8502_v27 = vld [vmem:[#allocation14 + $0xdb8] sm:$0xf] }
 0x330   :  { %5885 = vmatpush.bf16.msra.mxu2 %v7251_v17  ;;  %5913 = vmatpush.bf16.msrb.mxu0 %v8595_v31  ;;  %v10243_v46 = vld [vmem:[#allocation14 + $0xcf4] sm:$0xf]  ;;  %v7827_v9 = vor.u32 %v10099_v18, %v7824_v44  ;;  %v10280_v28 = vld [vmem:[#allocation14 + $0xe14] sm:$0xf0] }
 0x331   :  { %v8400_v47 = vld [vmem:[#allocation14 + $0xd50] sm:$0xf0]  ;;  %v10472_v5 = vld [vmem:[#allocation14 + $0x1414] sm:$0xf0] }
 0x332   :  { %5898 = vmatpush.bf16.msra.mxu3 %v8019_v22  ;;  %5926 = vmatpush.bf16.msrb.mxu1 %v9363_v32  ;;  %v10435_v21 = vld [vmem:[#allocation14 + $0x12f4] sm:$0xf]  ;;  %v8403_v2 = vor.u32 %v10243_v46, %v8400_v47  ;;  %v11127_v22 = vadd.f32 %v11118_v6, %v5659_v26  ;;  %v5647_v32 = vpop.f32.mrf.mxu3  ;;  %v10016_v6 = vld [vmem:[#allocation14 + $0x5d4] sm:$0xf0]  ;;  %v8215_v46 = vor.u32 %v10208_v41, %v8214_v1 }
 0x333   :  { %v9168_v19 = vld [vmem:[#allocation14 + $0x1350] sm:$0xf0]  ;;  %v9558_v47 = vld [vmem:[#allocation14 + $0x15f8] sm:$0xf] }
 0x334   :  { %5886 = vmatpush.bf16.msra.mxu2 %v7155_v39  ;;  %v9883_v49 = vld [vmem:[#allocation14 + $0x1b4] sm:$0xf]  ;;  %5914 = vmatpush.bf16.msrb.mxu0 %v8499_v45  ;;  %v9171_v8 = vor.u32 %v10435_v21, %v9168_v19  ;;  %v10352_v45 = vld [vmem:[#allocation14 + $0x1054] sm:$0xf0] }
 0x335   :  { %v6960_v53 = vld [vmem:[#allocation14 + $0x210] sm:$0xf0]  ;;  %v9992_v21 = vld [vmem:[#allocation14 + $0x514] sm:$0xf0]  ;;  %v8791_v23 = vor.u32 %v10352_v45, %v8790_v63 }
 0x336   :  { %5899 = vmatpush.bf16.msra.mxu3 %v7923_v62  ;;  %v10075_v34 = vld [vmem:[#allocation14 + $0x7b4] sm:$0xf]  ;;  %5927 = vmatpush.bf16.msrb.mxu1 %v9267_v56  ;;  %v6963_v42 = vor.u32 %v9883_v49, %v6960_v53  ;;  %v7447_v56 = vor.u32 %v10016_v6, %v7446_v40  ;;  %v8118_v19 = vld [vmem:[#allocation14 + $0xab8] sm:$0xf]  ;;  %v1328_v40 = vperm.slane %v11122_v15, 1  ;;  %v8503_v6 = vor.u32 %v10280_v28, %v8502_v27 }
 0x337   :  { %v7728_v54 = vld [vmem:[#allocation14 + $0x810] sm:$0xf0]  ;;  %v10184_v49 = vld [vmem:[#allocation14 + $0xb14] sm:$0xf0] }
 0x338   :  { %v10219_v52 = vld [vmem:[#allocation14 + $0xc34] sm:$0xf]  ;;  %5887 = vmatpush.bf16.msra.mxu2 %v7059_v48  ;;  %v7731_v58 = vor.u32 %v10075_v34, %v7728_v54  ;;  %5915 = vmatpush.bf16.msrb.mxu0 %v8403_v2  ;;  %v10544_v48 = vld [vmem:[#allocation14 + $0x1654] sm:$0xf0]  ;;  %v8119_v55 = vor.u32 %v10184_v49, %v8118_v19 }
 0x339   :  { %v8304_v50 = vld [vmem:[#allocation14 + $0xc90] sm:$0xf0]  ;;  %v9559_v51 = vor.u32 %v10544_v48, %v9558_v47  ;;  %v8694_v53 = vld [vmem:[#allocation14 + $0xf38] sm:$0xf] }
 0x33a   :  { %v10411_v57 = vld [vmem:[#allocation14 + $0x1234] sm:$0xf]  ;;  %5900 = vmatpush.bf16.msra.mxu3 %v7827_v9  ;;  %5928 = vmatpush.bf16.msrb.mxu1 %v9171_v8  ;;  %v8307_v33 = vor.u32 %v10219_v52, %v8304_v50  ;;  %v7350_v9 = vld [vmem:[#allocation14 + $0x4b8] sm:$0xf] }
 0x33b   :  { %v9072_v59 = vld [vmem:[#allocation14 + $0x1290] sm:$0xf0]  ;;  %v10328_v34 = vld [vmem:[#allocation14 + $0xf94] sm:$0xf0]  ;;  %v7351_v54 = vor.u32 %v9992_v21, %v7350_v9 }
 0x33c   :  { %v9859_v14 = vld [vmem:[#allocation14 + $0xf4] sm:$0xf]  ;;  %v9075_v17 = vor.u32 %v10411_v57, %v9072_v59  ;;  %5888 = vmatpush.bf16.msra.mxu2 %v6963_v42  ;;  %5916 = vmatpush.bf16.msrb.mxu0 %v8307_v33  ;;  %v9462_v2 = vld [vmem:[#allocation14 + $0x1538] sm:$0xf]  ;;  %v11131_v50 = vpop.f32.mrf.mxu0  ;;  %v8695_v59 = vor.u32 %v10328_v34, %v8694_v53 }
 0x33d   :  { %v6864_v16 = vld [vmem:[#allocation14 + $0x150] sm:$0xf0]  ;;  %v10520_v8 = vld [vmem:[#allocation14 + $0x1594] sm:$0xf0] }
 0x33e   :  { %v10051_v3 = vld [vmem:[#allocation14 + $0x6f4] sm:$0xf]  ;;  %5901 = vmatpush.bf16.msra.mxu3 %v7731_v58  ;;  %v6867_v30 = vor.u32 %v9859_v14, %v6864_v16  ;;  %5929 = vmatpush.bf16.msrb.mxu1 %v9075_v17  ;;  %v7254_v52 = vld [vmem:[#allocation14 + $0x3f8] sm:$0xf]  ;;  %v11133_v57 = vpop.f32.mrf.mxu1  ;;  %v9463_v60 = vor.u32 %v10520_v8, %v9462_v2  ;;  %v10388_v8 = vld [vmem:[#allocation14 + $0x117c] sm:$0xf] }
 0x33f   :  { %v7632_v11 = vld [vmem:[#allocation14 + $0x750] sm:$0xf0]  ;;  %5917 = vmatmul.bf16.vlgmr.msrb.gmra.mxu0 %v10962_v12  ;;  %v8022_v42 = vld [vmem:[#allocation14 + $0x9f8] sm:$0xf]  ;;  %v7255_v7 = vor.u32 %v9968_v24, %v7254_v52  ;;  %v8984_v52 = vld [vmem:[#allocation14 + $0x11d8] sm:$0xf0] }
 0x340   :  { %v7635_v31 = vor.u32 %v10051_v3, %v7632_v11  ;;  %v9835_v38 = vld [vmem:[#allocation14 + $0x34] sm:$0xf]  ;;  %5961 = vmatpush.bf16.msra.mxu0 %v8983_v0  ;;  %5889 = vmatpush.bf16.msra.mxu2 %v6867_v30  ;;  %v10160_v58 = vld [vmem:[#allocation14 + $0xa54] sm:$0xf0]  ;;  %v8599_v0 = vor.u32 %v10304_v4, %v8598_v61  ;;  %v10580_v24 = vld [vmem:[#allocation14 + $0x177c] sm:$0xf] }
 0x341   :  { %v6768_v39 = vld [vmem:[#allocation14 + $0x90] sm:$0xf0]  ;;  %5930 = vmatmul.bf16.vlgmr.msrb.gmra.mxu1 %v10964_v13  ;;  %v8023_v14 = vor.u32 %v10160_v58, %v8022_v42  ;;  %v9366_v26 = vld [vmem:[#allocation14 + $0x1478] sm:$0xf]  ;;  %v9752_v42 = vld [vmem:[#allocation14 + $0x17d8] sm:$0xf0] }
 0x342   :  { %v10027_v62 = vld [vmem:[#allocation14 + $0x634] sm:$0xf]  ;;  %5974 = vmatpush.bf16.msra.mxu1 %v9751_v25  ;;  %5902 = vmatpush.bf16.msra.mxu3 %v7635_v31  ;;  %v6771_v18 = vor.u32 %v9835_v38, %v6768_v39  ;;  %v10496_v16 = vld [vmem:[#allocation14 + $0x14d4] sm:$0xf0] }
 0x343   :  { %v7536_v20 = vld [vmem:[#allocation14 + $0x690] sm:$0xf0]  ;;  %v7158_v3 = vld [vmem:[#allocation14 + $0x338] sm:$0xf]  ;;  %v9367_v25 = vor.u32 %v10496_v16, %v9366_v26  ;;  %v10364_v26 = vld [vmem:[#allocation14 + $0x10bc] sm:$0xf] }
 0x344   :  { %v7539_v44 = vor.u32 %v10027_v62, %v7536_v20  ;;  %5962 = vmatpush.bf16.msra.mxu0 %v8887_v10  ;;  %5890 = vmatpush.bf16.msra.mxu2 %v6771_v18  ;;  %v9944_v11 = vld [vmem:[#allocation14 + $0x394] sm:$0xf0]  ;;  %v5712_v37 = vpop.f32.mrf.mxu0 }
 0x345   :  { %v7926_v33 = vld [vmem:[#allocation14 + $0x938] sm:$0xf]  ;;  %v7159_v29 = vor.u32 %v9944_v11, %v7158_v3  ;;  %v8987_v3 = vor.u32 %v10388_v8, %v8984_v52  ;;  %v9755_v11 = vor.u32 %v10580_v24, %v9752_v42  ;;  %v10004_v37 = vld [vmem:[#allocation14 + $0x57c] sm:$0xf] }
 0x346   :  { %5975 = vmatpush.bf16.msra.mxu1 %v9655_v43  ;;  %5903 = vmatpush.bf16.msra.mxu3 %v7539_v44  ;;  %v10136_v17 = vld [vmem:[#allocation14 + $0x994] sm:$0xf0]  ;;  %v5725_v38 = vpop.f32.mrf.mxu1  ;;  %v8024_v8 = vld [vmem:[#allocation14 + $0xa58] sm:$0xf0] }
 0x347   :  { %5891 = vmatmul.bf16.vlgmr.msra.gmra.mxu2 %v10968_v35  ;;  %v7927_v30 = vor.u32 %v10136_v17, %v7926_v33  ;;  %v9270_v31 = vld [vmem:[#allocation14 + $0x13b8] sm:$0xf]  ;;  %v8888_v33 = vld [vmem:[#allocation14 + $0x1118] sm:$0xf0] }
 0x348   :  { %5935 = vmatpush.bf16.msrb.mxu2 %v7447_v56  ;;  %5963 = vmatpush.bf16.msra.mxu0 %v8791_v23  ;;  %v7062_v32 = vld [vmem:[#allocation14 + $0x278] sm:$0xf]  ;;  %v9271_v1 = vor.u32 %v10472_v5, %v9270_v31  ;;  %v10556_v17 = vld [vmem:[#allocation14 + $0x16bc] sm:$0xf] }
 0x349   :  { %5904 = vmatmul.bf16.vlgmr.msra.gmra.mxu3 %v10970_v36  ;;  %v9920_v39 = vld [vmem:[#allocation14 + $0x2d4] sm:$0xf0]  ;;  %v10196_v38 = vld [vmem:[#allocation14 + $0xb7c] sm:$0xf] }
 0x34a   :  { %5948 = vmatpush.bf16.msrb.mxu3 %v8215_v46  ;;  %5976 = vmatpush.bf16.msra.mxu1 %v9559_v51  ;;  %v7830_v62 = vld [vmem:[#allocation14 + $0x878] sm:$0xf]  ;;  %v7063_v43 = vor.u32 %v9920_v39, %v7062_v32  ;;  %v5684_v56 = vpop.f32.mrf.mxu2  ;;  %v8216_v39 = vld [vmem:[#allocation14 + $0xbd8] sm:$0xf0] }
 0x34b   :  { %v10112_v20 = vld [vmem:[#allocation14 + $0x8d4] sm:$0xf0]  ;;  %v5685_v21 = vadd.f32 %v5684_v56, %v1328_v40  ;;  %v10172_v56 = vld [vmem:[#allocation14 + $0xabc] sm:$0xf] }
 0x34c   :  { %5936 = vmatpush.bf16.msrb.mxu2 %v7351_v54  ;;  %5964 = vmatpush.bf16.msra.mxu0 %v8695_v59  ;;  %v8406_v41 = vld [vmem:[#allocation14 + $0xcf8] sm:$0xf]  ;;  %v7831_v18 = vor.u32 %v10112_v20, %v7830_v62  ;;  %v5697_v46 = vpop.f32.mrf.mxu3  ;;  %v8891_v20 = vor.u32 %v10364_v26, %v8888_v33  ;;  %v10292_v42 = vld [vmem:[#allocation14 + $0xe7c] sm:$0xf] }
 0x34d   :  { %v10256_v10 = vld [vmem:[#allocation14 + $0xd54] sm:$0xf0]  ;;  %v5698_v34 = vadd.f32 %v5697_v46, %v5685_v21  ;;  %v8120_v46 = vld [vmem:[#allocation14 + $0xb18] sm:$0xf0] }
 0x34e   :  { %5949 = vmatpush.bf16.msrb.mxu3 %v8119_v55  ;;  %5977 = vmatpush.bf16.msra.mxu1 %v9463_v60  ;;  %v9174_v44 = vld [vmem:[#allocation14 + $0x12f8] sm:$0xf]  ;;  %v8407_v19 = vor.u32 %v10256_v10, %v8406_v41  ;;  %v10340_v41 = vld [vmem:[#allocation14 + $0xffc] sm:$0xf] }
 0x34f   :  { %v10448_v63 = vld [vmem:[#allocation14 + $0x1354] sm:$0xf0]  ;;  %v5711_v59 = vadd.f32 %v11131_v50, %v5698_v34  ;;  %v8792_v10 = vld [vmem:[#allocation14 + $0x1058] sm:$0xf0] }
 0x350   :  { %5937 = vmatpush.bf16.msrb.mxu2 %v7255_v7  ;;  %5965 = vmatpush.bf16.msra.mxu0 %v8599_v0  ;;  %v6966_v45 = vld [vmem:[#allocation14 + $0x1b8] sm:$0xf]  ;;  %v9175_v49 = vor.u32 %v10448_v63, %v9174_v44  ;;  %v9656_v0 = vld [vmem:[#allocation14 + $0x1718] sm:$0xf0] }
 0x351   :  { %v9896_v47 = vld [vmem:[#allocation14 + $0x214] sm:$0xf0]  ;;  %v5724_v16 = vadd.f32 %v11133_v57, %v5711_v59  ;;  %v7448_v57 = vld [vmem:[#allocation14 + $0x5d8] sm:$0xf0]  ;;  %v9659_v40 = vor.u32 %v10556_v17, %v9656_v0 }
 0x352   :  { %5950 = vmatpush.bf16.msrb.mxu3 %v8023_v14  ;;  %5978 = vmatpush.bf16.msra.mxu1 %v9367_v25  ;;  %v7734_v48 = vld [vmem:[#allocation14 + $0x7b8] sm:$0xf]  ;;  %v6967_v54 = vor.u32 %v9896_v47, %v6966_v45  ;;  %v5686_v50 = vpop.f32.mrf.mxu2  ;;  %v10532_v44 = vld [vmem:[#allocation14 + $0x15fc] sm:$0xf]  ;;  %v8795_v47 = vor.u32 %v10340_v41, %v8792_v10 }
 0x353   :  { %v10088_v9 = vld [vmem:[#allocation14 + $0x814] sm:$0xf0]  ;;  %v6485_v5 = vrot.slane %v5724_v16, 6  ;;  %v9560_v63 = vld [vmem:[#allocation14 + $0x1658] sm:$0xf0] }
 0x354   :  { %5938 = vmatpush.bf16.msrb.mxu2 %v7159_v29  ;;  %5966 = vmatpush.bf16.msra.mxu0 %v8503_v6  ;;  %v8310_v23 = vld [vmem:[#allocation14 + $0xc38] sm:$0xf]  ;;  %v7735_v55 = vor.u32 %v10088_v9, %v7734_v48  ;;  %v5699_v28 = vpop.f32.mrf.mxu3  ;;  %v7352_v45 = vld [vmem:[#allocation14 + $0x518] sm:$0xf0]  ;;  %v9563_v48 = vor.u32 %v10532_v44, %v9560_v63 }
 0x355   :  { %v10232_v51 = vld [vmem:[#allocation14 + $0xc94] sm:$0xf0]  ;;  %v11142_v62 = vsel %vm6497_vm2, %v11127_v22, %v6485_v5  ;;  %v9980_v22 = vld [vmem:[#allocation14 + $0x4bc] sm:$0xf] }
 0x356   :  { %5951 = vmatpush.bf16.msrb.mxu3 %v7927_v30  ;;  %5979 = vmatpush.bf16.msra.mxu1 %v9271_v1  ;;  %v9078_v53 = vld [vmem:[#allocation14 + $0x1238] sm:$0xf]  ;;  %v8311_v7 = vor.u32 %v10232_v51, %v8310_v23  ;;  %v10316_v9 = vld [vmem:[#allocation14 + $0xf3c] sm:$0xf] }
 0x357   :  { %v10424_v2 = vld [vmem:[#allocation14 + $0x1294] sm:$0xf0]  ;;  %v8696_v21 = vld [vmem:[#allocation14 + $0xf98] sm:$0xf0] }
 0x358   :  { %5939 = vmatpush.bf16.msrb.mxu2 %v7063_v43  ;;  %v6870_v58 = vld [vmem:[#allocation14 + $0xf8] sm:$0xf]  ;;  %5967 = vmatpush.bf16.msra.mxu0 %v8407_v19  ;;  %v9079_v14 = vor.u32 %v10424_v2, %v9078_v53  ;;  %v7451_v43 = vor.u32 %v10004_v37, %v7448_v57  ;;  %v7355_v19 = vor.u32 %v9980_v22, %v7352_v45  ;;  %v10508_v23 = vld [vmem:[#allocation14 + $0x153c] sm:$0xf] }
 0x359   :  { %v9872_v60 = vld [vmem:[#allocation14 + $0x154] sm:$0xf0]  ;;  %v9464_v51 = vld [vmem:[#allocation14 + $0x1598] sm:$0xf0]  ;;  %v8699_v52 = vor.u32 %v10316_v9, %v8696_v21 }
 0x35a   :  { %5952 = vmatpush.bf16.msrb.mxu3 %v7831_v18  ;;  %v7638_v61 = vld [vmem:[#allocation14 + $0x6f8] sm:$0xf]  ;;  %5980 = vmatpush.bf16.msra.mxu1 %v9175_v49  ;;  %v6871_v25 = vor.u32 %v9872_v60, %v6870_v58  ;;  %v8219_v18 = vor.u32 %v10196_v38, %v8216_v39  ;;  %v8123_v49 = vor.u32 %v10172_v56, %v8120_v46  ;;  %v9956_v53 = vld [vmem:[#allocation14 + $0x3fc] sm:$0xf] }
 0x35b   :  { %v10064_v4 = vld [vmem:[#allocation14 + $0x754] sm:$0xf0]  ;;  %v10148_v2 = vld [vmem:[#allocation14 + $0x9fc] sm:$0xf]  ;;  %v9467_v24 = vor.u32 %v10508_v23, %v9464_v51  ;;  %v9758_v23 = vld [vmem:[#allocation14 + $0x1780] sm:$0xf] }
 0x35c   :  { %5940 = vmatpush.bf16.msrb.mxu2 %v6967_v54  ;;  %v7639_v27 = vor.u32 %v10064_v4, %v7638_v61  ;;  %v6774_v29 = vld [vmem:[#allocation14 + $0x38] sm:$0xf]  ;;  %5968 = vmatpush.bf16.msra.mxu0 %v8311_v7  ;;  %v11146_v34 = vpop.f32.mrf.mxu0  ;;  %v8600_v58 = vld [vmem:[#allocation14 + $0xed8] sm:$0xf0]  ;;  %v8027_v60 = vor.u32 %v10148_v2, %v8024_v8  ;;  %v10593_v51 = vld [vmem:[#allocation14 + $0x17dc] sm:$0xf0] }
 0x35d   :  { %v9848_v30 = vld [vmem:[#allocation14 + $0x94] sm:$0xf0]  ;;  %v10484_v61 = vld [vmem:[#allocation14 + $0x147c] sm:$0xf] }
 0x35e   :  { %5953 = vmatpush.bf16.msrb.mxu3 %v7735_v55  ;;  %v7542_v31 = vld [vmem:[#allocation14 + $0x638] sm:$0xf]  ;;  %5981 = vmatpush.bf16.msra.mxu1 %v9079_v14  ;;  %v6775_v6 = vor.u32 %v9848_v30, %v6774_v29  ;;  %v11148_v54 = vpop.f32.mrf.mxu1  ;;  %v7256_v55 = vld [vmem:[#allocation14 + $0x458] sm:$0xf0] }
 0x35f   :  { %v10040_v32 = vld [vmem:[#allocation14 + $0x694] sm:$0xf0]  ;;  %5969 = vmatmul.bf16.vlgmr.msra.gmra.mxu0 %v10962_v12  ;;  %v7259_v59 = vor.u32 %v9956_v53, %v7256_v55  ;;  %v9368_v4 = vld [vmem:[#allocation14 + $0x14d8] sm:$0xf0] }
 0x360   :  { %6013 = vmatpush.bf16.msrb.mxu0 %v8987_v3  ;;  %5941 = vmatpush.bf16.msrb.mxu2 %v6871_v25  ;;  %v7543_v1 = vor.u32 %v10040_v32, %v7542_v31  ;;  %v9932_v7 = vld [vmem:[#allocation14 + $0x33c] sm:$0xf]  ;;  %v8603_v3 = vor.u32 %v10292_v42, %v8600_v58  ;;  %v9759_v58 = vor.u32 %v10593_v51, %v9758_v23  ;;  %v1329_v23 = vperm.slane %v11122_v15, 2 }
 0x361   :  { %5982 = vmatmul.bf16.vlgmr.msra.gmra.mxu1 %v10964_v13  ;;  %v7160_v14 = vld [vmem:[#allocation14 + $0x398] sm:$0xf0] }
 0x362   :  { %6026 = vmatpush.bf16.msrb.mxu1 %v9755_v11  ;;  %5954 = vmatpush.bf16.msrb.mxu3 %v7639_v27  ;;  %v10124_v26 = vld [vmem:[#allocation14 + $0x93c] sm:$0xf]  ;;  %v9371_v11 = vor.u32 %v10484_v61, %v9368_v4  ;;  %v7163_v0 = vor.u32 %v9932_v7, %v7160_v14  ;;  %v9662_v61 = vld [vmem:[#allocation14 + $0x16c0] sm:$0xf] }
 0x363   :  { %v7928_v16 = vld [vmem:[#allocation14 + $0x998] sm:$0xf0] }
 0x364   :  { %6014 = vmatpush.bf16.msrb.mxu0 %v8891_v20  ;;  %5942 = vmatpush.bf16.msrb.mxu2 %v6775_v6  ;;  %v10268_v33 = vld [vmem:[#allocation14 + $0xdbc] sm:$0xf]  ;;  %v7931_v25 = vor.u32 %v10124_v26, %v7928_v16  ;;  %v5764_v29 = vpop.f32.mrf.mxu0  ;;  %v10569_v16 = vld [vmem:[#allocation14 + $0x171c] sm:$0xf0] }
 0x365   :  { %v8504_v17 = vld [vmem:[#allocation14 + $0xe18] sm:$0xf0]  ;;  %v9663_v29 = vor.u32 %v10569_v16, %v9662_v61  ;;  %v10137_v61 = vld [vmem:[#allocation14 + $0x99c] sm:$0xf0] }
 0x366   :  { %6027 = vmatpush.bf16.msrb.mxu1 %v9659_v40  ;;  %5955 = vmatpush.bf16.msrb.mxu3 %v7543_v1  ;;  %v10460_v27 = vld [vmem:[#allocation14 + $0x13bc] sm:$0xf]  ;;  %v5777_v30 = vpop.f32.mrf.mxu1  ;;  %v8507_v37 = vor.u32 %v10268_v33, %v8504_v17  ;;  %v10281_v16 = vld [vmem:[#allocation14 + $0xe1c] sm:$0xf0] }
 0x367   :  { %5943 = vmatmul.bf16.vlgmr.msrb.gmra.mxu2 %v10968_v35  ;;  %v9272_v50 = vld [vmem:[#allocation14 + $0x1418] sm:$0xf0] }
 0x368   :  { %5987 = vmatpush.bf16.msra.mxu2 %v7451_v43  ;;  %6015 = vmatpush.bf16.msrb.mxu0 %v8795_v47  ;;  %v9908_v28 = vld [vmem:[#allocation14 + $0x27c] sm:$0xf]  ;;  %v9275_v57 = vor.u32 %v10460_v27, %v9272_v50  ;;  %v8222_v27 = vld [vmem:[#allocation14 + $0xb80] sm:$0xf] }
 0x369   :  { %5956 = vmatmul.bf16.vlgmr.msrb.gmra.mxu3 %v10970_v36  ;;  %v7064_v31 = vld [vmem:[#allocation14 + $0x2d8] sm:$0xf0]  ;;  %v10209_v50 = vld [vmem:[#allocation14 + $0xbdc] sm:$0xf0] }
 0x36a   :  { %6000 = vmatpush.bf16.msra.mxu3 %v8219_v18  ;;  %6028 = vmatpush.bf16.msrb.mxu1 %v9563_v48  ;;  %v10100_v5 = vld [vmem:[#allocation14 + $0x87c] sm:$0xf]  ;;  %v7067_v20 = vor.u32 %v9908_v28, %v7064_v31  ;;  %v11152_v10 = vpop.f32.mrf.mxu2 }
 0x36b   :  { %v7832_v32 = vld [vmem:[#allocation14 + $0x8d8] sm:$0xf0] }
 0x36c   :  { %5988 = vmatpush.bf16.msra.mxu2 %v7355_v19  ;;  %6016 = vmatpush.bf16.msrb.mxu0 %v8699_v52  ;;  %v10244_v38 = vld [vmem:[#allocation14 + $0xcfc] sm:$0xf]  ;;  %v7835_v40 = vor.u32 %v10100_v5, %v7832_v32  ;;  %v11154_v43 = vpop.f32.mrf.mxu3  ;;  %v8990_v19 = vld [vmem:[#allocation14 + $0x1180] sm:$0xf] }
 0x36d   :  { %v8408_v39 = vld [vmem:[#allocation14 + $0xd58] sm:$0xf0]  ;;  %v8798_v5 = vld [vmem:[#allocation14 + $0x1000] sm:$0xf] }
 0x36e   :  { %6001 = vmatpush.bf16.msra.mxu3 %v8123_v49  ;;  %6029 = vmatpush.bf16.msrb.mxu1 %v9467_v24  ;;  %v10436_v6 = vld [vmem:[#allocation14 + $0x12fc] sm:$0xf]  ;;  %v8411_v22 = vor.u32 %v10244_v38, %v8408_v39  ;;  %v10401_v49 = vld [vmem:[#allocation14 + $0x11dc] sm:$0xf0] }
 0x36f   :  { %v9176_v1 = vld [vmem:[#allocation14 + $0x1358] sm:$0xf0]  ;;  %v8991_v42 = vor.u32 %v10401_v49, %v8990_v19  ;;  %v10353_v32 = vld [vmem:[#allocation14 + $0x105c] sm:$0xf0] }
 0x370   :  { %5989 = vmatpush.bf16.msra.mxu2 %v7259_v59  ;;  %6017 = vmatpush.bf16.msrb.mxu0 %v8603_v3  ;;  %v9884_v41 = vld [vmem:[#allocation14 + $0x1bc] sm:$0xf]  ;;  %v9179_v45 = vor.u32 %v10436_v6, %v9176_v1  ;;  %v8894_v59 = vld [vmem:[#allocation14 + $0x10c0] sm:$0xf] }
 0x371   :  { %v6968_v18 = vld [vmem:[#allocation14 + $0x218] sm:$0xf0]  ;;  %v9566_v38 = vld [vmem:[#allocation14 + $0x1600] sm:$0xf] }
 0x372   :  { %6002 = vmatpush.bf16.msra.mxu3 %v8027_v60  ;;  %6030 = vmatpush.bf16.msrb.mxu1 %v9371_v11  ;;  %v10076_v44 = vld [vmem:[#allocation14 + $0x7bc] sm:$0xf]  ;;  %v6971_v48 = vor.u32 %v9884_v41, %v6968_v18  ;;  %v10377_v60 = vld [vmem:[#allocation14 + $0x111c] sm:$0xf0]  ;;  %v5738_v14 = vpop.f32.mrf.mxu2  ;;  %v8799_v41 = vor.u32 %v10353_v32, %v8798_v5 }
 0x373   :  { %v7736_v63 = vld [vmem:[#allocation14 + $0x818] sm:$0xf0]  ;;  %v8895_v28 = vor.u32 %v10377_v60, %v8894_v59  ;;  %v10545_v39 = vld [vmem:[#allocation14 + $0x165c] sm:$0xf0] }
 0x374   :  { %5990 = vmatpush.bf16.msra.mxu2 %v7163_v0  ;;  %6018 = vmatpush.bf16.msrb.mxu0 %v8507_v37  ;;  %v10220_v56 = vld [vmem:[#allocation14 + $0xc3c] sm:$0xf]  ;;  %v7739_v9 = vor.u32 %v10076_v44, %v7736_v63  ;;  %v5751_v26 = vpop.f32.mrf.mxu3  ;;  %v7454_v0 = vld [vmem:[#allocation14 + $0x580] sm:$0xf]  ;;  %v9567_v18 = vor.u32 %v10545_v39, %v9566_v38 }
 0x375   :  { %v8312_v46 = vld [vmem:[#allocation14 + $0xc98] sm:$0xf0]  ;;  %v8126_v6 = vld [vmem:[#allocation14 + $0xac0] sm:$0xf] }
 0x376   :  { %6003 = vmatpush.bf16.msra.mxu3 %v7931_v25  ;;  %6031 = vmatpush.bf16.msrb.mxu1 %v9275_v57  ;;  %v10412_v47 = vld [vmem:[#allocation14 + $0x123c] sm:$0xf]  ;;  %v8315_v52 = vor.u32 %v10220_v56, %v8312_v46  ;;  %v10017_v25 = vld [vmem:[#allocation14 + $0x5dc] sm:$0xf0]  ;;  %v8223_v57 = vor.u32 %v10209_v50, %v8222_v27 }
 0x377   :  { %v9080_v21 = vld [vmem:[#allocation14 + $0x1298] sm:$0xf0]  ;;  %v7455_v37 = vor.u32 %v10017_v25, %v7454_v0  ;;  %v10185_v1 = vld [vmem:[#allocation14 + $0xb1c] sm:$0xf0] }
 0x378   :  { %5991 = vmatpush.bf16.msra.mxu2 %v7067_v20  ;;  %v9860_v53 = vld [vmem:[#allocation14 + $0xfc] sm:$0xf]  ;;  %6019 = vmatpush.bf16.msrb.mxu0 %v8411_v22  ;;  %v9083_v24 = vor.u32 %v10412_v47, %v9080_v21  ;;  %v7358_v20 = vld [vmem:[#allocation14 + $0x4c0] sm:$0xf] }
 0x379   :  { %v6872_v55 = vld [vmem:[#allocation14 + $0x158] sm:$0xf0]  ;;  %v8702_v44 = vld [vmem:[#allocation14 + $0xf40] sm:$0xf] }
 0x37a   :  { %6004 = vmatpush.bf16.msra.mxu3 %v7835_v40  ;;  %v10052_v2 = vld [vmem:[#allocation14 + $0x6fc] sm:$0xf]  ;;  %6032 = vmatpush.bf16.msrb.mxu1 %v9179_v45  ;;  %v6875_v4 = vor.u32 %v9860_v53, %v6872_v55  ;;  %v9993_v40 = vld [vmem:[#allocation14 + $0x51c] sm:$0xf0]  ;;  %v8127_v45 = vor.u32 %v10185_v1, %v8126_v6 }
 0x37b   :  { %v7640_v8 = vld [vmem:[#allocation14 + $0x758] sm:$0xf0]  ;;  %v10329_v63 = vld [vmem:[#allocation14 + $0xf9c] sm:$0xf0]  ;;  %v7359_v22 = vor.u32 %v9993_v40, %v7358_v20 }
 0x37c   :  { %5992 = vmatpush.bf16.msra.mxu2 %v6971_v48  ;;  %v7643_v7 = vor.u32 %v10052_v2, %v7640_v8  ;;  %v9836_v3 = vld [vmem:[#allocation14 + $0x3c] sm:$0xf]  ;;  %6020 = vmatpush.bf16.msrb.mxu0 %v8315_v52  ;;  %v9470_v56 = vld [vmem:[#allocation14 + $0x1540] sm:$0xf]  ;;  %v11158_v48 = vpop.f32.mrf.mxu0  ;;  %v8703_v51 = vor.u32 %v10329_v63, %v8702_v44 }
 0x37d   :  { %v6776_v11 = vld [vmem:[#allocation14 + $0x98] sm:$0xf0]  ;;  %v10521_v46 = vld [vmem:[#allocation14 + $0x159c] sm:$0xf0] }
 0x37e   :  { %6005 = vmatpush.bf16.msra.mxu3 %v7739_v9  ;;  %v10028_v33 = vld [vmem:[#allocation14 + $0x63c] sm:$0xf]  ;;  %6033 = vmatpush.bf16.msrb.mxu1 %v9083_v24  ;;  %v6779_v30 = vor.u32 %v9836_v3, %v6776_v11  ;;  %v7262_v47 = vld [vmem:[#allocation14 + $0x400] sm:$0xf]  ;;  %v11160_v9 = vpop.f32.mrf.mxu1  ;;  %v9471_v53 = vor.u32 %v10521_v46, %v9470_v56 }
 0x37f   :  { %v7544_v17 = vld [vmem:[#allocation14 + $0x698] sm:$0xf0]  ;;  %6021 = vmatmul.bf16.vlgmr.msrb.gmra.mxu0 %v10962_v12  ;;  %v9969_v21 = vld [vmem:[#allocation14 + $0x45c] sm:$0xf0] }
 0x380   :  { %6065 = vmatpush.bf16.msra.mxu0 %v8991_v42  ;;  %5993 = vmatpush.bf16.msra.mxu2 %v6875_v4  ;;  %v7547_v31 = vor.u32 %v10028_v33, %v7544_v17  ;;  %v8030_v19 = vld [vmem:[#allocation14 + $0xa00] sm:$0xf]  ;;  %v7263_v8 = vor.u32 %v9969_v21, %v7262_v47  ;;  %v5737_v4 = vadd.f32 %v11152_v10, %v1329_v23  ;;  %v10389_v23 = vld [vmem:[#allocation14 + $0x1184] sm:$0xf] }
 0x381   :  { %6034 = vmatmul.bf16.vlgmr.msrb.gmra.mxu1 %v10964_v13  ;;  %v10161_v49 = vld [vmem:[#allocation14 + $0xa5c] sm:$0xf0] }
 0x382   :  { %6078 = vmatpush.bf16.msra.mxu1 %v9759_v58  ;;  %6006 = vmatpush.bf16.msra.mxu3 %v7643_v7  ;;  %v8606_v55 = vld [vmem:[#allocation14 + $0xe80] sm:$0xf]  ;;  %v8031_v52 = vor.u32 %v10161_v49, %v8030_v19  ;;  %v5750_v10 = vadd.f32 %v11154_v43, %v5737_v4 }
 0x383   :  { %v10305_v2 = vld [vmem:[#allocation14 + $0xedc] sm:$0xf0] }
 0x384   :  { %6066 = vmatpush.bf16.msra.mxu0 %v8895_v28  ;;  %5994 = vmatpush.bf16.msra.mxu2 %v6779_v30  ;;  %v9374_v24 = vld [vmem:[#allocation14 + $0x1480] sm:$0xf]  ;;  %v8607_v7 = vor.u32 %v10305_v2, %v8606_v55  ;;  %v5816_v25 = vpop.f32.mrf.mxu0  ;;  %v1330_v30 = vperm.slane %v11122_v15, 3  ;;  %v5763_v15 = vadd.f32 %v11146_v34, %v5750_v10  ;;  %v9760_v55 = vld [vmem:[#allocation14 + $0x17e0] sm:$0xf0] }
 0x385   :  { %v10497_v42 = vld [vmem:[#allocation14 + $0x14dc] sm:$0xf0]  ;;  %v8224_v10 = vld [vmem:[#allocation14 + $0xbe0] sm:$0xf0] }
 0x386   :  { %6079 = vmatpush.bf16.msra.mxu1 %v9663_v29  ;;  %6007 = vmatpush.bf16.msra.mxu3 %v7547_v31  ;;  %v7166_v58 = vld [vmem:[#allocation14 + $0x340] sm:$0xf]  ;;  %v9375_v14 = vor.u32 %v10497_v42, %v9374_v24  ;;  %v5829_v27 = vpop.f32.mrf.mxu1  ;;  %v5776_v34 = vadd.f32 %v11148_v54, %v5763_v15  ;;  %v8128_v15 = vld [vmem:[#allocation14 + $0xb20] sm:$0xf0] }
 0x387   :  { %5995 = vmatmul.bf16.vlgmr.msra.gmra.mxu2 %v10968_v35  ;;  %v9945_v59 = vld [vmem:[#allocation14 + $0x39c] sm:$0xf0] }
 0x388   :  { %6039 = vmatpush.bf16.msrb.mxu2 %v7455_v37  ;;  %6067 = vmatpush.bf16.msra.mxu0 %v8799_v41  ;;  %v7934_v60 = vld [vmem:[#allocation14 + $0x940] sm:$0xf]  ;;  %v7167_v3 = vor.u32 %v9945_v59, %v7166_v58  ;;  %v6486_v25 = vrot.slane %v5776_v34, 4  ;;  %v10293_v34 = vld [vmem:[#allocation14 + $0xe84] sm:$0xf] }
 0x389   :  { %6008 = vmatmul.bf16.vlgmr.msra.gmra.mxu3 %v10970_v36  ;;  %v8510_v26 = vld [vmem:[#allocation14 + $0xdc0] sm:$0xf]  ;;  %v7935_v11 = vor.u32 %v10137_v61, %v7934_v60  ;;  %v10365_v60 = vld [vmem:[#allocation14 + $0x10c4] sm:$0xf] }
 0x38a   :  { %6052 = vmatpush.bf16.msrb.mxu3 %v8223_v57  ;;  %6080 = vmatpush.bf16.msra.mxu1 %v9567_v18  ;;  %v9278_v33 = vld [vmem:[#allocation14 + $0x13c0] sm:$0xf]  ;;  %v8511_v31 = vor.u32 %v10281_v16, %v8510_v26  ;;  %v5788_v6 = vpop.f32.mrf.mxu2  ;;  %v10557_v26 = vld [vmem:[#allocation14 + $0x16c4] sm:$0xf] }
 0x38b   :  { %v10473_v17 = vld [vmem:[#allocation14 + $0x141c] sm:$0xf0]  ;;  %v5789_v44 = vadd.f32 %v5788_v6, %v1330_v30  ;;  %v9664_v16 = vld [vmem:[#allocation14 + $0x1720] sm:$0xf0] }
 0x38c   :  { %6040 = vmatpush.bf16.msrb.mxu2 %v7359_v22  ;;  %6068 = vmatpush.bf16.msra.mxu0 %v8703_v51  ;;  %v7070_v0 = vld [vmem:[#allocation14 + $0x280] sm:$0xf]  ;;  %v9279_v5 = vor.u32 %v10473_v17, %v9278_v33  ;;  %v5801_v1 = vpop.f32.mrf.mxu3  ;;  %v8992_v51 = vld [vmem:[#allocation14 + $0x11e0] sm:$0xf0] }
 0x38d   :  { %v9921_v50 = vld [vmem:[#allocation14 + $0x2dc] sm:$0xf0]  ;;  %v5802_v47 = vadd.f32 %v5801_v1, %v5789_v44  ;;  %v8995_v4 = vor.u32 %v10389_v23, %v8992_v51  ;;  %v9568_v1 = vld [vmem:[#allocation14 + $0x1660] sm:$0xf0] }
 0x38e   :  { %6053 = vmatpush.bf16.msrb.mxu3 %v8127_v45  ;;  %6081 = vmatpush.bf16.msra.mxu1 %v9471_v53  ;;  %v7838_v28 = vld [vmem:[#allocation14 + $0x880] sm:$0xf]  ;;  %v7071_v57 = vor.u32 %v9921_v50, %v7070_v0  ;;  %v10581_v53 = vld [vmem:[#allocation14 + $0x1784] sm:$0xf] }
 0x38f   :  { %v10113_v29 = vld [vmem:[#allocation14 + $0x8dc] sm:$0xf0]  ;;  %v7264_v23 = vld [vmem:[#allocation14 + $0x460] sm:$0xf0] }
 0x390   :  { %6041 = vmatpush.bf16.msrb.mxu2 %v7263_v8  ;;  %6069 = vmatpush.bf16.msra.mxu0 %v8607_v7  ;;  %v8414_v32 = vld [vmem:[#allocation14 + $0xd00] sm:$0xf]  ;;  %v7839_v38 = vor.u32 %v10113_v29, %v7838_v28  ;;  %v5815_v8 = vadd.f32 %v11158_v48, %v5802_v47  ;;  %v9763_v7 = vor.u32 %v10581_v53, %v9760_v55  ;;  %v10005_v28 = vld [vmem:[#allocation14 + $0x584] sm:$0xf] }
 0x391   :  { %v10257_v37 = vld [vmem:[#allocation14 + $0xd5c] sm:$0xf0]  ;;  %v10197_v29 = vld [vmem:[#allocation14 + $0xb84] sm:$0xf] }
 0x392   :  { %6054 = vmatpush.bf16.msrb.mxu3 %v8031_v52  ;;  %6082 = vmatpush.bf16.msra.mxu1 %v9375_v14  ;;  %v9182_v39 = vld [vmem:[#allocation14 + $0x1300] sm:$0xf]  ;;  %v8415_v63 = vor.u32 %v10257_v37, %v8414_v32  ;;  %v5828_v61 = vadd.f32 %v11160_v9, %v5815_v8  ;;  %v8896_v14 = vld [vmem:[#allocation14 + $0x1120] sm:$0xf0]  ;;  %v5790_v48 = vpop.f32.mrf.mxu2  ;;  %v8227_v6 = vor.u32 %v10197_v29, %v8224_v10 }
 0x393   :  { %v10449_v20 = vld [vmem:[#allocation14 + $0x135c] sm:$0xf0]  ;;  %v7456_v9 = vld [vmem:[#allocation14 + $0x5e0] sm:$0xf0] }
 0x394   :  { %6042 = vmatpush.bf16.msrb.mxu2 %v7167_v3  ;;  %v6974_v40 = vld [vmem:[#allocation14 + $0x1c0] sm:$0xf]  ;;  %6070 = vmatpush.bf16.msra.mxu0 %v8511_v31  ;;  %v9183_v22 = vor.u32 %v10449_v20, %v9182_v39  ;;  %v6487_v27 = vrot.slane %v5828_v61, 2  ;;  %v8899_v31 = vor.u32 %v10365_v60, %v8896_v14  ;;  %v8800_v39 = vld [vmem:[#allocation14 + $0x1060] sm:$0xf0] }
 0x395   :  { %v9897_v41 = vld [vmem:[#allocation14 + $0x21c] sm:$0xf0]  ;;  %v10533_v20 = vld [vmem:[#allocation14 + $0x1604] sm:$0xf] }
 0x396   :  { %6055 = vmatpush.bf16.msrb.mxu3 %v7935_v11  ;;  %v7742_v18 = vld [vmem:[#allocation14 + $0x7c0] sm:$0xf]  ;;  %6083 = vmatpush.bf16.msra.mxu1 %v9279_v5  ;;  %v6975_v21 = vor.u32 %v9897_v41, %v6974_v40  ;;  %v5803_v11 = vpop.f32.mrf.mxu3  ;;  %v6507_v30 = vsel %vm6499_vm3, %v6486_v25, %v6487_v27  ;;  %v9667_v5 = vor.u32 %v10557_v26, %v9664_v16  ;;  %v9981_v41 = vld [vmem:[#allocation14 + $0x4c4] sm:$0xf] }
 0x397   :  { %v10089_v43 = vld [vmem:[#allocation14 + $0x81c] sm:$0xf0]  ;;  %v6508_v32 = vsel %vm6501_vm4, %v11142_v62, %v6507_v30  ;;  %v7459_v40 = vor.u32 %v10005_v28, %v7456_v9  ;;  %v9571_v44 = vor.u32 %v10533_v20, %v9568_v1  ;;  %v9472_v47 = vld [vmem:[#allocation14 + $0x15a0] sm:$0xf0]  ;;  %v11183_v28 = vld [vmem:[#allocation16 + $0x8] sm:$0xff] }
 0x398   :  { %v8318_v45 = vld [vmem:[#allocation14 + $0xc40] sm:$0xf]  ;;  %6043 = vmatpush.bf16.msrb.mxu2 %v7071_v57  ;;  %v7743_v19 = vor.u32 %v10089_v43, %v7742_v18  ;;  %6071 = vmatpush.bf16.msra.mxu0 %v8415_v63  ;;  %6526 = vst [vmem:[#allocation17 + $0x10] sm:$0xff] %v6508_v32  ;;  %v7360_v18 = vld [vmem:[#allocation14 + $0x520] sm:$0xf0]  ;;  %v1331_v9 = vperm.slane %v11183_v28, 4 }
 0x399   :  { %v10233_v56 = vld [vmem:[#allocation14 + $0xc9c] sm:$0xf0]  ;;  %v10173_v43 = vld [vmem:[#allocation14 + $0xac4] sm:$0xf] }
 0x39a   :  { %v9086_v46 = vld [vmem:[#allocation14 + $0x1240] sm:$0xf]  ;;  %6056 = vmatpush.bf16.msrb.mxu3 %v7839_v38  ;;  %6084 = vmatpush.bf16.msra.mxu1 %v9183_v22  ;;  %v8319_v58 = vor.u32 %v10233_v56, %v8318_v45  ;;  %v10341_v38 = vld [vmem:[#allocation14 + $0x1004] sm:$0xf]  ;;  %v7363_v45 = vor.u32 %v9981_v41, %v7360_v18  ;;  %v8131_v56 = vor.u32 %v10173_v43, %v8128_v15 }
 0x39b   :  { %v10425_v49 = vld [vmem:[#allocation14 + $0x129c] sm:$0xf0]  ;;  %v8803_v62 = vor.u32 %v10341_v38, %v8800_v39  ;;  %v10317_v63 = vld [vmem:[#allocation14 + $0xf44] sm:$0xf] }
 0x39c   :  { %v6878_v2 = vld [vmem:[#allocation14 + $0x100] sm:$0xf]  ;;  %v9087_v59 = vor.u32 %v10425_v49, %v9086_v46  ;;  %6044 = vmatpush.bf16.msrb.mxu2 %v6975_v21  ;;  %6072 = vmatpush.bf16.msra.mxu0 %v8319_v58  ;;  %v8704_v22 = vld [vmem:[#allocation14 + $0xfa0] sm:$0xf0] }
 0x39d   :  { %v9873_v52 = vld [vmem:[#allocation14 + $0x15c] sm:$0xf0]  ;;  %v10509_v46 = vld [vmem:[#allocation14 + $0x1544] sm:$0xf]  ;;  %v8707_v55 = vor.u32 %v10317_v63, %v8704_v22 }
 0x39e   :  { %v7646_v24 = vld [vmem:[#allocation14 + $0x700] sm:$0xf]  ;;  %6057 = vmatpush.bf16.msrb.mxu3 %v7743_v19  ;;  %v6879_v54 = vor.u32 %v9873_v52, %v6878_v2  ;;  %6085 = vmatpush.bf16.msra.mxu1 %v9087_v59  ;;  %v9957_v21 = vld [vmem:[#allocation14 + $0x404] sm:$0xf]  ;;  %v11177_v19 = vpop.f32.mrf.mxu0  ;;  %v11179_v49 = vpop.f32.mrf.mxu1  ;;  %v9475_v2 = vor.u32 %v10509_v46, %v9472_v47  ;;  %v8998_v46 = vld [vmem:[#allocation14 + $0x1188] sm:$0xf] }
 0x39f   :  { %v10065_v42 = vld [vmem:[#allocation14 + $0x75c] sm:$0xf0]  ;;  %6073 = vmatmul.bf16.vlgmr.msra.gmra.mxu0 %v10962_v12  ;;  %v10149_v51 = vld [vmem:[#allocation14 + $0xa04] sm:$0xf]  ;;  %v7267_v52 = vor.u32 %v9957_v21, %v7264_v23  ;;  %v10402_v47 = vld [vmem:[#allocation14 + $0x11e4] sm:$0xf0] }
 0x3a0   :  { %v7647_v3 = vor.u32 %v10065_v42, %v7646_v24  ;;  %v6782_v33 = vld [vmem:[#allocation14 + $0x40] sm:$0xf]  ;;  %6117 = vmatpush.bf16.msrb.mxu0 %v8995_v4  ;;  %6045 = vmatpush.bf16.msrb.mxu2 %v6879_v54  ;;  %v8032_v53 = vld [vmem:[#allocation14 + $0xa60] sm:$0xf0]  ;;  %v9766_v21 = vld [vmem:[#allocation14 + $0x1788] sm:$0xf] }
 0x3a1   :  { %v9849_v17 = vld [vmem:[#allocation14 + $0x9c] sm:$0xf0]  ;;  %6086 = vmatmul.bf16.vlgmr.msra.gmra.mxu1 %v10964_v13  ;;  %v8608_v8 = vld [vmem:[#allocation14 + $0xee0] sm:$0xf0]  ;;  %v8035_v24 = vor.u32 %v10149_v51, %v8032_v53  ;;  %v10594_v23 = vld [vmem:[#allocation14 + $0x17e4] sm:$0xf0] }
 0x3a2   :  { %v7550_v0 = vld [vmem:[#allocation14 + $0x640] sm:$0xf]  ;;  %6130 = vmatpush.bf16.msrb.mxu1 %v9763_v7  ;;  %6058 = vmatpush.bf16.msrb.mxu3 %v7647_v3  ;;  %v6783_v37 = vor.u32 %v9849_v17, %v6782_v33  ;;  %v10485_v42 = vld [vmem:[#allocation14 + $0x1484] sm:$0xf]  ;;  %v8611_v7 = vor.u32 %v10293_v34, %v8608_v8 }
 0x3a3   :  { %v10041_v50 = vld [vmem:[#allocation14 + $0x69c] sm:$0xf0]  ;;  %v9376_v58 = vld [vmem:[#allocation14 + $0x14e0] sm:$0xf0] }
 0x3a4   :  { %v7551_v57 = vor.u32 %v10041_v50, %v7550_v0  ;;  %6118 = vmatpush.bf16.msrb.mxu0 %v8899_v31  ;;  %6046 = vmatpush.bf16.msrb.mxu2 %v6783_v37  ;;  %v9933_v59 = vld [vmem:[#allocation14 + $0x344] sm:$0xf]  ;;  %v9379_v14 = vor.u32 %v10485_v42, %v9376_v58  ;;  %v8999_v42 = vor.u32 %v10402_v47, %v8998_v46  ;;  %v8614_v47 = vld [vmem:[#allocation14 + $0xe88] sm:$0xf] }
 0x3a5   :  { %v7168_v60 = vld [vmem:[#allocation14 + $0x3a0] sm:$0xf0]  ;;  %v9767_v58 = vor.u32 %v10594_v23, %v9766_v21  ;;  %v10306_v21 = vld [vmem:[#allocation14 + $0xee4] sm:$0xf0] }
 0x3a6   :  { %6131 = vmatpush.bf16.msrb.mxu1 %v9667_v5  ;;  %6059 = vmatpush.bf16.msrb.mxu3 %v7551_v57  ;;  %v10125_v61 = vld [vmem:[#allocation14 + $0x944] sm:$0xf]  ;;  %v7171_v54 = vor.u32 %v9933_v59, %v7168_v60  ;;  %v5868_v17 = vpop.f32.mrf.mxu0  ;;  %v5881_v0 = vpop.f32.mrf.mxu1  ;;  %v8902_v59 = vld [vmem:[#allocation14 + $0x10c8] sm:$0xf] }
 0x3a7   :  { %6047 = vmatmul.bf16.vlgmr.msrb.gmra.mxu2 %v10968_v35  ;;  %v7936_v4 = vld [vmem:[#allocation14 + $0x9a0] sm:$0xf0]  ;;  %v10378_v60 = vld [vmem:[#allocation14 + $0x1124] sm:$0xf0] }
 0x3a8   :  { %6091 = vmatpush.bf16.msra.mxu2 %v7459_v40  ;;  %6119 = vmatpush.bf16.msrb.mxu0 %v8803_v62  ;;  %v10269_v26 = vld [vmem:[#allocation14 + $0xdc4] sm:$0xf]  ;;  %v7939_v3 = vor.u32 %v10125_v61, %v7936_v4  ;;  %v9670_v61 = vld [vmem:[#allocation14 + $0x16c8] sm:$0xf]  ;;  %v8903_v0 = vor.u32 %v10378_v60, %v8902_v59 }
 0x3a9   :  { %6060 = vmatmul.bf16.vlgmr.msrb.gmra.mxu3 %v10970_v36  ;;  %v8512_v16 = vld [vmem:[#allocation14 + $0xe20] sm:$0xf0]  ;;  %v10210_v17 = vld [vmem:[#allocation14 + $0xbe4] sm:$0xf0] }
 0x3aa   :  { %6104 = vmatpush.bf16.msra.mxu3 %v8227_v6  ;;  %6132 = vmatpush.bf16.msrb.mxu1 %v9571_v44  ;;  %v10461_v48 = vld [vmem:[#allocation14 + $0x13c4] sm:$0xf]  ;;  %v8515_v29 = vor.u32 %v10269_v26, %v8512_v16  ;;  %v5840_v39 = vpop.f32.mrf.mxu2  ;;  %v10570_v26 = vld [vmem:[#allocation14 + $0x1724] sm:$0xf0] }
 0x3ab   :  { %v9280_v11 = vld [vmem:[#allocation14 + $0x1420] sm:$0xf0]  ;;  %v5841_v41 = vadd.f32 %v5840_v39, %v1331_v9  ;;  %v8806_v9 = vld [vmem:[#allocation14 + $0x1008] sm:$0xf] }
 0x3ac   :  { %6092 = vmatpush.bf16.msra.mxu2 %v7363_v45  ;;  %6120 = vmatpush.bf16.msrb.mxu0 %v8707_v55  ;;  %v9909_v33 = vld [vmem:[#allocation14 + $0x284] sm:$0xf]  ;;  %v9283_v10 = vor.u32 %v10461_v48, %v9280_v11  ;;  %v5853_v20 = vpop.f32.mrf.mxu3  ;;  %v7462_v11 = vld [vmem:[#allocation14 + $0x588] sm:$0xf] }
 0x3ad   :  { %v7072_v25 = vld [vmem:[#allocation14 + $0x2e0] sm:$0xf0]  ;;  %v5854_v63 = vadd.f32 %v5853_v20, %v5841_v41  ;;  %v8518_v59 = vld [vmem:[#allocation14 + $0xdc8] sm:$0xf] }
 0x3ae   :  { %6105 = vmatpush.bf16.msra.mxu3 %v8131_v56  ;;  %6133 = vmatpush.bf16.msrb.mxu1 %v9475_v2  ;;  %v10101_v27 = vld [vmem:[#allocation14 + $0x884] sm:$0xf]  ;;  %v7075_v5 = vor.u32 %v9909_v33, %v7072_v25  ;;  %v8230_v33 = vld [vmem:[#allocation14 + $0xb88] sm:$0xf]  ;;  %v9671_v25 = vor.u32 %v10570_v26, %v9670_v61 }
 0x3af   :  { %v7840_v50 = vld [vmem:[#allocation14 + $0x8e0] sm:$0xf0]  ;;  %v5867_v53 = vadd.f32 %v11177_v19, %v5854_v63  ;;  %v9970_v63 = vld [vmem:[#allocation14 + $0x464] sm:$0xf0] }
 0x3b0   :  { %6093 = vmatpush.bf16.msra.mxu2 %v7267_v52  ;;  %6121 = vmatpush.bf16.msrb.mxu0 %v8611_v7  ;;  %v10245_v30 = vld [vmem:[#allocation14 + $0xd04] sm:$0xf]  ;;  %v7843_v32 = vor.u32 %v10101_v27, %v7840_v50  ;;  %v10282_v60 = vld [vmem:[#allocation14 + $0xe24] sm:$0xf0] }
 0x3b1   :  { %v8416_v31 = vld [vmem:[#allocation14 + $0xd60] sm:$0xf0] }
 0x3b2   :  { %6106 = vmatpush.bf16.msra.mxu3 %v8035_v24  ;;  %6134 = vmatpush.bf16.msrb.mxu1 %v9379_v14  ;;  %v10437_v37 = vld [vmem:[#allocation14 + $0x1304] sm:$0xf]  ;;  %v8419_v18 = vor.u32 %v10245_v30, %v8416_v31  ;;  %v11188_v24 = vadd.f32 %v11179_v49, %v5867_v53  ;;  %v5842_v19 = vpop.f32.mrf.mxu2  ;;  %v10018_v49 = vld [vmem:[#allocation14 + $0x5e4] sm:$0xf0]  ;;  %v8231_v30 = vor.u32 %v10210_v17, %v8230_v33 }
 0x3b3   :  { %v9184_v57 = vld [vmem:[#allocation14 + $0x1360] sm:$0xf0]  ;;  %v9574_v31 = vld [vmem:[#allocation14 + $0x1608] sm:$0xf] }
 0x3b4   :  { %6094 = vmatpush.bf16.msra.mxu2 %v7171_v54  ;;  %v9885_v38 = vld [vmem:[#allocation14 + $0x1c4] sm:$0xf]  ;;  %6122 = vmatpush.bf16.msrb.mxu0 %v8515_v29  ;;  %v9187_v43 = vor.u32 %v10437_v37, %v9184_v57  ;;  %v5855_v14 = vpop.f32.mrf.mxu3  ;;  %v10354_v29 = vld [vmem:[#allocation14 + $0x1064] sm:$0xf0] }
 0x3b5   :  { %v6976_v40 = vld [vmem:[#allocation14 + $0x220] sm:$0xf0]  ;;  %v9994_v37 = vld [vmem:[#allocation14 + $0x524] sm:$0xf0]  ;;  %v8807_v39 = vor.u32 %v10354_v29, %v8806_v9 }
 0x3b6   :  { %6107 = vmatpush.bf16.msra.mxu3 %v7939_v3  ;;  %v10077_v6 = vld [vmem:[#allocation14 + $0x7c4] sm:$0xf]  ;;  %6135 = vmatpush.bf16.msrb.mxu1 %v9283_v10  ;;  %v6979_v22 = vor.u32 %v9885_v38, %v6976_v40  ;;  %v7463_v10 = vor.u32 %v10018_v49, %v7462_v11  ;;  %v8134_v57 = vld [vmem:[#allocation14 + $0xac8] sm:$0xf]  ;;  %v1332_v11 = vperm.slane %v11183_v28, 5  ;;  %v8519_v49 = vor.u32 %v10282_v60, %v8518_v59 }
 0x3b7   :  { %v7744_v1 = vld [vmem:[#allocation14 + $0x820] sm:$0xf0]  ;;  %v10186_v38 = vld [vmem:[#allocation14 + $0xb24] sm:$0xf0] }
 0x3b8   :  { %v10221_v15 = vld [vmem:[#allocation14 + $0xc44] sm:$0xf]  ;;  %6095 = vmatpush.bf16.msra.mxu2 %v7075_v5  ;;  %v7747_v45 = vor.u32 %v10077_v6, %v7744_v1  ;;  %6123 = vmatpush.bf16.msrb.mxu0 %v8419_v18  ;;  %v10546_v5 = vld [vmem:[#allocation14 + $0x1664] sm:$0xf0]  ;;  %v8135_v41 = vor.u32 %v10186_v38, %v8134_v57 }
 0x3b9   :  { %v8320_v62 = vld [vmem:[#allocation14 + $0xca0] sm:$0xf0]  ;;  %v9575_v20 = vor.u32 %v10546_v5, %v9574_v31  ;;  %v8710_v40 = vld [vmem:[#allocation14 + $0xf48] sm:$0xf] }
 0x3ba   :  { %v10413_v44 = vld [vmem:[#allocation14 + $0x1244] sm:$0xf]  ;;  %6108 = vmatpush.bf16.msra.mxu3 %v7843_v32  ;;  %6136 = vmatpush.bf16.msrb.mxu1 %v9187_v43  ;;  %v8323_v8 = vor.u32 %v10221_v15, %v8320_v62  ;;  %v7366_v32 = vld [vmem:[#allocation14 + $0x4c8] sm:$0xf] }
 0x3bb   :  { %v9088_v56 = vld [vmem:[#allocation14 + $0x12a0] sm:$0xf0]  ;;  %v10330_v6 = vld [vmem:[#allocation14 + $0xfa4] sm:$0xf0]  ;;  %v7367_v1 = vor.u32 %v9994_v37, %v7366_v32 }
 0x3bc   :  { %v9861_v51 = vld [vmem:[#allocation14 + $0x104] sm:$0xf]  ;;  %v9091_v52 = vor.u32 %v10413_v44, %v9088_v56  ;;  %6096 = vmatpush.bf16.msra.mxu2 %v6979_v22  ;;  %6124 = vmatpush.bf16.msrb.mxu0 %v8323_v8  ;;  %v9478_v18 = vld [vmem:[#allocation14 + $0x1548] sm:$0xf]  ;;  %v11192_v62 = vpop.f32.mrf.mxu0  ;;  %v8711_v56 = vor.u32 %v10330_v6, %v8710_v40 }
 0x3bd   :  { %v6880_v55 = vld [vmem:[#allocation14 + $0x160] sm:$0xf0]  ;;  %v10522_v43 = vld [vmem:[#allocation14 + $0x15a4] sm:$0xf0] }
 0x3be   :  { %v10053_v2 = vld [vmem:[#allocation14 + $0x704] sm:$0xf]  ;;  %6109 = vmatpush.bf16.msra.mxu3 %v7747_v45  ;;  %v6883_v4 = vor.u32 %v9861_v51, %v6880_v55  ;;  %6137 = vmatpush.bf16.msrb.mxu1 %v9091_v52  ;;  %v7270_v15 = vld [vmem:[#allocation14 + $0x408] sm:$0xf]  ;;  %v11194_v44 = vpop.f32.mrf.mxu1  ;;  %v9479_v46 = vor.u32 %v10522_v43, %v9478_v18  ;;  %v10390_v43 = vld [vmem:[#allocation14 + $0x118c] sm:$0xf] }
 0x3bf   :  { %v7648_v34 = vld [vmem:[#allocation14 + $0x760] sm:$0xf0]  ;;  %6125 = vmatmul.bf16.vlgmr.msrb.gmra.mxu0 %v10962_v12  ;;  %v8038_v22 = vld [vmem:[#allocation14 + $0xa08] sm:$0xf]  ;;  %v7271_v23 = vor.u32 %v9970_v63, %v7270_v15  ;;  %v9000_v15 = vld [vmem:[#allocation14 + $0x11e8] sm:$0xf0] }
 0x3c0   :  { %v7651_v7 = vor.u32 %v10053_v2, %v7648_v34  ;;  %v9837_v16 = vld [vmem:[#allocation14 + $0x44] sm:$0xf]  ;;  %6169 = vmatpush.bf16.msra.mxu0 %v8999_v42  ;;  %6097 = vmatpush.bf16.msra.mxu2 %v6883_v4  ;;  %v10162_v45 = vld [vmem:[#allocation14 + $0xa64] sm:$0xf0]  ;;  %v8615_v42 = vor.u32 %v10306_v21, %v8614_v47  ;;  %v10582_v63 = vld [vmem:[#allocation14 + $0x178c] sm:$0xf] }
 0x3c1   :  { %v6784_v54 = vld [vmem:[#allocation14 + $0xa0] sm:$0xf0]  ;;  %6138 = vmatmul.bf16.vlgmr.msrb.gmra.mxu1 %v10964_v13  ;;  %v8039_v51 = vor.u32 %v10162_v45, %v8038_v22  ;;  %v9382_v53 = vld [vmem:[#allocation14 + $0x1488] sm:$0xf]  ;;  %v9768_v22 = vld [vmem:[#allocation14 + $0x17e8] sm:$0xf0] }
 0x3c2   :  { %v10029_v3 = vld [vmem:[#allocation14 + $0x644] sm:$0xf]  ;;  %6182 = vmatpush.bf16.msra.mxu1 %v9767_v58  ;;  %6110 = vmatpush.bf16.msra.mxu3 %v7651_v7  ;;  %v6787_v27 = vor.u32 %v9837_v16, %v6784_v54  ;;  %v10498_v55 = vld [vmem:[#allocation14 + $0x14e4] sm:$0xf0] }
 0x3c3   :  { %v7552_v48 = vld [vmem:[#allocation14 + $0x6a0] sm:$0xf0]  ;;  %v7174_v2 = vld [vmem:[#allocation14 + $0x348] sm:$0xf]  ;;  %v9383_v58 = vor.u32 %v10498_v55, %v9382_v53  ;;  %v10366_v53 = vld [vmem:[#allocation14 + $0x10cc] sm:$0xf] }
 0x3c4   :  { %v7555_v50 = vor.u32 %v10029_v3, %v7552_v48  ;;  %6170 = vmatpush.bf16.msra.mxu0 %v8903_v0  ;;  %6098 = vmatpush.bf16.msra.mxu2 %v6787_v27  ;;  %v9946_v34 = vld [vmem:[#allocation14 + $0x3a4] sm:$0xf0]  ;;  %v5920_v26 = vpop.f32.mrf.mxu0 }
 0x3c5   :  { %v7942_v8 = vld [vmem:[#allocation14 + $0x948] sm:$0xf]  ;;  %v7175_v61 = vor.u32 %v9946_v34, %v7174_v2  ;;  %v9003_v2 = vor.u32 %v10390_v43, %v9000_v15  ;;  %v9771_v34 = vor.u32 %v10582_v63, %v9768_v22  ;;  %v10006_v26 = vld [vmem:[#allocation14 + $0x58c] sm:$0xf] }
 0x3c6   :  { %6183 = vmatpush.bf16.msra.mxu1 %v9671_v25  ;;  %6111 = vmatpush.bf16.msra.mxu3 %v7555_v50  ;;  %v10138_v52 = vld [vmem:[#allocation14 + $0x9a4] sm:$0xf0]  ;;  %v5933_v16 = vpop.f32.mrf.mxu1  ;;  %v8040_v43 = vld [vmem:[#allocation14 + $0xa68] sm:$0xf0] }
 0x3c7   :  { %6099 = vmatmul.bf16.vlgmr.msra.gmra.mxu2 %v10968_v35  ;;  %v7943_v4 = vor.u32 %v10138_v52, %v7942_v8  ;;  %v9286_v7 = vld [vmem:[#allocation14 + $0x13c8] sm:$0xf]  ;;  %v8904_v8 = vld [vmem:[#allocation14 + $0x1128] sm:$0xf0] }
 0x3c8   :  { %6143 = vmatpush.bf16.msrb.mxu2 %v7463_v10  ;;  %6171 = vmatpush.bf16.msra.mxu0 %v8807_v39  ;;  %v10474_v19 = vld [vmem:[#allocation14 + $0x1424] sm:$0xf0]  ;;  %v10558_v52 = vld [vmem:[#allocation14 + $0x16cc] sm:$0xf] }
 0x3c9   :  { %6112 = vmatmul.bf16.vlgmr.msra.gmra.mxu3 %v10970_v36  ;;  %v7078_v14 = vld [vmem:[#allocation14 + $0x288] sm:$0xf]  ;;  %v9287_v33 = vor.u32 %v10474_v19, %v9286_v7  ;;  %v10198_v16 = vld [vmem:[#allocation14 + $0xb8c] sm:$0xf] }
 0x3ca   :  { %6156 = vmatpush.bf16.msrb.mxu3 %v8231_v30  ;;  %6184 = vmatpush.bf16.msra.mxu1 %v9575_v20  ;;  %v9922_v54 = vld [vmem:[#allocation14 + $0x2e4] sm:$0xf0]  ;;  %v5892_v10 = vpop.f32.mrf.mxu2  ;;  %v10294_v22 = vld [vmem:[#allocation14 + $0xe8c] sm:$0xf] }
 0x3cb   :  { %v7846_v3 = vld [vmem:[#allocation14 + $0x888] sm:$0xf]  ;;  %v7079_v25 = vor.u32 %v9922_v54, %v7078_v14  ;;  %v5893_v37 = vadd.f32 %v5892_v10, %v1332_v11  ;;  %v8232_v54 = vld [vmem:[#allocation14 + $0xbe8] sm:$0xf0] }
 0x3cc   :  { %6144 = vmatpush.bf16.msrb.mxu2 %v7367_v1  ;;  %6172 = vmatpush.bf16.msra.mxu0 %v8711_v56  ;;  %v10114_v48 = vld [vmem:[#allocation14 + $0x8e4] sm:$0xf0]  ;;  %v5905_v30 = vpop.f32.mrf.mxu3  ;;  %v10174_v10 = vld [vmem:[#allocation14 + $0xacc] sm:$0xf] }
 0x3cd   :  { %v8422_v17 = vld [vmem:[#allocation14 + $0xd08] sm:$0xf]  ;;  %v7847_v27 = vor.u32 %v10114_v48, %v7846_v3  ;;  %v5906_v6 = vadd.f32 %v5905_v30, %v5893_v37  ;;  %v8907_v48 = vor.u32 %v10366_v53, %v8904_v8  ;;  %v8136_v30 = vld [vmem:[#allocation14 + $0xb28] sm:$0xf0] }
 0x3ce   :  { %6157 = vmatpush.bf16.msrb.mxu3 %v8135_v41  ;;  %6185 = vmatpush.bf16.msra.mxu1 %v9479_v46  ;;  %v10258_v0 = vld [vmem:[#allocation14 + $0xd64] sm:$0xf0]  ;;  %v8712_v37 = vld [vmem:[#allocation14 + $0xfa8] sm:$0xf0] }
 0x3cf   :  { %v9190_v50 = vld [vmem:[#allocation14 + $0x1308] sm:$0xf]  ;;  %v8423_v57 = vor.u32 %v10258_v0, %v8422_v17  ;;  %v5919_v56 = vadd.f32 %v11192_v62, %v5906_v6  ;;  %v10342_v17 = vld [vmem:[#allocation14 + $0x100c] sm:$0xf] }
 0x3d0   :  { %6145 = vmatpush.bf16.msrb.mxu2 %v7271_v23  ;;  %6173 = vmatpush.bf16.msra.mxu0 %v8615_v42  ;;  %v10450_v9 = vld [vmem:[#allocation14 + $0x1364] sm:$0xf0]  ;;  %v9672_v42 = vld [vmem:[#allocation14 + $0x1728] sm:$0xf0] }
 0x3d1   :  { %v6982_v29 = vld [vmem:[#allocation14 + $0x1c8] sm:$0xf]  ;;  %v9191_v38 = vor.u32 %v10450_v9, %v9190_v50  ;;  %v5932_v55 = vadd.f32 %v11194_v44, %v5919_v56  ;;  %v7464_v44 = vld [vmem:[#allocation14 + $0x5e8] sm:$0xf0]  ;;  %v9675_v11 = vor.u32 %v10558_v52, %v9672_v42 }
 0x3d2   :  { %6158 = vmatpush.bf16.msrb.mxu3 %v8039_v51  ;;  %6186 = vmatpush.bf16.msra.mxu1 %v9383_v58  ;;  %v9898_v31 = vld [vmem:[#allocation14 + $0x224] sm:$0xf0]  ;;  %v5894_v62 = vpop.f32.mrf.mxu2  ;;  %v8808_v0 = vld [vmem:[#allocation14 + $0x1068] sm:$0xf0] }
 0x3d3   :  { %v7750_v5 = vld [vmem:[#allocation14 + $0x7c8] sm:$0xf]  ;;  %v6983_v1 = vor.u32 %v9898_v31, %v6982_v29  ;;  %v6488_v19 = vrot.slane %v5932_v55, 6  ;;  %v10534_v50 = vld [vmem:[#allocation14 + $0x160c] sm:$0xf]  ;;  %v8811_v31 = vor.u32 %v10342_v17, %v8808_v0 }
 0x3d4   :  { %6146 = vmatpush.bf16.msrb.mxu2 %v7175_v61  ;;  %v10090_v32 = vld [vmem:[#allocation14 + $0x824] sm:$0xf0]  ;;  %6174 = vmatpush.bf16.msra.mxu0 %v8519_v49  ;;  %v5907_v60 = vpop.f32.mrf.mxu3  ;;  %v9576_v9 = vld [vmem:[#allocation14 + $0x1668] sm:$0xf0] }
 0x3d5   :  { %v8326_v39 = vld [vmem:[#allocation14 + $0xc48] sm:$0xf]  ;;  %v7751_v41 = vor.u32 %v10090_v32, %v7750_v5  ;;  %v11203_v3 = vsel %vm6497_vm2, %v11188_v24, %v6488_v19  ;;  %v9982_v24 = vld [vmem:[#allocation14 + $0x4cc] sm:$0xf]  ;;  %v9579_v5 = vor.u32 %v10534_v50, %v9576_v9 }
 0x3d6   :  { %6159 = vmatpush.bf16.msrb.mxu3 %v7943_v4  ;;  %6187 = vmatpush.bf16.msra.mxu1 %v9287_v33  ;;  %v10234_v20 = vld [vmem:[#allocation14 + $0xca4] sm:$0xf0]  ;;  %v7368_v29 = vld [vmem:[#allocation14 + $0x528] sm:$0xf0] }
 0x3d7   :  { %v9094_v40 = vld [vmem:[#allocation14 + $0x1248] sm:$0xf]  ;;  %v8327_v23 = vor.u32 %v10234_v20, %v8326_v39  ;;  %v10318_v32 = vld [vmem:[#allocation14 + $0xf4c] sm:$0xf] }
 0x3d8   :  { %6147 = vmatpush.bf16.msrb.mxu2 %v7079_v25  ;;  %v10426_v18 = vld [vmem:[#allocation14 + $0x12a4] sm:$0xf0]  ;;  %6175 = vmatpush.bf16.msra.mxu0 %v8423_v57  ;;  %v7467_v25 = vor.u32 %v10006_v26, %v7464_v44  ;;  %v7371_v57 = vor.u32 %v9982_v24, %v7368_v29  ;;  %v10510_v39 = vld [vmem:[#allocation14 + $0x154c] sm:$0xf]  ;;  %v8715_v15 = vor.u32 %v10318_v32, %v8712_v37 }
 0x3d9   :  { %v6886_v45 = vld [vmem:[#allocation14 + $0x108] sm:$0xf]  ;;  %v9095_v51 = vor.u32 %v10426_v18, %v9094_v40  ;;  %v9480_v20 = vld [vmem:[#allocation14 + $0x15a8] sm:$0xf0] }
 0x3da   :  { %6160 = vmatpush.bf16.msrb.mxu3 %v7847_v27  ;;  %v9874_v46 = vld [vmem:[#allocation14 + $0x164] sm:$0xf0]  ;;  %6188 = vmatpush.bf16.msra.mxu1 %v9191_v38  ;;  %v8235_v27 = vor.u32 %v10198_v16, %v8232_v54  ;;  %v8139_v38 = vor.u32 %v10174_v10, %v8136_v30  ;;  %v9958_v40 = vld [vmem:[#allocation14 + $0x40c] sm:$0xf]  ;;  %v9483_v63 = vor.u32 %v10510_v39, %v9480_v20  ;;  %v9774_v39 = vld [vmem:[#allocation14 + $0x1790] sm:$0xf] }
 0x3db   :  { %v7654_v47 = vld [vmem:[#allocation14 + $0x708] sm:$0xf]  ;;  %v6887_v58 = vor.u32 %v9874_v46, %v6886_v45  ;;  %v10150_v18 = vld [vmem:[#allocation14 + $0xa0c] sm:$0xf]  ;;  %v10595_v20 = vld [vmem:[#allocation14 + $0x17ec] sm:$0xf0] }
 0x3dc   :  { %v10066_v21 = vld [vmem:[#allocation14 + $0x764] sm:$0xf0]  ;;  %6148 = vmatpush.bf16.msrb.mxu2 %v6983_v1  ;;  %6176 = vmatpush.bf16.msra.mxu0 %v8327_v23  ;;  %v11207_v6 = vpop.f32.mrf.mxu0  ;;  %v8616_v45 = vld [vmem:[#allocation14 + $0xee8] sm:$0xf0]  ;;  %v8043_v46 = vor.u32 %v10150_v18, %v8040_v43 }
 0x3dd   :  { %v7655_v59 = vor.u32 %v10066_v21, %v7654_v47  ;;  %v6790_v61 = vld [vmem:[#allocation14 + $0x48] sm:$0xf]  ;;  %v10486_v47 = vld [vmem:[#allocation14 + $0x148c] sm:$0xf] }
 0x3de   :  { %6161 = vmatpush.bf16.msrb.mxu3 %v7751_v41  ;;  %v9850_v4 = vld [vmem:[#allocation14 + $0xa4] sm:$0xf0]  ;;  %6189 = vmatpush.bf16.msra.mxu1 %v9095_v51  ;;  %v11209_v1 = vpop.f32.mrf.mxu1  ;;  %v7272_v41 = vld [vmem:[#allocation14 + $0x468] sm:$0xf0] }
 0x3df   :  { %v7558_v7 = vld [vmem:[#allocation14 + $0x648] sm:$0xf]  ;;  %v6791_v49 = vor.u32 %v9850_v4, %v6790_v61  ;;  %6177 = vmatmul.bf16.vlgmr.msra.gmra.mxu0 %v10962_v12  ;;  %v7275_v56 = vor.u32 %v9958_v40, %v7272_v41  ;;  %v9384_v21 = vld [vmem:[#allocation14 + $0x14e8] sm:$0xf0] }
 0x3e0   :  { %v10042_v14 = vld [vmem:[#allocation14 + $0x6a4] sm:$0xf0]  ;;  %6221 = vmatpush.bf16.msrb.mxu0 %v9003_v2  ;;  %6149 = vmatpush.bf16.msrb.mxu2 %v6887_v58  ;;  %v9934_v23 = vld [vmem:[#allocation14 + $0x34c] sm:$0xf]  ;;  %v8619_v2 = vor.u32 %v10294_v22, %v8616_v45  ;;  %v9775_v45 = vor.u32 %v10595_v20, %v9774_v39  ;;  %v1333_v39 = vperm.slane %v11183_v28, 6 }
 0x3e1   :  { %v7559_v33 = vor.u32 %v10042_v14, %v7558_v7  ;;  %6190 = vmatmul.bf16.vlgmr.msra.gmra.mxu1 %v10964_v13  ;;  %v7176_v51 = vld [vmem:[#allocation14 + $0x3a8] sm:$0xf0] }
 0x3e2   :  { %6234 = vmatpush.bf16.msrb.mxu1 %v9771_v34  ;;  %6162 = vmatpush.bf16.msrb.mxu3 %v7655_v59  ;;  %v10126_v53 = vld [vmem:[#allocation14 + $0x94c] sm:$0xf]  ;;  %v9387_v34 = vor.u32 %v10486_v47, %v9384_v21  ;;  %v7179_v42 = vor.u32 %v9934_v23, %v7176_v51  ;;  %v9678_v47 = vld [vmem:[#allocation14 + $0x16d0] sm:$0xf] }
 0x3e3   :  { %v7944_v55 = vld [vmem:[#allocation14 + $0x9a8] sm:$0xf0] }
 0x3e4   :  { %6222 = vmatpush.bf16.msrb.mxu0 %v8907_v48  ;;  %6150 = vmatpush.bf16.msrb.mxu2 %v6791_v49  ;;  %v10270_v8 = vld [vmem:[#allocation14 + $0xdcc] sm:$0xf]  ;;  %v7947_v58 = vor.u32 %v10126_v53, %v7944_v55  ;;  %v5972_v61 = vpop.f32.mrf.mxu0  ;;  %v10571_v55 = vld [vmem:[#allocation14 + $0x172c] sm:$0xf0] }
 0x3e5   :  { %v8520_v52 = vld [vmem:[#allocation14 + $0xe28] sm:$0xf0]  ;;  %v9679_v61 = vor.u32 %v10571_v55, %v9678_v47  ;;  %v10139_v47 = vld [vmem:[#allocation14 + $0x9ac] sm:$0xf0] }
 0x3e6   :  { %6235 = vmatpush.bf16.msrb.mxu1 %v9675_v11  ;;  %6163 = vmatpush.bf16.msrb.mxu3 %v7559_v33  ;;  %v10462_v59 = vld [vmem:[#allocation14 + $0x13cc] sm:$0xf]  ;;  %v5985_v4 = vpop.f32.mrf.mxu1  ;;  %v8523_v26 = vor.u32 %v10270_v8, %v8520_v52  ;;  %v10283_v55 = vld [vmem:[#allocation14 + $0xe2c] sm:$0xf0] }
 0x3e7   :  { %6151 = vmatmul.bf16.vlgmr.msrb.gmra.mxu2 %v10968_v35  ;;  %v9288_v62 = vld [vmem:[#allocation14 + $0x1428] sm:$0xf0] }
 0x3e8   :  { %6195 = vmatpush.bf16.msra.mxu2 %v7467_v25  ;;  %6223 = vmatpush.bf16.msrb.mxu0 %v8811_v31  ;;  %v9910_v60 = vld [vmem:[#allocation14 + $0x28c] sm:$0xf]  ;;  %v9291_v44 = vor.u32 %v10462_v59, %v9288_v62  ;;  %v8238_v59 = vld [vmem:[#allocation14 + $0xb90] sm:$0xf] }
 0x3e9   :  { %6164 = vmatmul.bf16.vlgmr.msrb.gmra.mxu3 %v10970_v36  ;;  %v7080_v7 = vld [vmem:[#allocation14 + $0x2e8] sm:$0xf0]  ;;  %v10211_v62 = vld [vmem:[#allocation14 + $0xbec] sm:$0xf0] }
 0x3ea   :  { %6208 = vmatpush.bf16.msra.mxu3 %v8235_v27  ;;  %6236 = vmatpush.bf16.msrb.mxu1 %v9579_v5  ;;  %v10102_v19 = vld [vmem:[#allocation14 + $0x88c] sm:$0xf]  ;;  %v7083_v48 = vor.u32 %v9910_v60, %v7080_v7  ;;  %v11213_v0 = vpop.f32.mrf.mxu2 }
 0x3eb   :  { %v7848_v14 = vld [vmem:[#allocation14 + $0x8e8] sm:$0xf0] }
 0x3ec   :  { %6196 = vmatpush.bf16.msra.mxu2 %v7371_v57  ;;  %6224 = vmatpush.bf16.msrb.mxu0 %v8715_v15  ;;  %v10246_v16 = vld [vmem:[#allocation14 + $0xd0c] sm:$0xf]  ;;  %v7851_v11 = vor.u32 %v10102_v19, %v7848_v14  ;;  %v11215_v25 = vpop.f32.mrf.mxu3  ;;  %v9006_v57 = vld [vmem:[#allocation14 + $0x1190] sm:$0xf] }
 0x3ed   :  { %v8424_v54 = vld [vmem:[#allocation14 + $0xd68] sm:$0xf0]  ;;  %v8814_v19 = vld [vmem:[#allocation14 + $0x1010] sm:$0xf] }
 0x3ee   :  { %6209 = vmatpush.bf16.msra.mxu3 %v8139_v38  ;;  %6237 = vmatpush.bf16.msrb.mxu1 %v9483_v63  ;;  %v10438_v49 = vld [vmem:[#allocation14 + $0x130c] sm:$0xf]  ;;  %v8427_v24 = vor.u32 %v10246_v16, %v8424_v54  ;;  %v10403_v38 = vld [vmem:[#allocation14 + $0x11ec] sm:$0xf0] }
 0x3ef   :  { %v9192_v33 = vld [vmem:[#allocation14 + $0x1368] sm:$0xf0]  ;;  %v9007_v22 = vor.u32 %v10403_v38, %v9006_v57  ;;  %v10355_v14 = vld [vmem:[#allocation14 + $0x106c] sm:$0xf0] }
 0x3f0   :  { %6197 = vmatpush.bf16.msra.mxu2 %v7275_v56  ;;  %6225 = vmatpush.bf16.msrb.mxu0 %v8619_v2  ;;  %v9886_v17 = vld [vmem:[#allocation14 + $0x1cc] sm:$0xf]  ;;  %v9195_v29 = vor.u32 %v10438_v49, %v9192_v33  ;;  %v8910_v56 = vld [vmem:[#allocation14 + $0x10d0] sm:$0xf] }
 0x3f1   :  { %v6984_v27 = vld [vmem:[#allocation14 + $0x228] sm:$0xf0]  ;;  %v9582_v16 = vld [vmem:[#allocation14 + $0x1610] sm:$0xf] }
 0x3f2   :  { %6210 = vmatpush.bf16.msra.mxu3 %v8043_v46  ;;  %6238 = vmatpush.bf16.msrb.mxu1 %v9387_v34  ;;  %v10078_v50 = vld [vmem:[#allocation14 + $0x7cc] sm:$0xf]  ;;  %v6987_v5 = vor.u32 %v9886_v17, %v6984_v27  ;;  %v10379_v46 = vld [vmem:[#allocation14 + $0x112c] sm:$0xf0]  ;;  %v5946_v51 = vpop.f32.mrf.mxu2  ;;  %v8815_v17 = vor.u32 %v10355_v14, %v8814_v19 }
 0x3f3   :  { %v7752_v9 = vld [vmem:[#allocation14 + $0x828] sm:$0xf0]  ;;  %v8911_v60 = vor.u32 %v10379_v46, %v8910_v56  ;;  %v10547_v54 = vld [vmem:[#allocation14 + $0x166c] sm:$0xf0] }
 0x3f4   :  { %6198 = vmatpush.bf16.msra.mxu2 %v7179_v42  ;;  %6226 = vmatpush.bf16.msrb.mxu0 %v8523_v26  ;;  %v10222_v10 = vld [vmem:[#allocation14 + $0xc4c] sm:$0xf]  ;;  %v7755_v32 = vor.u32 %v10078_v50, %v7752_v9  ;;  %v5959_v53 = vpop.f32.mrf.mxu3  ;;  %v7470_v42 = vld [vmem:[#allocation14 + $0x590] sm:$0xf]  ;;  %v9583_v27 = vor.u32 %v10547_v54, %v9582_v16 }
 0x3f5   :  { %v8328_v30 = vld [vmem:[#allocation14 + $0xca8] sm:$0xf0]  ;;  %v8142_v49 = vld [vmem:[#allocation14 + $0xad0] sm:$0xf] }
 0x3f6   :  { %6211 = vmatpush.bf16.msra.mxu3 %v7947_v58  ;;  %6239 = vmatpush.bf16.msrb.mxu1 %v9291_v44  ;;  %v10414_v31 = vld [vmem:[#allocation14 + $0x124c] sm:$0xf]  ;;  %v8331_v15 = vor.u32 %v10222_v10, %v8328_v30  ;;  %v10019_v58 = vld [vmem:[#allocation14 + $0x5ec] sm:$0xf0]  ;;  %v8239_v44 = vor.u32 %v10211_v62, %v8238_v59 }
 0x3f7   :  { %v9096_v37 = vld [vmem:[#allocation14 + $0x12a8] sm:$0xf0]  ;;  %v7471_v26 = vor.u32 %v10019_v58, %v7470_v42  ;;  %v10187_v33 = vld [vmem:[#allocation14 + $0xb2c] sm:$0xf0] }
 0x3f8   :  { %6199 = vmatpush.bf16.msra.mxu2 %v7083_v48  ;;  %v9862_v40 = vld [vmem:[#allocation14 + $0x10c] sm:$0xf]  ;;  %6227 = vmatpush.bf16.msrb.mxu0 %v8427_v24  ;;  %v9099_v63 = vor.u32 %v10414_v31, %v9096_v37  ;;  %v7374_v48 = vld [vmem:[#allocation14 + $0x4d0] sm:$0xf] }
 0x3f9   :  { %v6888_v41 = vld [vmem:[#allocation14 + $0x168] sm:$0xf0]  ;;  %v8718_v50 = vld [vmem:[#allocation14 + $0xf50] sm:$0xf] }
 0x3fa   :  { %6212 = vmatpush.bf16.msra.mxu3 %v7851_v11  ;;  %v10054_v18 = vld [vmem:[#allocation14 + $0x70c] sm:$0xf]  ;;  %6240 = vmatpush.bf16.msrb.mxu1 %v9195_v29  ;;  %v6891_v21 = vor.u32 %v9862_v40, %v6888_v41  ;;  %v9995_v11 = vld [vmem:[#allocation14 + $0x52c] sm:$0xf0]  ;;  %v8143_v29 = vor.u32 %v10187_v33, %v8142_v49 }
 0x3fb   :  { %v7656_v43 = vld [vmem:[#allocation14 + $0x768] sm:$0xf0]  ;;  %v10331_v9 = vld [vmem:[#allocation14 + $0xfac] sm:$0xf0]  ;;  %v7375_v24 = vor.u32 %v9995_v11, %v7374_v48 }
 0x3fc   :  { %6200 = vmatpush.bf16.msra.mxu2 %v6987_v5  ;;  %v7659_v23 = vor.u32 %v10054_v18, %v7656_v43  ;;  %v9838_v2 = vld [vmem:[#allocation14 + $0x4c] sm:$0xf]  ;;  %6228 = vmatpush.bf16.msrb.mxu0 %v8331_v15  ;;  %v9486_v10 = vld [vmem:[#allocation14 + $0x1550] sm:$0xf]  ;;  %v11219_v5 = vpop.f32.mrf.mxu0  ;;  %v8719_v20 = vor.u32 %v10331_v9, %v8718_v50 }
 0x3fd   :  { %v6792_v34 = vld [vmem:[#allocation14 + $0xa8] sm:$0xf0]  ;;  %v10523_v30 = vld [vmem:[#allocation14 + $0x15ac] sm:$0xf0] }
 0x3fe   :  { %6213 = vmatpush.bf16.msra.mxu3 %v7755_v32  ;;  %v10030_v8 = vld [vmem:[#allocation14 + $0x64c] sm:$0xf]  ;;  %6241 = vmatpush.bf16.msrb.mxu1 %v9099_v63  ;;  %v6795_v4 = vor.u32 %v9838_v2, %v6792_v34  ;;  %v7278_v31 = vld [vmem:[#allocation14 + $0x410] sm:$0xf]  ;;  %v11221_v32 = vpop.f32.mrf.mxu1  ;;  %v9487_v40 = vor.u32 %v10523_v30, %v9486_v10 }
 0x3ff   :  { %v7560_v52 = vld [vmem:[#allocation14 + $0x6a8] sm:$0xf0]  ;;  %6229 = vmatmul.bf16.vlgmr.msrb.gmra.mxu0 %v10962_v12  ;;  %v9971_v37 = vld [vmem:[#allocation14 + $0x46c] sm:$0xf0] }
 0x400   :  { %6273 = vmatpush.bf16.msra.mxu0 %v9007_v22  ;;  %6201 = vmatpush.bf16.msra.mxu2 %v6891_v21  ;;  %v7563_v7 = vor.u32 %v10030_v8, %v7560_v52  ;;  %v8046_v57 = vld [vmem:[#allocation14 + $0xa10] sm:$0xf]  ;;  %v7279_v43 = vor.u32 %v9971_v37, %v7278_v31  ;;  %v5945_v21 = vadd.f32 %v11213_v0, %v1333_v39  ;;  %v10391_v39 = vld [vmem:[#allocation14 + $0x1194] sm:$0xf] }
 0x401   :  { %6242 = vmatmul.bf16.vlgmr.msrb.gmra.mxu1 %v10964_v13  ;;  %v10163_v38 = vld [vmem:[#allocation14 + $0xa6c] sm:$0xf0] }
 0x402   :  { %6286 = vmatpush.bf16.msra.mxu1 %v9775_v45  ;;  %6214 = vmatpush.bf16.msra.mxu3 %v7659_v23  ;;  %v8622_v41 = vld [vmem:[#allocation14 + $0xe90] sm:$0xf]  ;;  %v8047_v15 = vor.u32 %v10163_v38, %v8046_v57  ;;  %v5958_v0 = vadd.f32 %v11215_v25, %v5945_v21 }
 0x403   :  { %v10307_v18 = vld [vmem:[#allocation14 + $0xeec] sm:$0xf0] }
 0x404   :  { %6274 = vmatpush.bf16.msra.mxu0 %v8911_v60  ;;  %6202 = vmatpush.bf16.msra.mxu2 %v6795_v4  ;;  %v9390_v63 = vld [vmem:[#allocation14 + $0x1490] sm:$0xf]  ;;  %v8623_v23 = vor.u32 %v10307_v18, %v8622_v41  ;;  %v6024_v58 = vpop.f32.mrf.mxu0  ;;  %v1334_v4 = vperm.slane %v11183_v28, 7  ;;  %v5971_v28 = vadd.f32 %v11207_v6, %v5958_v0  ;;  %v9776_v41 = vld [vmem:[#allocation14 + $0x17f0] sm:$0xf0] }
 0x405   :  { %v10499_v22 = vld [vmem:[#allocation14 + $0x14ec] sm:$0xf0]  ;;  %v8240_v0 = vld [vmem:[#allocation14 + $0xbf0] sm:$0xf0] }
 0x406   :  { %6287 = vmatpush.bf16.msra.mxu1 %v9679_v61  ;;  %6215 = vmatpush.bf16.msra.mxu3 %v7563_v7  ;;  %v7182_v45 = vld [vmem:[#allocation14 + $0x350] sm:$0xf]  ;;  %v9391_v51 = vor.u32 %v10499_v22, %v9390_v63  ;;  %v6037_v59 = vpop.f32.mrf.mxu1  ;;  %v5984_v6 = vadd.f32 %v11209_v1, %v5971_v28  ;;  %v8144_v28 = vld [vmem:[#allocation14 + $0xb30] sm:$0xf0] }
 0x407   :  { %6203 = vmatmul.bf16.vlgmr.msra.gmra.mxu2 %v10968_v35  ;;  %v9947_v56 = vld [vmem:[#allocation14 + $0x3ac] sm:$0xf0] }
 0x408   :  { %6247 = vmatpush.bf16.msrb.mxu2 %v7471_v26  ;;  %6275 = vmatpush.bf16.msra.mxu0 %v8815_v17  ;;  %v7950_v46 = vld [vmem:[#allocation14 + $0x950] sm:$0xf]  ;;  %v7183_v2 = vor.u32 %v9947_v56, %v7182_v45  ;;  %v6489_v58 = vrot.slane %v5984_v6, 4  ;;  %v10295_v6 = vld [vmem:[#allocation14 + $0xe94] sm:$0xf] }
 0x409   :  { %6216 = vmatmul.bf16.vlgmr.msra.gmra.mxu3 %v10970_v36  ;;  %v8526_v53 = vld [vmem:[#allocation14 + $0xdd0] sm:$0xf]  ;;  %v7951_v34 = vor.u32 %v10139_v47, %v7950_v46  ;;  %v10367_v46 = vld [vmem:[#allocation14 + $0x10d4] sm:$0xf] }
 0x40a   :  { %6260 = vmatpush.bf16.msrb.mxu3 %v8239_v44  ;;  %6288 = vmatpush.bf16.msra.mxu1 %v9583_v27  ;;  %v9294_v8 = vld [vmem:[#allocation14 + $0x13d0] sm:$0xf]  ;;  %v8527_v7 = vor.u32 %v10283_v55, %v8526_v53  ;;  %v5996_v49 = vpop.f32.mrf.mxu2  ;;  %v10559_v53 = vld [vmem:[#allocation14 + $0x16d4] sm:$0xf] }
 0x40b   :  { %v10475_v52 = vld [vmem:[#allocation14 + $0x142c] sm:$0xf0]  ;;  %v5997_v50 = vadd.f32 %v5996_v49, %v1334_v4  ;;  %v9680_v55 = vld [vmem:[#allocation14 + $0x1730] sm:$0xf0] }
 0x40c   :  { %6248 = vmatpush.bf16.msrb.mxu2 %v7375_v24  ;;  %6276 = vmatpush.bf16.msra.mxu0 %v8719_v20  ;;  %v7086_v42 = vld [vmem:[#allocation14 + $0x290] sm:$0xf]  ;;  %v9295_v19 = vor.u32 %v10475_v52, %v9294_v8  ;;  %v6009_v33 = vpop.f32.mrf.mxu3  ;;  %v9008_v20 = vld [vmem:[#allocation14 + $0x11f0] sm:$0xf0] }
 0x40d   :  { %v9923_v62 = vld [vmem:[#allocation14 + $0x2ec] sm:$0xf0]  ;;  %v6010_v31 = vadd.f32 %v6009_v33, %v5997_v50  ;;  %v9011_v21 = vor.u32 %v10391_v39, %v9008_v20  ;;  %v9584_v33 = vld [vmem:[#allocation14 + $0x1670] sm:$0xf0] }
 0x40e   :  { %6261 = vmatpush.bf16.msrb.mxu3 %v8143_v29  ;;  %6289 = vmatpush.bf16.msra.mxu1 %v9487_v40  ;;  %v7854_v60 = vld [vmem:[#allocation14 + $0x890] sm:$0xf]  ;;  %v7087_v44 = vor.u32 %v9923_v62, %v7086_v42  ;;  %v10583_v40 = vld [vmem:[#allocation14 + $0x1794] sm:$0xf] }
 0x40f   :  { %v10115_v61 = vld [vmem:[#allocation14 + $0x8ec] sm:$0xf0]  ;;  %v7280_v39 = vld [vmem:[#allocation14 + $0x470] sm:$0xf0] }
 0x410   :  { %6249 = vmatpush.bf16.msrb.mxu2 %v7279_v43  ;;  %6277 = vmatpush.bf16.msra.mxu0 %v8623_v23  ;;  %v8430_v14 = vld [vmem:[#allocation14 + $0xd10] sm:$0xf]  ;;  %v7855_v16 = vor.u32 %v10115_v61, %v7854_v60  ;;  %v6023_v43 = vadd.f32 %v11219_v5, %v6010_v31  ;;  %v9779_v23 = vor.u32 %v10583_v40, %v9776_v41  ;;  %v10007_v60 = vld [vmem:[#allocation14 + $0x594] sm:$0xf] }
 0x411   :  { %v10259_v26 = vld [vmem:[#allocation14 + $0xd6c] sm:$0xf0]  ;;  %v10199_v61 = vld [vmem:[#allocation14 + $0xb94] sm:$0xf] }
 0x412   :  { %6262 = vmatpush.bf16.msrb.mxu3 %v8047_v15  ;;  %6290 = vmatpush.bf16.msra.mxu1 %v9391_v51  ;;  %v9198_v54 = vld [vmem:[#allocation14 + $0x1310] sm:$0xf]  ;;  %v8431_v9 = vor.u32 %v10259_v26, %v8430_v14  ;;  %v6036_v47 = vadd.f32 %v11221_v32, %v6023_v43  ;;  %v8912_v51 = vld [vmem:[#allocation14 + $0x1130] sm:$0xf0]  ;;  %v5998_v5 = vpop.f32.mrf.mxu2  ;;  %v8243_v49 = vor.u32 %v10199_v61, %v8240_v0 }
 0x413   :  { %v10451_v48 = vld [vmem:[#allocation14 + $0x136c] sm:$0xf0]  ;;  %v7472_v32 = vld [vmem:[#allocation14 + $0x5f0] sm:$0xf0] }
 0x414   :  { %6250 = vmatpush.bf16.msrb.mxu2 %v7183_v2  ;;  %v6990_v11 = vld [vmem:[#allocation14 + $0x1d0] sm:$0xf]  ;;  %6278 = vmatpush.bf16.msra.mxu0 %v8527_v7  ;;  %v9199_v24 = vor.u32 %v10451_v48, %v9198_v54  ;;  %v6490_v59 = vrot.slane %v6036_v47, 2  ;;  %v8915_v7 = vor.u32 %v10367_v46, %v8912_v51  ;;  %v8816_v54 = vld [vmem:[#allocation14 + $0x1070] sm:$0xf0] }
 0x415   :  { %v9899_v17 = vld [vmem:[#allocation14 + $0x22c] sm:$0xf0]  ;;  %v10535_v48 = vld [vmem:[#allocation14 + $0x1614] sm:$0xf] }
 0x416   :  { %6263 = vmatpush.bf16.msrb.mxu3 %v7951_v34  ;;  %v7758_v27 = vld [vmem:[#allocation14 + $0x7d0] sm:$0xf]  ;;  %6291 = vmatpush.bf16.msra.mxu1 %v9295_v19  ;;  %v6991_v37 = vor.u32 %v9899_v17, %v6990_v11  ;;  %v6011_v34 = vpop.f32.mrf.mxu3  ;;  %v6510_v4 = vsel %vm6499_vm3, %v6489_v58, %v6490_v59  ;;  %v9683_v19 = vor.u32 %v10559_v53, %v9680_v55  ;;  %v9983_v17 = vld [vmem:[#allocation14 + $0x4d4] sm:$0xf] }
 0x417   :  { %v10091_v25 = vld [vmem:[#allocation14 + $0x82c] sm:$0xf0]  ;;  %v6511_v14 = vsel %vm6501_vm4, %v11203_v3, %v6510_v4  ;;  %v7475_v11 = vor.u32 %v10007_v60, %v7472_v32  ;;  %v9587_v50 = vor.u32 %v10535_v48, %v9584_v33  ;;  %v9488_v31 = vld [vmem:[#allocation14 + $0x15b0] sm:$0xf0] }
 0x418   :  { %v8334_v29 = vld [vmem:[#allocation14 + $0xc50] sm:$0xf]  ;;  %6251 = vmatpush.bf16.msrb.mxu2 %v7087_v44  ;;  %v7759_v57 = vor.u32 %v10091_v25, %v7758_v27  ;;  %6279 = vmatpush.bf16.msra.mxu0 %v8431_v9  ;;  %6527 = vst [vmem:[#allocation17 + $0x18] sm:$0xff] %v6511_v14  ;;  %v7376_v27 = vld [vmem:[#allocation14 + $0x530] sm:$0xf0] }
 0x419   :  { %v10235_v10 = vld [vmem:[#allocation14 + $0xcac] sm:$0xf0]  ;;  %v10175_v25 = vld [vmem:[#allocation14 + $0xad4] sm:$0xf] }
 0x41a   :  { %v9102_v30 = vld [vmem:[#allocation14 + $0x1250] sm:$0xf]  ;;  %6264 = vmatpush.bf16.msrb.mxu3 %v7855_v16  ;;  %6292 = vmatpush.bf16.msra.mxu1 %v9199_v24  ;;  %v8335_v45 = vor.u32 %v10235_v10, %v8334_v29  ;;  %v10343_v16 = vld [vmem:[#allocation14 + $0x1014] sm:$0xf]  ;;  %v7379_v29 = vor.u32 %v9983_v17, %v7376_v27  ;;  %v8147_v10 = vor.u32 %v10175_v25, %v8144_v28 }
 0x41b   :  { %v10427_v38 = vld [vmem:[#allocation14 + $0x12ac] sm:$0xf0]  ;;  %v8819_v3 = vor.u32 %v10343_v16, %v8816_v54  ;;  %v10319_v9 = vld [vmem:[#allocation14 + $0xf54] sm:$0xf] }
 0x41c   :  { %v6894_v18 = vld [vmem:[#allocation14 + $0x110] sm:$0xf]  ;;  %v9103_v56 = vor.u32 %v10427_v38, %v9102_v30  ;;  %6252 = vmatpush.bf16.msrb.mxu2 %v6991_v37  ;;  %6280 = vmatpush.bf16.msra.mxu0 %v8335_v45  ;;  %v8720_v24 = vld [vmem:[#allocation14 + $0xfb0] sm:$0xf0] }
 0x41d   :  { %v9875_v15 = vld [vmem:[#allocation14 + $0x16c] sm:$0xf0]  ;;  %v10511_v30 = vld [vmem:[#allocation14 + $0x1554] sm:$0xf]  ;;  %v8723_v41 = vor.u32 %v10319_v9, %v8720_v24 }
 0x41e   :  { %v7662_v63 = vld [vmem:[#allocation14 + $0x710] sm:$0xf]  ;;  %6265 = vmatpush.bf16.msrb.mxu3 %v7759_v57  ;;  %v6895_v1 = vor.u32 %v9875_v15, %v6894_v18  ;;  %6293 = vmatpush.bf16.msra.mxu1 %v9103_v56  ;;  %v9959_v37 = vld [vmem:[#allocation14 + $0x414] sm:$0xf]  ;;  %v11238_v57 = vpop.f32.mrf.mxu0  ;;  %v11240_v38 = vpop.f32.mrf.mxu1  ;;  %v9491_v18 = vor.u32 %v10511_v30, %v9488_v31  ;;  %v9014_v30 = vld [vmem:[#allocation14 + $0x1198] sm:$0xf] }
 0x41f   :  { %v10067_v22 = vld [vmem:[#allocation14 + $0x76c] sm:$0xf0]  ;;  %6281 = vmatmul.bf16.vlgmr.msra.gmra.mxu0 %v10962_v12  ;;  %v10151_v20 = vld [vmem:[#allocation14 + $0xa14] sm:$0xf]  ;;  %v7283_v15 = vor.u32 %v9959_v37, %v7280_v39  ;;  %v10404_v31 = vld [vmem:[#allocation14 + $0x11f4] sm:$0xf0] }
 0x420   :  { %v7663_v2 = vor.u32 %v10067_v22, %v7662_v63  ;;  %v6798_v8 = vld [vmem:[#allocation14 + $0x50] sm:$0xf]  ;;  %6325 = vmatpush.bf16.msrb.mxu0 %v9011_v21  ;;  %6253 = vmatpush.bf16.msrb.mxu2 %v6895_v1  ;;  %v8048_v40 = vld [vmem:[#allocation14 + $0xa70] sm:$0xf0]  ;;  %v9782_v37 = vld [vmem:[#allocation14 + $0x1798] sm:$0xf] }
 0x421   :  { %v9851_v52 = vld [vmem:[#allocation14 + $0xac] sm:$0xf0]  ;;  %6294 = vmatmul.bf16.vlgmr.msra.gmra.mxu1 %v10964_v13  ;;  %v8624_v43 = vld [vmem:[#allocation14 + $0xef0] sm:$0xf0]  ;;  %v8051_v63 = vor.u32 %v10151_v20, %v8048_v40  ;;  %v10596_v39 = vld [vmem:[#allocation14 + $0x17f4] sm:$0xf0] }
 0x422   :  { %v7566_v42 = vld [vmem:[#allocation14 + $0x650] sm:$0xf]  ;;  %6338 = vmatpush.bf16.msrb.mxu1 %v9779_v23  ;;  %6266 = vmatpush.bf16.msrb.mxu3 %v7663_v2  ;;  %v6799_v26 = vor.u32 %v9851_v52, %v6798_v8  ;;  %v10487_v22 = vld [vmem:[#allocation14 + $0x1494] sm:$0xf]  ;;  %v8627_v23 = vor.u32 %v10295_v6, %v8624_v43 }
 0x423   :  { %v10043_v62 = vld [vmem:[#allocation14 + $0x6ac] sm:$0xf0]  ;;  %v9392_v45 = vld [vmem:[#allocation14 + $0x14f0] sm:$0xf0] }
 0x424   :  { %v7567_v44 = vor.u32 %v10043_v62, %v7566_v42  ;;  %6326 = vmatpush.bf16.msrb.mxu0 %v8915_v7  ;;  %6254 = vmatpush.bf16.msrb.mxu2 %v6799_v26  ;;  %v9935_v56 = vld [vmem:[#allocation14 + $0x354] sm:$0xf]  ;;  %v9395_v51 = vor.u32 %v10487_v22, %v9392_v45  ;;  %v9015_v22 = vor.u32 %v10404_v31, %v9014_v30  ;;  %v8630_v31 = vld [vmem:[#allocation14 + $0xe98] sm:$0xf] }
 0x425   :  { %v7184_v46 = vld [vmem:[#allocation14 + $0x3b0] sm:$0xf0]  ;;  %v9783_v45 = vor.u32 %v10596_v39, %v9782_v37  ;;  %v10308_v37 = vld [vmem:[#allocation14 + $0xef4] sm:$0xf0] }
 0x426   :  { %6339 = vmatpush.bf16.msrb.mxu1 %v9683_v19  ;;  %6267 = vmatpush.bf16.msrb.mxu3 %v7567_v44  ;;  %v10127_v47 = vld [vmem:[#allocation14 + $0x954] sm:$0xf]  ;;  %v7187_v2 = vor.u32 %v9935_v56, %v7184_v46  ;;  %v6076_v42 = vpop.f32.mrf.mxu0  ;;  %v6089_v58 = vpop.f32.mrf.mxu1  ;;  %v8918_v56 = vld [vmem:[#allocation14 + $0x10d8] sm:$0xf] }
 0x427   :  { %6255 = vmatmul.bf16.vlgmr.msrb.gmra.mxu2 %v10968_v35  ;;  %v7952_v21 = vld [vmem:[#allocation14 + $0x9b0] sm:$0xf0]  ;;  %v10380_v46 = vld [vmem:[#allocation14 + $0x1134] sm:$0xf0] }
 0x428   :  { %6299 = vmatpush.bf16.msra.mxu2 %v7475_v11  ;;  %6327 = vmatpush.bf16.msrb.mxu0 %v8819_v3  ;;  %v10271_v53 = vld [vmem:[#allocation14 + $0xdd4] sm:$0xf]  ;;  %v7955_v5 = vor.u32 %v10127_v47, %v7952_v21  ;;  %v9686_v47 = vld [vmem:[#allocation14 + $0x16d8] sm:$0xf]  ;;  %v8919_v58 = vor.u32 %v10380_v46, %v8918_v56 }
 0x429   :  { %6268 = vmatmul.bf16.vlgmr.msrb.gmra.mxu3 %v10970_v36  ;;  %v8528_v55 = vld [vmem:[#allocation14 + $0xe30] sm:$0xf0]  ;;  %v10212_v42 = vld [vmem:[#allocation14 + $0xbf4] sm:$0xf0] }
 0x42a   :  { %6312 = vmatpush.bf16.msra.mxu3 %v8243_v49  ;;  %6340 = vmatpush.bf16.msrb.mxu1 %v9587_v50  ;;  %v11244_v1 = vld [vmem:[#allocation16 + $0x10] sm:$0xff]  ;;  %v8531_v61 = vor.u32 %v10271_v53, %v8528_v55  ;;  %v6048_v54 = vpop.f32.mrf.mxu2  ;;  %v10572_v53 = vld [vmem:[#allocation14 + $0x1734] sm:$0xf0] }
 0x42b   :  { %v10463_v34 = vld [vmem:[#allocation14 + $0x13d4] sm:$0xf]  ;;  %v1335_v32 = vperm.slane %v11244_v1, 0  ;;  %v8534_v56 = vld [vmem:[#allocation14 + $0xdd8] sm:$0xf] }
 0x42c   :  { %6300 = vmatpush.bf16.msra.mxu2 %v7379_v29  ;;  %6328 = vmatpush.bf16.msrb.mxu0 %v8723_v41  ;;  %v9296_v8 = vld [vmem:[#allocation14 + $0x1430] sm:$0xf0]  ;;  %v6061_v48 = vpop.f32.mrf.mxu3  ;;  %v10284_v46 = vld [vmem:[#allocation14 + $0xe34] sm:$0xf0] }
 0x42d   :  { %v9911_v52 = vld [vmem:[#allocation14 + $0x294] sm:$0xf]  ;;  %v9299_v0 = vor.u32 %v10463_v34, %v9296_v8  ;;  %v6049_v17 = vadd.f32 %v6048_v54, %v1335_v32  ;;  %v7478_v8 = vld [vmem:[#allocation14 + $0x598] sm:$0xf] }
 0x42e   :  { %6313 = vmatpush.bf16.msra.mxu3 %v8147_v10  ;;  %6341 = vmatpush.bf16.msrb.mxu1 %v9491_v18  ;;  %v7088_v59 = vld [vmem:[#allocation14 + $0x2f0] sm:$0xf0]  ;;  %v8822_v32 = vld [vmem:[#allocation14 + $0x1018] sm:$0xf] }
 0x42f   :  { %v10103_v62 = vld [vmem:[#allocation14 + $0x894] sm:$0xf]  ;;  %v7091_v19 = vor.u32 %v9911_v52, %v7088_v59  ;;  %v6062_v9 = vadd.f32 %v6061_v48, %v6049_v17  ;;  %v8246_v52 = vld [vmem:[#allocation14 + $0xb98] sm:$0xf]  ;;  %v9687_v59 = vor.u32 %v10572_v53, %v9686_v47 }
 0x430   :  { %6301 = vmatpush.bf16.msra.mxu2 %v7283_v15  ;;  %v7856_v60 = vld [vmem:[#allocation14 + $0x8f0] sm:$0xf0]  ;;  %6329 = vmatpush.bf16.msrb.mxu0 %v8627_v23 }
 0x431   :  { %v10247_v4 = vld [vmem:[#allocation14 + $0xd14] sm:$0xf]  ;;  %v7859_v14 = vor.u32 %v10103_v62, %v7856_v60  ;;  %v6075_v40 = vadd.f32 %v11238_v57, %v6062_v9  ;;  %v9972_v9 = vld [vmem:[#allocation14 + $0x474] sm:$0xf0] }
 0x432   :  { %6314 = vmatpush.bf16.msra.mxu3 %v8051_v63  ;;  %6342 = vmatpush.bf16.msrb.mxu1 %v9395_v51  ;;  %v8432_v7 = vld [vmem:[#allocation14 + $0xd70] sm:$0xf0]  ;;  %v6050_v57 = vpop.f32.mrf.mxu2 }
 0x433   :  { %v10439_v26 = vld [vmem:[#allocation14 + $0x1314] sm:$0xf]  ;;  %v8435_v27 = vor.u32 %v10247_v4, %v8432_v7  ;;  %v11249_v63 = vadd.f32 %v11240_v38, %v6075_v40  ;;  %v10020_v38 = vld [vmem:[#allocation14 + $0x5f4] sm:$0xf0]  ;;  %v8247_v4 = vor.u32 %v10212_v42, %v8246_v52 }
 0x434   :  { %6302 = vmatpush.bf16.msra.mxu2 %v7187_v2  ;;  %v9200_v44 = vld [vmem:[#allocation14 + $0x1370] sm:$0xf0]  ;;  %6330 = vmatpush.bf16.msrb.mxu0 %v8531_v61  ;;  %v6063_v51 = vpop.f32.mrf.mxu3  ;;  %v10356_v61 = vld [vmem:[#allocation14 + $0x1074] sm:$0xf0] }
 0x435   :  { %v9887_v16 = vld [vmem:[#allocation14 + $0x1d4] sm:$0xf]  ;;  %v9203_v25 = vor.u32 %v10439_v26, %v9200_v44  ;;  %v9590_v7 = vld [vmem:[#allocation14 + $0x1618] sm:$0xf]  ;;  %v8823_v54 = vor.u32 %v10356_v61, %v8822_v32 }
 0x436   :  { %6315 = vmatpush.bf16.msra.mxu3 %v7955_v5  ;;  %v6992_v11 = vld [vmem:[#allocation14 + $0x230] sm:$0xf0]  ;;  %6343 = vmatpush.bf16.msrb.mxu1 %v9299_v0  ;;  %v7479_v0 = vor.u32 %v10020_v38, %v7478_v8  ;;  %v9996_v26 = vld [vmem:[#allocation14 + $0x534] sm:$0xf0]  ;;  %v1336_v8 = vperm.slane %v11244_v1, 1  ;;  %v8535_v38 = vor.u32 %v10284_v46, %v8534_v56 }
 0x437   :  { %v10079_v49 = vld [vmem:[#allocation14 + $0x7d4] sm:$0xf]  ;;  %v6995_v24 = vor.u32 %v9887_v16, %v6992_v11  ;;  %v8150_v44 = vld [vmem:[#allocation14 + $0xad8] sm:$0xf] }
 0x438   :  { %v7760_v33 = vld [vmem:[#allocation14 + $0x830] sm:$0xf0]  ;;  %6303 = vmatpush.bf16.msra.mxu2 %v7091_v19  ;;  %6331 = vmatpush.bf16.msrb.mxu0 %v8435_v27  ;;  %v10548_v19 = vld [vmem:[#allocation14 + $0x1674] sm:$0xf0] }
 0x439   :  { %v10223_v28 = vld [vmem:[#allocation14 + $0xc54] sm:$0xf]  ;;  %v7763_v29 = vor.u32 %v10079_v49, %v7760_v33  ;;  %v10188_v16 = vld [vmem:[#allocation14 + $0xb34] sm:$0xf0]  ;;  %v9591_v48 = vor.u32 %v10548_v19, %v9590_v7 }
 0x43a   :  { %v8336_v3 = vld [vmem:[#allocation14 + $0xcb0] sm:$0xf0]  ;;  %6316 = vmatpush.bf16.msra.mxu3 %v7859_v14  ;;  %6344 = vmatpush.bf16.msrb.mxu1 %v9203_v25  ;;  %v7382_v14 = vld [vmem:[#allocation14 + $0x4d8] sm:$0xf]  ;;  %v8151_v17 = vor.u32 %v10188_v16, %v8150_v44 }
 0x43b   :  { %v10415_v50 = vld [vmem:[#allocation14 + $0x1254] sm:$0xf]  ;;  %v8339_v43 = vor.u32 %v10223_v28, %v8336_v3  ;;  %v8726_v11 = vld [vmem:[#allocation14 + $0xf58] sm:$0xf]  ;;  %v7383_v33 = vor.u32 %v9996_v26, %v7382_v14 }
 0x43c   :  { %v9104_v10 = vld [vmem:[#allocation14 + $0x12b0] sm:$0xf0]  ;;  %6304 = vmatpush.bf16.msra.mxu2 %v6995_v24  ;;  %v10332_v49 = vld [vmem:[#allocation14 + $0xfb4] sm:$0xf0]  ;;  %v11253_v3 = vpop.f32.mrf.mxu0 }
 0x43d   :  { %v9863_v20 = vld [vmem:[#allocation14 + $0x114] sm:$0xf]  ;;  %v9107_v15 = vor.u32 %v10415_v50, %v9104_v10  ;;  %6332 = vmatpush.bf16.msrb.mxu0 %v8339_v43  ;;  %v9494_v27 = vld [vmem:[#allocation14 + $0x1558] sm:$0xf]  ;;  %v8727_v10 = vor.u32 %v10332_v49, %v8726_v11 }
 0x43e   :  { %v6896_v41 = vld [vmem:[#allocation14 + $0x170] sm:$0xf0]  ;;  %6317 = vmatpush.bf16.msra.mxu3 %v7763_v29  ;;  %v10524_v25 = vld [vmem:[#allocation14 + $0x15b4] sm:$0xf0]  ;;  %v11255_v50 = vpop.f32.mrf.mxu1 }
 0x43f   :  { %v10055_v18 = vld [vmem:[#allocation14 + $0x714] sm:$0xf]  ;;  %v6899_v21 = vor.u32 %v9863_v20, %v6896_v41  ;;  %6345 = vmatpush.bf16.msrb.mxu1 %v9107_v15  ;;  %v7286_v28 = vld [vmem:[#allocation14 + $0x418] sm:$0xf]  ;;  %v9495_v30 = vor.u32 %v10524_v25, %v9494_v27  ;;  %v10392_v25 = vld [vmem:[#allocation14 + $0x119c] sm:$0xf] }
 0x440   :  { %v7664_v6 = vld [vmem:[#allocation14 + $0x770] sm:$0xf0]  ;;  %6333 = vmatmul.bf16.vlgmr.msrb.gmra.mxu0 %v10962_v12  ;;  %v8054_v24 = vld [vmem:[#allocation14 + $0xa18] sm:$0xf]  ;;  %v7287_v39 = vor.u32 %v9972_v9, %v7286_v28  ;;  %v9016_v28 = vld [vmem:[#allocation14 + $0x11f8] sm:$0xf0] }
 0x441   :  { %v7667_v23 = vor.u32 %v10055_v18, %v7664_v6  ;;  %v9839_v55 = vld [vmem:[#allocation14 + $0x54] sm:$0xf]  ;;  %6377 = vmatpush.bf16.msra.mxu0 %v9015_v22  ;;  %6305 = vmatpush.bf16.msra.mxu2 %v6899_v21  ;;  %v10164_v29 = vld [vmem:[#allocation14 + $0xa74] sm:$0xf0]  ;;  %v8631_v22 = vor.u32 %v10308_v37, %v8630_v31  ;;  %v10584_v9 = vld [vmem:[#allocation14 + $0x179c] sm:$0xf] }
 0x442   :  { %v6800_v2 = vld [vmem:[#allocation14 + $0xb0] sm:$0xf0]  ;;  %6346 = vmatmul.bf16.vlgmr.msrb.gmra.mxu1 %v10964_v13  ;;  %v8055_v20 = vor.u32 %v10164_v29, %v8054_v24  ;;  %v9398_v40 = vld [vmem:[#allocation14 + $0x1498] sm:$0xf]  ;;  %v9784_v24 = vld [vmem:[#allocation14 + $0x17f8] sm:$0xf0] }
 0x443   :  { %v10031_v5 = vld [vmem:[#allocation14 + $0x654] sm:$0xf]  ;;  %6390 = vmatpush.bf16.msra.mxu1 %v9783_v45  ;;  %6318 = vmatpush.bf16.msra.mxu3 %v7667_v23  ;;  %v6803_v62 = vor.u32 %v9839_v55, %v6800_v2  ;;  %v10500_v41 = vld [vmem:[#allocation14 + $0x14f4] sm:$0xf0] }
 0x444   :  { %v7568_v34 = vld [vmem:[#allocation14 + $0x6b0] sm:$0xf0]  ;;  %v7190_v18 = vld [vmem:[#allocation14 + $0x358] sm:$0xf]  ;;  %v9399_v45 = vor.u32 %v10500_v41, %v9398_v40  ;;  %v6128_v53 = vpop.f32.mrf.mxu0  ;;  %v10368_v40 = vld [vmem:[#allocation14 + $0x10dc] sm:$0xf] }
 0x445   :  { %v7571_v60 = vor.u32 %v10031_v5, %v7568_v34  ;;  %6378 = vmatpush.bf16.msra.mxu0 %v8919_v58  ;;  %6306 = vmatpush.bf16.msra.mxu2 %v6803_v62  ;;  %v9948_v6 = vld [vmem:[#allocation14 + $0x3b4] sm:$0xf0]  ;;  %v10008_v53 = vld [vmem:[#allocation14 + $0x59c] sm:$0xf] }
 0x446   :  { %v7958_v43 = vld [vmem:[#allocation14 + $0x958] sm:$0xf]  ;;  %v7191_v47 = vor.u32 %v9948_v6, %v7190_v18  ;;  %v6141_v55 = vpop.f32.mrf.mxu1  ;;  %v9019_v18 = vor.u32 %v10392_v25, %v9016_v28  ;;  %v9787_v6 = vor.u32 %v10584_v9, %v9784_v24  ;;  %v8056_v25 = vld [vmem:[#allocation14 + $0xa78] sm:$0xf0] }
 0x447   :  { %6391 = vmatpush.bf16.msra.mxu1 %v9687_v59  ;;  %6319 = vmatpush.bf16.msra.mxu3 %v7571_v60  ;;  %v10140_v15 = vld [vmem:[#allocation14 + $0x9b4] sm:$0xf0]  ;;  %v10200_v55 = vld [vmem:[#allocation14 + $0xb9c] sm:$0xf] }
 0x448   :  { %6307 = vmatmul.bf16.vlgmr.msra.gmra.mxu2 %v10968_v35  ;;  %v7959_v21 = vor.u32 %v10140_v15, %v7958_v43  ;;  %v9302_v23 = vld [vmem:[#allocation14 + $0x13d8] sm:$0xf]  ;;  %v8920_v43 = vld [vmem:[#allocation14 + $0x1138] sm:$0xf0] }
 0x449   :  { %6351 = vmatpush.bf16.msrb.mxu2 %v7479_v0  ;;  %6379 = vmatpush.bf16.msra.mxu0 %v8823_v54  ;;  %v10476_v57 = vld [vmem:[#allocation14 + $0x1434] sm:$0xf0]  ;;  %v10560_v15 = vld [vmem:[#allocation14 + $0x16dc] sm:$0xf] }
 0x44a   :  { %6320 = vmatmul.bf16.vlgmr.msra.gmra.mxu3 %v10970_v36  ;;  %v7094_v51 = vld [vmem:[#allocation14 + $0x298] sm:$0xf]  ;;  %v9303_v52 = vor.u32 %v10476_v57, %v9302_v23  ;;  %v6100_v0 = vpop.f32.mrf.mxu2  ;;  %v10296_v24 = vld [vmem:[#allocation14 + $0xe9c] sm:$0xf] }
 0x44b   :  { %6364 = vmatpush.bf16.msrb.mxu3 %v8247_v4  ;;  %6392 = vmatpush.bf16.msra.mxu1 %v9591_v48  ;;  %v9924_v2 = vld [vmem:[#allocation14 + $0x2f4] sm:$0xf0]  ;;  %v6101_v26 = vadd.f32 %v6100_v0, %v1336_v8  ;;  %v10176_v0 = vld [vmem:[#allocation14 + $0xadc] sm:$0xf] }
 0x44c   :  { %v7862_v5 = vld [vmem:[#allocation14 + $0x898] sm:$0xf]  ;;  %v7095_v59 = vor.u32 %v9924_v2, %v7094_v51  ;;  %v6113_v4 = vpop.f32.mrf.mxu3  ;;  %v8248_v2 = vld [vmem:[#allocation14 + $0xbf8] sm:$0xf0] }
 0x44d   :  { %6352 = vmatpush.bf16.msrb.mxu2 %v7383_v33  ;;  %6380 = vmatpush.bf16.msra.mxu0 %v8727_v10  ;;  %v10116_v34 = vld [vmem:[#allocation14 + $0x8f4] sm:$0xf0]  ;;  %v6114_v49 = vadd.f32 %v6113_v4, %v6101_v26  ;;  %v8152_v4 = vld [vmem:[#allocation14 + $0xb38] sm:$0xf0] }
 0x44e   :  { %v8438_v42 = vld [vmem:[#allocation14 + $0xd18] sm:$0xf]  ;;  %v7863_v62 = vor.u32 %v10116_v34, %v7862_v5  ;;  %v8923_v34 = vor.u32 %v10368_v40, %v8920_v43  ;;  %v8728_v26 = vld [vmem:[#allocation14 + $0xfb8] sm:$0xf0] }
 0x44f   :  { %6365 = vmatpush.bf16.msrb.mxu3 %v8151_v17  ;;  %6393 = vmatpush.bf16.msra.mxu1 %v9495_v30  ;;  %v10260_v58 = vld [vmem:[#allocation14 + $0xd74] sm:$0xf0]  ;;  %v6127_v10 = vadd.f32 %v11253_v3, %v6114_v49  ;;  %v10128_v40 = vld [vmem:[#allocation14 + $0x95c] sm:$0xf] }
 0x450   :  { %v9206_v60 = vld [vmem:[#allocation14 + $0x1318] sm:$0xf]  ;;  %v8439_v44 = vor.u32 %v10260_v58, %v8438_v42  ;;  %v10344_v42 = vld [vmem:[#allocation14 + $0x101c] sm:$0xf] }
 0x451   :  { %6353 = vmatpush.bf16.msrb.mxu2 %v7287_v39  ;;  %6381 = vmatpush.bf16.msra.mxu0 %v8631_v22  ;;  %v10452_v32 = vld [vmem:[#allocation14 + $0x1374] sm:$0xf0]  ;;  %v6140_v41 = vadd.f32 %v11255_v50, %v6127_v10  ;;  %v9688_v22 = vld [vmem:[#allocation14 + $0x1738] sm:$0xf0] }
 0x452   :  { %v6998_v61 = vld [vmem:[#allocation14 + $0x1d8] sm:$0xf]  ;;  %v9207_v16 = vor.u32 %v10452_v32, %v9206_v60  ;;  %v6102_v3 = vpop.f32.mrf.mxu2  ;;  %v7480_v50 = vld [vmem:[#allocation14 + $0x5f8] sm:$0xf0]  ;;  %v9691_v8 = vor.u32 %v10560_v15, %v9688_v22 }
 0x453   :  { %6366 = vmatpush.bf16.msrb.mxu3 %v8055_v20  ;;  %6394 = vmatpush.bf16.msra.mxu1 %v9399_v45  ;;  %v9900_v7 = vld [vmem:[#allocation14 + $0x234] sm:$0xf0]  ;;  %v6491_v57 = vrot.slane %v6140_v41, 6  ;;  %v8824_v58 = vld [vmem:[#allocation14 + $0x1078] sm:$0xf0] }
 0x454   :  { %v7766_v19 = vld [vmem:[#allocation14 + $0x7d8] sm:$0xf]  ;;  %v6999_v33 = vor.u32 %v9900_v7, %v6998_v61  ;;  %v6115_v46 = vpop.f32.mrf.mxu3  ;;  %v10536_v60 = vld [vmem:[#allocation14 + $0x161c] sm:$0xf]  ;;  %v8827_v7 = vor.u32 %v10344_v42, %v8824_v58 }
 0x455   :  { %6354 = vmatpush.bf16.msrb.mxu2 %v7191_v47  ;;  %v10092_v14 = vld [vmem:[#allocation14 + $0x834] sm:$0xf0]  ;;  %6382 = vmatpush.bf16.msra.mxu0 %v8535_v38  ;;  %v11264_v5 = vsel %vm6497_vm2, %v11249_v63, %v6491_v57  ;;  %v9592_v32 = vld [vmem:[#allocation14 + $0x1678] sm:$0xf0] }
 0x456   :  { %v8342_v54 = vld [vmem:[#allocation14 + $0xc58] sm:$0xf]  ;;  %v7767_v17 = vor.u32 %v10092_v14, %v7766_v19  ;;  %v9984_v63 = vld [vmem:[#allocation14 + $0x4dc] sm:$0xf]  ;;  %v9595_v19 = vor.u32 %v10536_v60, %v9592_v32 }
 0x457   :  { %6367 = vmatpush.bf16.msrb.mxu3 %v7959_v21  ;;  %6395 = vmatpush.bf16.msra.mxu1 %v9303_v52  ;;  %v10236_v48 = vld [vmem:[#allocation14 + $0xcb4] sm:$0xf0]  ;;  %v7384_v61 = vld [vmem:[#allocation14 + $0x538] sm:$0xf0] }
 0x458   :  { %v9110_v11 = vld [vmem:[#allocation14 + $0x1258] sm:$0xf]  ;;  %v8343_v39 = vor.u32 %v10236_v48, %v8342_v54  ;;  %v10320_v14 = vld [vmem:[#allocation14 + $0xf5c] sm:$0xf] }
 0x459   :  { %6355 = vmatpush.bf16.msrb.mxu2 %v7095_v59  ;;  %v10428_v27 = vld [vmem:[#allocation14 + $0x12b4] sm:$0xf0]  ;;  %6383 = vmatpush.bf16.msra.mxu0 %v8439_v44  ;;  %v7483_v59 = vor.u32 %v10008_v53, %v7480_v50  ;;  %v7387_v44 = vor.u32 %v9984_v63, %v7384_v61  ;;  %v10512_v54 = vld [vmem:[#allocation14 + $0x155c] sm:$0xf]  ;;  %v8731_v28 = vor.u32 %v10320_v14, %v8728_v26 }
 0x45a   :  { %v6902_v29 = vld [vmem:[#allocation14 + $0x118] sm:$0xf]  ;;  %v9111_v20 = vor.u32 %v10428_v27, %v9110_v11  ;;  %v9496_v48 = vld [vmem:[#allocation14 + $0x15b8] sm:$0xf0] }
 0x45b   :  { %6368 = vmatpush.bf16.msrb.mxu3 %v7863_v62  ;;  %v9876_v30 = vld [vmem:[#allocation14 + $0x174] sm:$0xf0]  ;;  %6396 = vmatpush.bf16.msra.mxu1 %v9207_v16  ;;  %v8251_v62 = vor.u32 %v10200_v55, %v8248_v2  ;;  %v8155_v16 = vor.u32 %v10176_v0, %v8152_v4  ;;  %v9960_v11 = vld [vmem:[#allocation14 + $0x41c] sm:$0xf]  ;;  %v9499_v9 = vor.u32 %v10512_v54, %v9496_v48 }
 0x45c   :  { %v7670_v31 = vld [vmem:[#allocation14 + $0x718] sm:$0xf]  ;;  %v6903_v45 = vor.u32 %v9876_v30, %v6902_v29  ;;  %v11268_v49 = vpop.f32.mrf.mxu0  ;;  %v10152_v27 = vld [vmem:[#allocation14 + $0xa1c] sm:$0xf] }
 0x45d   :  { %v10068_v37 = vld [vmem:[#allocation14 + $0x774] sm:$0xf0]  ;;  %6356 = vmatpush.bf16.msrb.mxu2 %v6999_v33  ;;  %6384 = vmatpush.bf16.msra.mxu0 %v8343_v39  ;;  %v8632_v29 = vld [vmem:[#allocation14 + $0xef8] sm:$0xf0]  ;;  %v8059_v30 = vor.u32 %v10152_v27, %v8056_v25 }
 0x45e   :  { %v7671_v56 = vor.u32 %v10068_v37, %v7670_v31  ;;  %v6806_v47 = vld [vmem:[#allocation14 + $0x58] sm:$0xf]  ;;  %v11270_v33 = vpop.f32.mrf.mxu1  ;;  %v10488_v31 = vld [vmem:[#allocation14 + $0x149c] sm:$0xf] }
 0x45f   :  { %6369 = vmatpush.bf16.msrb.mxu3 %v7767_v17  ;;  %v9852_v21 = vld [vmem:[#allocation14 + $0xb4] sm:$0xf0]  ;;  %6397 = vmatpush.bf16.msra.mxu1 %v9111_v20  ;;  %v7288_v17 = vld [vmem:[#allocation14 + $0x478] sm:$0xf0] }
 0x460   :  { %v7574_v23 = vld [vmem:[#allocation14 + $0x658] sm:$0xf]  ;;  %v6807_v38 = vor.u32 %v9852_v21, %v6806_v47  ;;  %6385 = vmatmul.bf16.vlgmr.msra.gmra.mxu0 %v10962_v12  ;;  %v7291_v10 = vor.u32 %v9960_v11, %v7288_v17  ;;  %v9400_v37 = vld [vmem:[#allocation14 + $0x14f8] sm:$0xf0] }
 0x461   :  { %v10044_v51 = vld [vmem:[#allocation14 + $0x6b4] sm:$0xf0]  ;;  %6429 = vmatpush.bf16.msrb.mxu0 %v9019_v18  ;;  %6357 = vmatpush.bf16.msrb.mxu2 %v6903_v45  ;;  %v9936_v39 = vld [vmem:[#allocation14 + $0x35c] sm:$0xf]  ;;  %v8635_v18 = vor.u32 %v10296_v24, %v8632_v29 }
 0x462   :  { %v7575_v52 = vor.u32 %v10044_v51, %v7574_v23  ;;  %6398 = vmatmul.bf16.vlgmr.msra.gmra.mxu1 %v10964_v13  ;;  %v7192_v20 = vld [vmem:[#allocation14 + $0x3b8] sm:$0xf0] }
 0x463   :  { %6442 = vmatpush.bf16.msrb.mxu1 %v9787_v6  ;;  %6370 = vmatpush.bf16.msrb.mxu3 %v7671_v56  ;;  %v7960_v41 = vld [vmem:[#allocation14 + $0x9b8] sm:$0xf0]  ;;  %v9403_v6 = vor.u32 %v10488_v31, %v9400_v37  ;;  %v7195_v22 = vor.u32 %v9936_v39, %v7192_v20 }
 0x464   :  { %v10272_v43 = vld [vmem:[#allocation14 + $0xddc] sm:$0xf]  ;;  %v7963_v45 = vor.u32 %v10128_v40, %v7960_v41  ;;  %v6180_v47 = vpop.f32.mrf.mxu0  ;;  %v1337_v40 = vperm.slane %v11244_v1, 2 }
 0x465   :  { %6430 = vmatpush.bf16.msrb.mxu0 %v8923_v34  ;;  %6358 = vmatpush.bf16.msrb.mxu2 %v6807_v38  ;;  %v8536_v15 = vld [vmem:[#allocation14 + $0xe38] sm:$0xf0] }
 0x466   :  { %v10464_v56 = vld [vmem:[#allocation14 + $0x13dc] sm:$0xf]  ;;  %v6193_v21 = vpop.f32.mrf.mxu1  ;;  %v8539_v53 = vor.u32 %v10272_v43, %v8536_v15  ;;  %v1338_v15 = vperm.slane %v11244_v1, 3 }
 0x467   :  { %6443 = vmatpush.bf16.msrb.mxu1 %v9691_v8  ;;  %6371 = vmatpush.bf16.msrb.mxu3 %v7575_v52  ;;  %v9304_v3 = vld [vmem:[#allocation14 + $0x1438] sm:$0xf0] }
 0x468   :  { %6359 = vmatmul.bf16.vlgmr.msrb.gmra.mxu2 %v10968_v35  ;;  %v9912_v46 = vld [vmem:[#allocation14 + $0x29c] sm:$0xf]  ;;  %v9307_v50 = vor.u32 %v10464_v56, %v9304_v3 }
 0x469   :  { %6403 = vmatpush.bf16.msra.mxu2 %v7483_v59  ;;  %6431 = vmatpush.bf16.msrb.mxu0 %v8827_v7  ;;  %v7096_v23 = vld [vmem:[#allocation14 + $0x2f8] sm:$0xf0] }
 0x46a   :  { %6372 = vmatmul.bf16.vlgmr.msrb.gmra.mxu3 %v10970_v36  ;;  %v10104_v57 = vld [vmem:[#allocation14 + $0x89c] sm:$0xf]  ;;  %v7099_v34 = vor.u32 %v9912_v46, %v7096_v23  ;;  %v6152_v58 = vpop.f32.mrf.mxu2 }
 0x46b   :  { %6416 = vmatpush.bf16.msra.mxu3 %v8251_v62  ;;  %6444 = vmatpush.bf16.msrb.mxu1 %v9595_v19  ;;  %v7864_v51 = vld [vmem:[#allocation14 + $0x8f8] sm:$0xf0]  ;;  %v6153_v41 = vadd.f32 %v6152_v58, %v1337_v40  ;;  %v1342_v40 = vperm.slane %v11244_v1, 7 }
 0x46c   :  { %v10248_v55 = vld [vmem:[#allocation14 + $0xd1c] sm:$0xf]  ;;  %v7867_v8 = vor.u32 %v10104_v57, %v7864_v51  ;;  %v6165_v59 = vpop.f32.mrf.mxu3 }
 0x46d   :  { %6404 = vmatpush.bf16.msra.mxu2 %v7387_v44  ;;  %6432 = vmatpush.bf16.msrb.mxu0 %v8731_v28  ;;  %v8440_v2 = vld [vmem:[#allocation14 + $0xd78] sm:$0xf0]  ;;  %v6166_v43 = vadd.f32 %v6165_v59, %v6153_v41 }
 0x46e   :  { %v10440_v38 = vld [vmem:[#allocation14 + $0x131c] sm:$0xf]  ;;  %v8443_v63 = vor.u32 %v10248_v55, %v8440_v2  ;;  %v1339_v2 = vperm.slane %v11244_v1, 4 }
 0x46f   :  { %6417 = vmatpush.bf16.msra.mxu3 %v8155_v16  ;;  %6445 = vmatpush.bf16.msrb.mxu1 %v9499_v9  ;;  %v9208_v52 = vld [vmem:[#allocation14 + $0x1378] sm:$0xf0] }
 0x470   :  { %v9888_v42 = vld [vmem:[#allocation14 + $0x1dc] sm:$0xf]  ;;  %v9211_v61 = vor.u32 %v10440_v38, %v9208_v52 }
 0x471   :  { %6405 = vmatpush.bf16.msra.mxu2 %v7291_v10  ;;  %6433 = vmatpush.bf16.msrb.mxu0 %v8635_v18  ;;  %v7000_v62 = vld [vmem:[#allocation14 + $0x238] sm:$0xf0] }
 0x472   :  { %v10080_v60 = vld [vmem:[#allocation14 + $0x7dc] sm:$0xf]  ;;  %v7003_v7 = vor.u32 %v9888_v42, %v7000_v62  ;;  %v6154_v9 = vpop.f32.mrf.mxu2 }
 0x473   :  { %6418 = vmatpush.bf16.msra.mxu3 %v8059_v30  ;;  %6446 = vmatpush.bf16.msrb.mxu1 %v9403_v6  ;;  %v7768_v32 = vld [vmem:[#allocation14 + $0x838] sm:$0xf0] }
 0x474   :  { %v10224_v0 = vld [vmem:[#allocation14 + $0xc5c] sm:$0xf]  ;;  %v7771_v19 = vor.u32 %v10080_v60, %v7768_v32  ;;  %v6167_v24 = vpop.f32.mrf.mxu3 }
 0x475   :  { %6406 = vmatpush.bf16.msra.mxu2 %v7195_v22  ;;  %6434 = vmatpush.bf16.msrb.mxu0 %v8539_v53  ;;  %v8344_v4 = vld [vmem:[#allocation14 + $0xcb8] sm:$0xf0] }
 0x476   :  { %v10416_v14 = vld [vmem:[#allocation14 + $0x125c] sm:$0xf]  ;;  %v8347_v11 = vor.u32 %v10224_v0, %v8344_v4 }
 0x477   :  { %6419 = vmatpush.bf16.msra.mxu3 %v7963_v45  ;;  %6447 = vmatpush.bf16.msrb.mxu1 %v9307_v50  ;;  %v9112_v26 = vld [vmem:[#allocation14 + $0x12b8] sm:$0xf0] }
 0x478   :  { %v9864_v44 = vld [vmem:[#allocation14 + $0x11c] sm:$0xf]  ;;  %v9115_v17 = vor.u32 %v10416_v14, %v9112_v26 }
 0x479   :  { %6407 = vmatpush.bf16.msra.mxu2 %v7099_v34  ;;  %v6904_v16 = vld [vmem:[#allocation14 + $0x178] sm:$0xf0]  ;;  %6435 = vmatpush.bf16.msrb.mxu0 %v8443_v63 }
 0x47a   :  { %v10056_v54 = vld [vmem:[#allocation14 + $0x71c] sm:$0xf]  ;;  %v6907_v27 = vor.u32 %v9864_v44, %v6904_v16 }
 0x47b   :  { %6420 = vmatpush.bf16.msra.mxu3 %v7867_v8  ;;  %v7672_v48 = vld [vmem:[#allocation14 + $0x778] sm:$0xf0]  ;;  %6448 = vmatpush.bf16.msrb.mxu1 %v9211_v61 }
 0x47c   :  { %v7675_v25 = vor.u32 %v10056_v54, %v7672_v48  ;;  %v9840_v28 = vld [vmem:[#allocation14 + $0x5c] sm:$0xf]  ;;  %v6230_v39 = vpop.f32.mrf.mxu0 }
 0x47d   :  { %6408 = vmatpush.bf16.msra.mxu2 %v7003_v7  ;;  %v6808_v29 = vld [vmem:[#allocation14 + $0xb8] sm:$0xf0]  ;;  %6436 = vmatpush.bf16.msrb.mxu0 %v8347_v11 }
 0x47e   :  { %v10032_v10 = vld [vmem:[#allocation14 + $0x65c] sm:$0xf]  ;;  %v6811_v31 = vor.u32 %v9840_v28, %v6808_v29  ;;  %v6243_v20 = vpop.f32.mrf.mxu1  ;;  %v1341_v29 = vperm.slane %v11244_v1, 6 }
 0x47f   :  { %6421 = vmatpush.bf16.msra.mxu3 %v7771_v19  ;;  %v7576_v30 = vld [vmem:[#allocation14 + $0x6b8] sm:$0xf0]  ;;  %6449 = vmatpush.bf16.msrb.mxu1 %v9115_v17 }
 0x480   :  { %v7579_v37 = vor.u32 %v10032_v10, %v7576_v30  ;;  %6437 = vmatmul.bf16.vlgmr.msrb.gmra.mxu0 %v10962_v12 }
 0x481   :  { %6409 = vmatpush.bf16.msra.mxu2 %v6907_v27 }
 0x482   :  { %6450 = vmatmul.bf16.vlgmr.msrb.gmra.mxu1 %v10964_v13  ;;  %v6179_v13 = vadd.f32 %v11268_v49, %v6166_v43 }
 0x483   :  { %6422 = vmatpush.bf16.msra.mxu3 %v7675_v25 }
 0x484   :  { %v6232_v18 = vpop.f32.mrf.mxu0 }
 0x485   :  { %6410 = vmatpush.bf16.msra.mxu2 %v6811_v31 }
 0x486   :  { %v6245_v6 = vpop.f32.mrf.mxu1 }
 0x487   :  { %6423 = vmatpush.bf16.msra.mxu3 %v7579_v37 }
 0x488   :  { %6411 = vmatmul.bf16.vlgmr.msra.gmra.mxu2 %v10968_v35  ;;  %v6192_v35 = vadd.f32 %v11270_v33, %v6179_v13 }
 0x48a   :  { %6424 = vmatmul.bf16.vlgmr.msra.gmra.mxu3 %v10970_v36  ;;  %v6204_v22 = vpop.f32.mrf.mxu2  ;;  %v6492_v21 = vrot.slane %v6192_v35, 4 }
 0x48b   :  { %v6205_v45 = vadd.f32 %v6204_v22, %v1338_v15 }
 0x48c   :  { %v6217_v12 = vpop.f32.mrf.mxu3 }
 0x48d   :  { %v6218_v56 = vadd.f32 %v6217_v12, %v6205_v45 }
 0x48f   :  { %v6231_v3 = vadd.f32 %v6230_v39, %v6218_v56 }
 0x491   :  { %v6244_v36 = vadd.f32 %v6243_v20, %v6231_v3 }
 0x492   :  { %v6206_v46 = vpop.f32.mrf.mxu2 }
 0x493   :  { %v6493_v23 = vrot.slane %v6244_v36, 2 }
 0x494   :  { %v6219_v47 = vpop.f32.mrf.mxu3 }
 0x495   :  { %v6513_v57 = vsel %vm6499_vm3, %v6492_v21, %v6493_v23 }
 0x496   :  { %v6514_v51 = vsel %vm6501_vm4, %v11264_v5, %v6513_v57  ;;  %v1340_v5 = vperm.slane %v11244_v1, 5 }
 0x497   :  { %6528 = vst [vmem:[#allocation17 + $0x20] sm:$0xff] %v6514_v51 }
 0x49c   :  { %v6282_v53 = vpop.f32.mrf.mxu0 }
 0x49e   :  { %v6295_v50 = vpop.f32.mrf.mxu1 }
 0x4a4   :  { %v6284_v55 = vpop.f32.mrf.mxu0 }
 0x4a6   :  { %v6297_v49 = vpop.f32.mrf.mxu1 }
 0x4aa   :  { %v6256_v34 = vpop.f32.mrf.mxu2 }
 0x4ab   :  { %v6257_v8 = vadd.f32 %v6256_v34, %v1339_v2 }
 0x4ac   :  { %v6269_v33 = vpop.f32.mrf.mxu3 }
 0x4ad   :  { %v6270_v38 = vadd.f32 %v6269_v33, %v6257_v8 }
 0x4af   :  { %v6283_v52 = vadd.f32 %v6282_v53, %v6270_v38 }
 0x4b1   :  { %v6296_v42 = vadd.f32 %v6295_v50, %v6283_v52 }
 0x4b2   :  { %v6258_v58 = vpop.f32.mrf.mxu2 }
 0x4b4   :  { %v6271_v59 = vpop.f32.mrf.mxu3 }
 0x4bd   :  { %v6334_v62 = vpop.f32.mrf.mxu0 }
 0x4bf   :  { %v6347_v60 = vpop.f32.mrf.mxu1 }
 0x4c5   :  { %v6336_v32 = vpop.f32.mrf.mxu0 }
 0x4c7   :  { %v6349_v63 = vpop.f32.mrf.mxu1 }
 0x4cb   :  { %v6308_v61 = vpop.f32.mrf.mxu2 }
 0x4cc   :  { %v6309_v4 = vadd.f32 %v6308_v61, %v1340_v5 }
 0x4cd   :  { %v6321_v0 = vpop.f32.mrf.mxu3 }
 0x4ce   :  { %v6322_v7 = vadd.f32 %v6321_v0, %v6309_v4 }
 0x4d0   :  { %v6335_v19 = vadd.f32 %v6334_v62, %v6322_v7 }
 0x4d2   :  { %v6348_v14 = vadd.f32 %v6347_v60, %v6335_v19 }
 0x4d3   :  { %v6310_v26 = vpop.f32.mrf.mxu2 }
 0x4d4   :  { %v6494_v16 = vrot.slane %v6348_v14, 6 }
 0x4d5   :  { %v6323_v44 = vpop.f32.mrf.mxu3 }
 0x4d6   :  { %v6515_v54 = vsel %vm6497_vm2, %v6296_v42, %v6494_v16 }
 0x4dd   :  { %v6386_v48 = vpop.f32.mrf.mxu0 }
 0x4df   :  { %v6399_v11 = vpop.f32.mrf.mxu1 }
 0x4e5   :  { %v6388_v17 = vpop.f32.mrf.mxu0 }
 0x4e7   :  { %v6401_v27 = vpop.f32.mrf.mxu1 }
 0x4eb   :  { %v6360_v25 = vpop.f32.mrf.mxu2 }
 0x4ec   :  { %v6361_v31 = vadd.f32 %v6360_v25, %v1341_v29 }
 0x4ed   :  { %v6373_v28 = vpop.f32.mrf.mxu3 }
 0x4ee   :  { %v6374_v37 = vadd.f32 %v6373_v28, %v6361_v31 }
 0x4f0   :  { %v6387_v6 = vadd.f32 %v6386_v48, %v6374_v37 }
 0x4f2   :  { %v6400_v22 = vadd.f32 %v6399_v11, %v6387_v6 }
 0x4f3   :  { %v6362_v9 = vpop.f32.mrf.mxu2 }
 0x4f4   :  { %v6495_v35 = vrot.slane %v6400_v22, 4 }
 0x4f5   :  { %v6375_v24 = vpop.f32.mrf.mxu3 }
 0x4fd   :  { %v6438_v10 = vpop.f32.mrf.mxu0 }
 0x4ff   :  { %v6451_v30 = vpop.f32.mrf.mxu1 }
 0x505   :  { %v6440_v39 = vpop.f32.mrf.mxu0 }
 0x507   :  { %v6453_v20 = vpop.f32.mrf.mxu1 }
 0x50b   :  { %v6412_v41 = vpop.f32.mrf.mxu2 }
 0x50c   :  { %v6413_v43 = vadd.f32 %v6412_v41, %v1342_v40 }
 0x50d   :  { %v6425_v18 = vpop.f32.mrf.mxu3 }
 0x50e   :  { %v6426_v15 = vadd.f32 %v6425_v18, %v6413_v43 }
 0x510   :  { %v6439_v12 = vadd.f32 %v6438_v10, %v6426_v15 }
 0x512   :  { %v6452_v13 = vadd.f32 %v6451_v30, %v6439_v12 }
 0x513   :  { %v6414_v45 = vpop.f32.mrf.mxu2 }
 0x514   :  { %v6496_v3 = vrot.slane %v6452_v13, 2 }
 0x515   :  { %v6427_v56 = vpop.f32.mrf.mxu3 }
 0x516   :  { %v6516_v1 = vsel %vm6499_vm3, %v6495_v35, %v6496_v3 }
 0x517   :  { %v6517_v36 = vsel %vm6501_vm4, %v6515_v54, %v6516_v1 }
 0x518   :  { %6529 = vst [vmem:[#allocation17 + $0x28] sm:$0xff] %v6517_v36 }
 0x519   :  { %6540 = dma.vmem_to_hbm [thread:$0]  %s6536_s8, 768, %s6538_s11, [#allocation4]  }
 0x51a   :  { %10867 = dma.done.wait [#allocation4], 768  }
 0x51b   :  { %10868 = vsyncadd [#allocation4], 4294966528 }
 0x51c   :  { %6545 = vsyncpa [#allocation3], 1 }
 0x51d   :  { %6546 = vsyncpa [#allocation6], 1 }
 0x51e   :  { %6547 = vsyncpa [#allocation9], 1 }
 0x51f   :  { %6548 = vsyncpa [#allocation12], 1 }
 0x520   :  { %6549 = vsyncpa [#allocation15], 1 }
 0x521   :  { %6550 = vsyncpa [#allocation4], 1 }

</bundles_post_ra>
